<compile_context>
chip_gen: v7x
topology: tpu7x:2x2x1
jax: 0.10.0
libtpu: 0.0.40
codegen_flags: <defaults>
</compile_context>

<pallas_src>
import functools

import jax
import jax.numpy as jnp
import numpy as np
from jax import lax
from jax.experimental import pallas as pl
from jax.experimental.pallas import tpu as pltpu


def model5_kernel(xm_ref, d_ref, h0_ref, w_ref, b_ref, y_ref,
                  gi1_s, gh_s, h3_s, *, hidden, input_size, num_class):
    H = hidden
    V = input_size
    C = num_class
    T, B, _ = d_ref.shape
    f32 = jnp.float32

    xm = xm_ref[...]                      # (T, 2B, V)
    x_all = xm[:, 0:B, :]                 # (T, B, V)
    m_all = xm[:, B:2 * B, :]             # (T, B, V)
    d_all = d_ref[...]                    # (T, B, 1)

    bias = b_ref[...]                     # (8, 4H) -- one vreg
    b1 = bias[0:1, :]
    b2 = bias[1:2, :]
    b3 = bias[2:3, :]
    by = bias[3:4, 0:C]
    wdx = bias[4:5, 0:V]
    bdx = bias[5:6, 0:V]
    wdh = bias[6:7, 0:H]
    bdh = bias[7:8, 0:H]

    # ---------------- precompute (vectorised over T, no recurrence) ----------
    # hidden-state decay gamma_h[t] = exp(-relu(d_t @ Wdh + bdh)); identity at t==0
    gh_s[...] = jnp.exp(-jnp.maximum(d_all * wdh + bdh, 0.0))
    gh_s[0] = jnp.ones((B, H), f32)

    # GRU-D input imputation for t >= 1 (kept in registers; no scratch)
    gamma_x = jnp.exp(-jnp.maximum(d_all[1:] * wdx + bdx, 0.0))       # (T-1,B,V)
    x0 = x_all[0:1]                                                    # (1,B,V)
    x1_tail = ((x_all[:-1] * gamma_x + (1.0 - gamma_x) * x0) * (1.0 - m_all[1:])
               + m_all[1:] * x_all[1:])                                # (T-1,B,V)
    x1 = jnp.concatenate([x_all[0:1], x1_tail], axis=0)                # (T,B,V)

    # all layer-1 input-side gate pre-activations in one MXU matmul,
    # 4H layout [r | z | n | 0], fused input+hidden biases already included
    wi1 = w_ref[pl.ds(0, V), :]                                        # (V,4H)
    gi1 = jnp.dot(x1.reshape(T * B, V), wi1, preferred_element_type=f32) + b1
    gi1_s[...] = gi1.reshape(T, B, 4 * H)

    # hoisted recurrent weights (read once)
    wh1 = w_ref[pl.ds(V, H), :]            # (H,4H)  [Wh_r|Wh_z|0|Wh_n]
    w2i = w_ref[pl.ds(V + H, H), :]        # (H,4H)  [Wi_r|Wi_z|Wi_n|0]
    w2h = w_ref[pl.ds(V + 2 * H, H), :]    # (H,4H)  [Wh_r|Wh_z|0|Wh_n]
    w3i = w_ref[pl.ds(V + 3 * H, H), :]
    w3h = w_ref[pl.ds(V + 4 * H, H), :]

    def gates(g, h_prev):
        # g columns: [r_sum | z_sum | gi_n | gh_n]
        rz = jax.nn.sigmoid(g[:, 0:2 * H])            # one 64-lane sigmoid
        r = rz[:, 0:H]
        z = rz[:, H:2 * H]
        n = jnp.tanh(g[:, 2 * H:3 * H] + r * g[:, 3 * H:4 * H])
        return (1.0 - z) * n + z * h_prev

    # ---------------- recurrent sweep ----------------------------------------
    def step(t, carry):
        h1, h2, h3 = carry
        g_h = gh_s[t]                      # (B, H); == 1 at t == 0
        h1 = h1 * g_h
        h2 = h2 * g_h
        h3 = h3 * g_h

        # h_prev-side dots for layers 2/3 depend only on the decayed previous
        # state -> issued early, off the layer-1 chain
        gh2 = jnp.dot(h2, w2h, preferred_element_type=f32)
        gh3 = jnp.dot(h3, w3h, preferred_element_type=f32)

        # layer 1: input-side gates (and all biases) precomputed
        g1 = gi1_s[t] + jnp.dot(h1, wh1, preferred_element_type=f32)
        h1 = gates(g1, h1)

        # layers 2 / 3: split dots, biases fused host-side
        g2 = jnp.dot(h1, w2i, preferred_element_type=f32) + gh2 + b2
        h2 = gates(g2, h2)
        g3 = jnp.dot(h2, w3i, preferred_element_type=f32) + gh3 + b3
        h3 = gates(g3, h3)

        h3_s[t] = h3
        return h1, h2, h3

    lax.fori_loop(0, T, step, (h0_ref[0], h0_ref[1], h0_ref[2]), unroll=True)

    # ---------------- deferred softmax head (off the serial chain) -----------
    wy = w_ref[pl.ds(V + 5 * H, H), :]                 # (H,4H); cols >= C are zero
    h3_all = h3_s[...].reshape(T * B, H)
    logits = jnp.dot(h3_all, wy, preferred_element_type=f32)[:, 0:C] + by
    logits = logits - jnp.max(logits, axis=-1, keepdims=True)
    e = jnp.exp(logits)
    probs = e * pl.reciprocal(jnp.sum(e, axis=-1, keepdims=True), approx=True)
    y_ref[...] = probs.reshape(T, B, C)


def model5_forward(x, d, m1, h0_1, h0_2, h0_3, p):
    """x: (B,T,V), d: (B,T,1), m1: (B,T,V)  ->  Y: (B,T,C)."""
    B, T, V = x.shape
    H = p['wh1'].shape[0]
    C = p['wy'].shape[1]
    f32 = jnp.float32

    # time-major; pack x and m along the (aligned) batch axis -> one input DMA
    x_tm = jnp.transpose(x, (1, 0, 2))
    m_tm = jnp.transpose(m1, (1, 0, 2))
    d_tm = jnp.transpose(d, (1, 0, 2))
    xm = jnp.concatenate([x_tm, m_tm], axis=1)                 # (T, 2B, V)

    h0_all = jnp.stack([h0_1, h0_2, h0_3], axis=0)             # (3, B, H)

    # ---- host-side parameter packing (20 tensors -> 2 slabs) ----------------
    def ext_in(wi):   # (K,3H) -> (K,4H) columns [Wi_r|Wi_z|Wi_n|0]
        return jnp.concatenate([wi, jnp.zeros((wi.shape[0], H), f32)], axis=1)

    def ext_h(wh):    # (H,3H) -> (H,4H) columns [Wh_r|Wh_z|0|Wh_n]
        return jnp.concatenate([wh[:, :2 * H], jnp.zeros((H, H), f32),
                                wh[:, 2 * H:]], axis=1)

    def ext_b(bi, bh):  # (1,4H) = [bi_r+bh_r | bi_z+bh_z | bi_n | bh_n]
        return jnp.concatenate([bi[:, :2 * H] + bh[:, :2 * H],
                                bi[:, 2 * H:], bh[:, 2 * H:]], axis=1)

    def pad_row(v):
        return jnp.concatenate([v, jnp.zeros((1, 4 * H - v.shape[1]), f32)], axis=1)

    W_all = jnp.concatenate([
        ext_in(p['wi1']), ext_h(p['wh1']),
        ext_in(p['wi2']), ext_h(p['wh2']),
        ext_in(p['wi3']), ext_h(p['wh3']),
        jnp.concatenate([p['wy'], jnp.zeros((H, 4 * H - C), f32)], axis=1),
    ], axis=0)                                                 # (V + 6H, 4H)

    bias_all = jnp.concatenate([
        ext_b(p['bi1'], p['bh1']),
        ext_b(p['bi2'], p['bh2']),
        ext_b(p['bi3'], p['bh3']),
        pad_row(p['by']),
        pad_row(p['wdx']), pad_row(p['bdx']),
        pad_row(p['wdh']), pad_row(p['bdh']),
    ], axis=0)                                                 # (8, 4H)

    def full(shape):
        zeros = (0,) * len(shape)
        return pl.BlockSpec(shape, lambda i: zeros)

    kernel = functools.partial(model5_kernel, hidden=H, input_size=V, num_class=C)
    Y_tm = pl.pallas_call(
        kernel,
        out_shape=jax.ShapeDtypeStruct((T, B, C), f32),
        grid_spec=pltpu.PrefetchScalarGridSpec(
            num_scalar_prefetch=0,
            grid=(1,),
            in_specs=[
                full((T, 2 * B, V)),          # packed x | m
                full((T, B, 1)),              # d
                full((3, B, H)),              # h0 stack
                full((V + 6 * H, 4 * H)),     # all weight matrices
                full((8, 4 * H)),             # all biases / decay params
            ],
            out_specs=full((T, B, C)),
            scratch_shapes=[
                pltpu.VMEM((T, B, 4 * H), f32),   # precomputed layer-1 gi (+biases)
                pltpu.VMEM((T, B, H), f32),       # per-step hidden decay gamma_h
                pltpu.VMEM((T, B, H), f32),       # per-step h3 for deferred head
            ]),
        compiler_params=pltpu.CompilerParams(
            dimension_semantics=("arbitrary",)),
    )(xm, d_tm, h0_all, W_all, bias_all)

    return jnp.transpose(Y_tm, (1, 0, 2))


def model5_reference(x, d, m1, h0_1, h0_2, h0_3, p):
    """Plain-JAX reference mirroring the PyTorch Model5.forward."""
    B, T, V = x.shape
    H = p['wh1'].shape[0]

    def gru(xv, h, wi, wh, bi, bh):
        gi = xv @ wi + bi
        gh = h @ wh + bh
        r = jax.nn.sigmoid(gi[:, :H] + gh[:, :H])
        z = jax.nn.sigmoid(gi[:, H:2 * H] + gh[:, H:2 * H])
        n = jnp.tanh(gi[:, 2 * H:] + r * gh[:, 2 * H:])
        return (1 - z) * n + z * h

    h1, h2, h3 = h0_1, h0_2, h0_3
    Y = []
    for t in range(T):
        if t > 0:
            gamma_h = jnp.exp(-jax.nn.relu(d[:, t, :] @ p['wdh'] + p['bdh']))
            h1, h2, h3 = h1 * gamma_h, h2 * gamma_h, h3 * gamma_h
            gamma_x = jnp.exp(-jax.nn.relu(d[:, t, :] @ p['wdx'] + p['bdx']))
            x1 = ((x[:, t - 1, :] * gamma_x + (1 - gamma_x) * x[:, 0, :]) * (1 - m1[:, t, :])
                  + m1[:, t, :] * x[:, t, :])
        else:
            x1 = x[:, 0, :]
        h1 = gru(x1, h1, p['wi1'], p['wh1'], p['bi1'], p['bh1'])
        h2 = gru(h1, h2, p['wi2'], p['wh2'], p['bi2'], p['bh2'])
        h3 = gru(h2, h3, p['wi3'], p['wh3'], p['bi3'], p['bh3'])
        Y.append(jax.nn.softmax(h3 @ p['wy'] + p['by'], axis=1))
    return jnp.stack(Y, 1)


if __name__ == "__main__":
    B, T, V, H, C = 8, 8, 16, 32, 4   # batch, time_len, input_size, hidden_size, num_class

    key = jax.random.PRNGKey(0)
    ks = jax.random.split(key, 40)
    k = iter(range(40))

    # inputs (deterministic)
    x = jax.random.normal(ks[next(k)], (B, T, V), jnp.float32)
    d = jax.random.uniform(ks[next(k)], (B, T, 1), jnp.float32)
    m1 = (jax.random.uniform(ks[next(k)], (B, T, V)) > 0.3).astype(jnp.float32)

    # initial hidden states ~ N(0, 0.1) (the PyTorch forward samples these internally;
    # passed explicitly here for determinism)
    h0_1 = 0.1 * jax.random.normal(ks[next(k)], (B, H), jnp.float32)
    h0_2 = 0.1 * jax.random.normal(ks[next(k)], (B, H), jnp.float32)
    h0_3 = 0.1 * jax.random.normal(ks[next(k)], (B, H), jnp.float32)

    # parameters (synthetic deterministic init; stored pre-transposed so the
    # kernel computes x @ W, matching nn.GRUCell / nn.Linear semantics)
    def w(shape, scale=0.1):
        return scale * jax.random.normal(ks[next(k)], shape, jnp.float32)

    params = {
        'wi1': w((V, 3 * H)), 'wh1': w((H, 3 * H)), 'bi1': w((1, 3 * H)), 'bh1': w((1, 3 * H)),
        'wi2': w((H, 3 * H)), 'wh2': w((H, 3 * H)), 'bi2': w((1, 3 * H)), 'bh2': w((1, 3 * H)),
        'wi3': w((H, 3 * H)), 'wh3': w((H, 3 * H)), 'bi3': w((1, 3 * H)), 'bh3': w((1, 3 * H)),
        'wy': w((H, C)), 'by': w((1, C)),
        'wdx': w((1, V)), 'bdx': w((1, V)),
        'wdh': w((1, H)), 'bdh': w((1, H)),
    }

    Y = model5_forward(x, d, m1, h0_1, h0_2, h0_3, params)
    Y = jax.block_until_ready(Y)

    Y_ref = model5_reference(x, d, m1, h0_1, h0_2, h0_3, params)
    np.testing.assert_allclose(np.asarray(Y), np.asarray(Y_ref), rtol=5e-3, atol=5e-3)

    print("KERNEL_OK")
</pallas_src>

<mosaic_0001>
module attributes {stable_mosaic.version = 11 : i64} {
  func.func @model5_kernel(%arg0: i32, %arg1: memref<8x16x16xf32, #tpu.memory_space<vmem>>, %arg2: memref<8x8x1xf32, #tpu.memory_space<vmem>>, %arg3: memref<3x8x32xf32, #tpu.memory_space<vmem>>, %arg4: memref<208x128xf32, #tpu.memory_space<vmem>>, %arg5: memref<8x128xf32, #tpu.memory_space<vmem>>, %arg6: memref<8x8x4xf32, #tpu.memory_space<vmem>>, %arg7: memref<8x8x128xf32, #tpu.memory_space<vmem>>, %arg8: memref<8x8x32xf32, #tpu.memory_space<vmem>>, %arg9: memref<8x8x32xf32, #tpu.memory_space<vmem>>) attributes {dimension_semantics = [#tpu.dimension_semantics<arbitrary>], iteration_bounds = array<i64: 1>, scalar_prefetch = 0 : i64, scratch_operands = 3 : i64, tpu.core_type = #tpu.core_type<tc>, window_params = [{pipeline_mode = #tpu.pipeline_mode<synchronous>, transform_indices = @transform_0, window_bounds = array<i64: 8, 16, 16>}, {pipeline_mode = #tpu.pipeline_mode<synchronous>, transform_indices = @transform_1, window_bounds = array<i64: 8, 8, 1>}, {pipeline_mode = #tpu.pipeline_mode<synchronous>, transform_indices = @transform_2, window_bounds = array<i64: 3, 8, 32>}, {pipeline_mode = #tpu.pipeline_mode<synchronous>, transform_indices = @transform_3, window_bounds = array<i64: 208, 128>}, {pipeline_mode = #tpu.pipeline_mode<synchronous>, transform_indices = @transform_4, window_bounds = array<i64: 8, 128>}, {pipeline_mode = #tpu.pipeline_mode<synchronous>, transform_indices = @transform_5, window_bounds = array<i64: 8, 8, 4>}]} {
    %c0 = arith.constant 0 : index
    %c0_0 = arith.constant 0 : index
    %c0_1 = arith.constant 0 : index
    %0 = vector.load %arg1[%c0, %c0_0, %c0_1] : memref<8x16x16xf32, #tpu.memory_space<vmem>>, vector<8x16x16xf32>
    %1 = vector.extract_strided_slice %0 {offsets = [0, 0, 0], sizes = [8, 8, 16], strides = [1, 1, 1]} : vector<8x16x16xf32> to vector<8x8x16xf32>
    %2 = vector.extract_strided_slice %0 {offsets = [0, 8, 0], sizes = [8, 8, 16], strides = [1, 1, 1]} : vector<8x16x16xf32> to vector<8x8x16xf32>
    %c0_2 = arith.constant 0 : index
    %c0_3 = arith.constant 0 : index
    %c0_4 = arith.constant 0 : index
    %3 = vector.load %arg2[%c0_2, %c0_3, %c0_4] : memref<8x8x1xf32, #tpu.memory_space<vmem>>, vector<8x8x1xf32>
    %c0_5 = arith.constant 0 : index
    %c0_6 = arith.constant 0 : index
    %4 = vector.load %arg5[%c0_5, %c0_6] : memref<8x128xf32, #tpu.memory_space<vmem>>, vector<8x128xf32>
    %5 = vector.extract_strided_slice %4 {offsets = [0, 0], sizes = [1, 128], strides = [1, 1]} : vector<8x128xf32> to vector<1x128xf32>
    %6 = vector.extract_strided_slice %4 {offsets = [1, 0], sizes = [1, 128], strides = [1, 1]} : vector<8x128xf32> to vector<1x128xf32>
    %7 = vector.extract_strided_slice %4 {offsets = [2, 0], sizes = [1, 128], strides = [1, 1]} : vector<8x128xf32> to vector<1x128xf32>
    %8 = vector.extract_strided_slice %4 {offsets = [3, 0], sizes = [1, 4], strides = [1, 1]} : vector<8x128xf32> to vector<1x4xf32>
    %9 = vector.extract_strided_slice %4 {offsets = [4, 0], sizes = [1, 16], strides = [1, 1]} : vector<8x128xf32> to vector<1x16xf32>
    %10 = vector.extract_strided_slice %4 {offsets = [5, 0], sizes = [1, 16], strides = [1, 1]} : vector<8x128xf32> to vector<1x16xf32>
    %11 = vector.extract_strided_slice %4 {offsets = [6, 0], sizes = [1, 32], strides = [1, 1]} : vector<8x128xf32> to vector<1x32xf32>
    %12 = vector.extract_strided_slice %4 {offsets = [7, 0], sizes = [1, 32], strides = [1, 1]} : vector<8x128xf32> to vector<1x32xf32>
    %13 = vector.shape_cast %11 : vector<1x32xf32> to vector<1x1x32xf32>
    %14 = vector.broadcast %3 : vector<8x8x1xf32> to vector<8x8x32xf32>
    %15 = vector.broadcast %13 : vector<1x1x32xf32> to vector<8x8x32xf32>
    %16 = arith.mulf %14, %15 : vector<8x8x32xf32>
    %17 = vector.shape_cast %12 : vector<1x32xf32> to vector<1x1x32xf32>
    %18 = vector.broadcast %17 : vector<1x1x32xf32> to vector<8x8x32xf32>
    %19 = arith.addf %16, %18 : vector<8x8x32xf32>
    %cst = arith.constant 0.000000e+00 : f32
    %20 = vector.broadcast %cst : f32 to vector<8x8x32xf32>
    %21 = arith.maximumf %19, %20 : vector<8x8x32xf32>
    %cst_7 = arith.constant 0.000000e+00 : f32
    %22 = vector.broadcast %cst_7 : f32 to vector<8x8x32xf32>
    %23 = arith.subf %22, %21 : vector<8x8x32xf32>
    %24 = math.exp %23 : vector<8x8x32xf32>
    %c0_8 = arith.constant 0 : index
    %c0_9 = arith.constant 0 : index
    %c0_10 = arith.constant 0 : index
    %25 = vector.load %arg8[%c0_8, %c0_9, %c0_10] : memref<8x8x32xf32, #tpu.memory_space<vmem>>, vector<8x8x32xf32>
    tpu.vector_store %arg8[%c0_8, %c0_9, %c0_10], %24 {strides = array<i32>} : memref<8x8x32xf32, #tpu.memory_space<vmem>>, vector<8x8x32xf32>,
    %cst_11 = arith.constant 1.000000e+00 : f32
    %26 = vector.broadcast %cst_11 : f32 to vector<8x32xf32>
    %c0_12 = arith.constant 0 : index
    %c0_13 = arith.constant 0 : index
    %c0_14 = arith.constant 0 : index
    %27 = vector.load %arg8[%c0_12, %c0_13, %c0_14] : memref<8x8x32xf32, #tpu.memory_space<vmem>>, vector<1x8x32xf32>
    %28 = vector.shape_cast %27 : vector<1x8x32xf32> to vector<8x32xf32>
    %29 = vector.shape_cast %26 : vector<8x32xf32> to vector<1x8x32xf32>
    tpu.vector_store %arg8[%c0_12, %c0_13, %c0_14], %29 {strides = array<i32>} : memref<8x8x32xf32, #tpu.memory_space<vmem>>, vector<1x8x32xf32>,
    %30 = vector.extract_strided_slice %3 {offsets = [1, 0, 0], sizes = [7, 8, 1], strides = [1, 1, 1]} : vector<8x8x1xf32> to vector<7x8x1xf32>
    %31 = vector.shape_cast %9 : vector<1x16xf32> to vector<1x1x16xf32>
    %32 = vector.broadcast %30 : vector<7x8x1xf32> to vector<7x8x16xf32>
    %33 = vector.broadcast %31 : vector<1x1x16xf32> to vector<7x8x16xf32>
    %34 = arith.mulf %32, %33 : vector<7x8x16xf32>
    %35 = vector.shape_cast %10 : vector<1x16xf32> to vector<1x1x16xf32>
    %36 = vector.broadcast %35 : vector<1x1x16xf32> to vector<7x8x16xf32>
    %37 = arith.addf %34, %36 : vector<7x8x16xf32>
    %cst_15 = arith.constant 0.000000e+00 : f32
    %38 = vector.broadcast %cst_15 : f32 to vector<7x8x16xf32>
    %39 = arith.maximumf %37, %38 : vector<7x8x16xf32>
    %cst_16 = arith.constant 0.000000e+00 : f32
    %40 = vector.broadcast %cst_16 : f32 to vector<7x8x16xf32>
    %41 = arith.subf %40, %39 : vector<7x8x16xf32>
    %42 = math.exp %41 : vector<7x8x16xf32>
    %43 = vector.extract_strided_slice %1 {offsets = [0, 0, 0], sizes = [1, 8, 16], strides = [1, 1, 1]} : vector<8x8x16xf32> to vector<1x8x16xf32>
    %44 = vector.extract_strided_slice %1 {offsets = [0, 0, 0], sizes = [7, 8, 16], strides = [1, 1, 1]} : vector<8x8x16xf32> to vector<7x8x16xf32>
    %45 = arith.mulf %44, %42 : vector<7x8x16xf32>
    %cst_17 = arith.constant 1.000000e+00 : f32
    %46 = vector.broadcast %cst_17 : f32 to vector<7x8x16xf32>
    %47 = arith.subf %46, %42 : vector<7x8x16xf32>
    %48 = vector.broadcast %43 : vector<1x8x16xf32> to vector<7x8x16xf32>
    %49 = arith.mulf %47, %48 : vector<7x8x16xf32>
    %50 = arith.addf %45, %49 : vector<7x8x16xf32>
    %51 = vector.extract_strided_slice %2 {offsets = [1, 0, 0], sizes = [7, 8, 16], strides = [1, 1, 1]} : vector<8x8x16xf32> to vector<7x8x16xf32>
    %cst_18 = arith.constant 1.000000e+00 : f32
    %52 = vector.broadcast %cst_18 : f32 to vector<7x8x16xf32>
    %53 = arith.subf %52, %51 : vector<7x8x16xf32>
    %54 = arith.mulf %50, %53 : vector<7x8x16xf32>
    %55 = vector.extract_strided_slice %2 {offsets = [1, 0, 0], sizes = [7, 8, 16], strides = [1, 1, 1]} : vector<8x8x16xf32> to vector<7x8x16xf32>
    %56 = vector.extract_strided_slice %1 {offsets = [1, 0, 0], sizes = [7, 8, 16], strides = [1, 1, 1]} : vector<8x8x16xf32> to vector<7x8x16xf32>
    %57 = arith.mulf %55, %56 : vector<7x8x16xf32>
    %58 = arith.addf %54, %57 : vector<7x8x16xf32>
    %59 = vector.extract_strided_slice %1 {offsets = [0, 0, 0], sizes = [1, 8, 16], strides = [1, 1, 1]} : vector<8x8x16xf32> to vector<1x8x16xf32>
    %60 = tpu.concatenate %59, %58 in 0 : vector<1x8x16xf32>, vector<7x8x16xf32> -> vector<8x8x16xf32>
    %c0_19 = arith.constant 0 : index
    %c0_20 = arith.constant 0 : index
    %61 = vector.load %arg4[%c0_19, %c0_20] : memref<208x128xf32, #tpu.memory_space<vmem>>, vector<16x128xf32>
    %62 = vector.shape_cast %60 : vector<8x8x16xf32> to vector<64x16xf32>
    %cst_21 = arith.constant dense<0.000000e+00> : vector<64x128xf32>
    %63 = tpu.matmul %62, %61, %cst_21 {dimension_numbers = #tpu.dot_dimension_numbers<[1], [0], [0], [1], [0, 0, 1, 1], [], []>} : vector<64x16xf32>, vector<16x128xf32>, vector<64x128xf32> -> vector<64x128xf32>
    %64 = vector.broadcast %5 : vector<1x128xf32> to vector<64x128xf32>
    %65 = arith.addf %63, %64 : vector<64x128xf32>
    %66 = vector.shape_cast %65 : vector<64x128xf32> to vector<8x8x128xf32>
    %c0_22 = arith.constant 0 : index
    %c0_23 = arith.constant 0 : index
    %c0_24 = arith.constant 0 : index
    %67 = vector.load %arg7[%c0_22, %c0_23, %c0_24] : memref<8x8x128xf32, #tpu.memory_space<vmem>>, vector<8x8x128xf32>
    tpu.vector_store %arg7[%c0_22, %c0_23, %c0_24], %66 {strides = array<i32>} : memref<8x8x128xf32, #tpu.memory_space<vmem>>, vector<8x8x128xf32>,
    %c16 = arith.constant 16 : index
    %c0_25 = arith.constant 0 : index
    %68 = vector.load %arg4[%c16, %c0_25] : memref<208x128xf32, #tpu.memory_space<vmem>>, vector<32x128xf32>
    %c48 = arith.constant 48 : index
    %c0_26 = arith.constant 0 : index
    %69 = vector.load %arg4[%c48, %c0_26] : memref<208x128xf32, #tpu.memory_space<vmem>>, vector<32x128xf32>
    %c80 = arith.constant 80 : index
    %c0_27 = arith.constant 0 : index
    %70 = vector.load %arg4[%c80, %c0_27] : memref<208x128xf32, #tpu.memory_space<vmem>>, vector<32x128xf32>
    %c112 = arith.constant 112 : index
    %c0_28 = arith.constant 0 : index
    %71 = vector.load %arg4[%c112, %c0_28] : memref<208x128xf32, #tpu.memory_space<vmem>>, vector<32x128xf32>
    %c144 = arith.constant 144 : index
    %c0_29 = arith.constant 0 : index
    %72 = vector.load %arg4[%c144, %c0_29] : memref<208x128xf32, #tpu.memory_space<vmem>>, vector<32x128xf32>
    %c0_30 = arith.constant 0 : index
    %c0_31 = arith.constant 0 : index
    %c0_32 = arith.constant 0 : index
    %73 = vector.load %arg3[%c0_30, %c0_31, %c0_32] : memref<3x8x32xf32, #tpu.memory_space<vmem>>, vector<1x8x32xf32>
    %74 = vector.shape_cast %73 : vector<1x8x32xf32> to vector<8x32xf32>
    %c1 = arith.constant 1 : index
    %c0_33 = arith.constant 0 : index
    %c0_34 = arith.constant 0 : index
    %75 = vector.load %arg3[%c1, %c0_33, %c0_34] : memref<3x8x32xf32, #tpu.memory_space<vmem>>, vector<1x8x32xf32>
    %76 = vector.shape_cast %75 : vector<1x8x32xf32> to vector<8x32xf32>
    %c2 = arith.constant 2 : index
    %c0_35 = arith.constant 0 : index
    %c0_36 = arith.constant 0 : index
    %77 = vector.load %arg3[%c2, %c0_35, %c0_36] : memref<3x8x32xf32, #tpu.memory_space<vmem>>, vector<1x8x32xf32>
    %78 = vector.shape_cast %77 : vector<1x8x32xf32> to vector<8x32xf32>
    %c0_i32 = arith.constant 0 : i32
    %79 = arith.index_cast %c0_i32 : i32 to index
    %c0_37 = arith.constant 0 : index
    %c0_38 = arith.constant 0 : index
    %80 = vector.load %arg8[%79, %c0_37, %c0_38] : memref<8x8x32xf32, #tpu.memory_space<vmem>>, vector<1x8x32xf32>
    %81 = vector.shape_cast %80 : vector<1x8x32xf32> to vector<8x32xf32>
    %82 = arith.mulf %74, %81 : vector<8x32xf32>
    %83 = arith.mulf %76, %81 : vector<8x32xf32>
    %84 = arith.mulf %78, %81 : vector<8x32xf32>
    %cst_39 = arith.constant dense<0.000000e+00> : vector<8x128xf32>
    %85 = tpu.matmul %83, %70, %cst_39 {dimension_numbers = #tpu.dot_dimension_numbers<[1], [0], [0], [1], [0, 0, 1, 1], [], []>} : vector<8x32xf32>, vector<32x128xf32>, vector<8x128xf32> -> vector<8x128xf32>
    %cst_40 = arith.constant dense<0.000000e+00> : vector<8x128xf32>
    %86 = tpu.matmul %84, %72, %cst_40 {dimension_numbers = #tpu.dot_dimension_numbers<[1], [0], [0], [1], [0, 0, 1, 1], [], []>} : vector<8x32xf32>, vector<32x128xf32>, vector<8x128xf32> -> vector<8x128xf32>
    %87 = arith.index_cast %c0_i32 : i32 to index
    %c0_41 = arith.constant 0 : index
    %c0_42 = arith.constant 0 : index
    %88 = vector.load %arg7[%87, %c0_41, %c0_42] : memref<8x8x128xf32, #tpu.memory_space<vmem>>, vector<1x8x128xf32>
    %89 = vector.shape_cast %88 : vector<1x8x128xf32> to vector<8x128xf32>
    %cst_43 = arith.constant dense<0.000000e+00> : vector<8x128xf32>
    %90 = tpu.matmul %82, %68, %cst_43 {dimension_numbers = #tpu.dot_dimension_numbers<[1], [0], [0], [1], [0, 0, 1, 1], [], []>} : vector<8x32xf32>, vector<32x128xf32>, vector<8x128xf32> -> vector<8x128xf32>
    %91 = arith.addf %89, %90 : vector<8x128xf32>
    %92 = vector.extract_strided_slice %91 {offsets = [0, 0], sizes = [8, 64], strides = [1, 1]} : vector<8x128xf32> to vector<8x64xf32>
    %93 = arith.negf %92 : vector<8x64xf32>
    %94 = math.exp %93 : vector<8x64xf32>
    %cst_44 = arith.constant 1.000000e+00 : f32
    %95 = vector.broadcast %cst_44 : f32 to vector<8x64xf32>
    %96 = arith.addf %95, %94 : vector<8x64xf32>
    %97 = arith.divf %95, %96 : vector<8x64xf32>
    %98 = vector.extract_strided_slice %97 {offsets = [0, 0], sizes = [8, 32], strides = [1, 1]} : vector<8x64xf32> to vector<8x32xf32>
    %99 = vector.extract_strided_slice %97 {offsets = [0, 32], sizes = [8, 32], strides = [1, 1]} : vector<8x64xf32> to vector<8x32xf32>
    %100 = vector.extract_strided_slice %91 {offsets = [0, 64], sizes = [8, 32], strides = [1, 1]} : vector<8x128xf32> to vector<8x32xf32>
    %101 = vector.extract_strided_slice %91 {offsets = [0, 96], sizes = [8, 32], strides = [1, 1]} : vector<8x128xf32> to vector<8x32xf32>
    %102 = arith.mulf %98, %101 : vector<8x32xf32>
    %103 = arith.addf %100, %102 : vector<8x32xf32>
    %104 = math.tanh %103 : vector<8x32xf32>
    %cst_45 = arith.constant 1.000000e+00 : f32
    %105 = vector.broadcast %cst_45 : f32 to vector<8x32xf32>
    %106 = arith.subf %105, %99 : vector<8x32xf32>
    %107 = arith.mulf %106, %104 : vector<8x32xf32>
    %108 = arith.mulf %99, %82 : vector<8x32xf32>
    %109 = arith.addf %107, %108 : vector<8x32xf32>
    %cst_46 = arith.constant dense<0.000000e+00> : vector<8x128xf32>
    %110 = tpu.matmul %109, %69, %cst_46 {dimension_numbers = #tpu.dot_dimension_numbers<[1], [0], [0], [1], [0, 0, 1, 1], [], []>} : vector<8x32xf32>, vector<32x128xf32>, vector<8x128xf32> -> vector<8x128xf32>
    %111 = arith.addf %110, %85 : vector<8x128xf32>
    %112 = vector.broadcast %6 : vector<1x128xf32> to vector<8x128xf32>
    %113 = arith.addf %111, %112 : vector<8x128xf32>
    %114 = vector.extract_strided_slice %113 {offsets = [0, 0], sizes = [8, 64], strides = [1, 1]} : vector<8x128xf32> to vector<8x64xf32>
    %115 = arith.negf %114 : vector<8x64xf32>
    %116 = math.exp %115 : vector<8x64xf32>
    %cst_47 = arith.constant 1.000000e+00 : f32
    %117 = vector.broadcast %cst_47 : f32 to vector<8x64xf32>
    %118 = arith.addf %117, %116 : vector<8x64xf32>
    %119 = arith.divf %117, %118 : vector<8x64xf32>
    %120 = vector.extract_strided_slice %119 {offsets = [0, 0], sizes = [8, 32], strides = [1, 1]} : vector<8x64xf32> to vector<8x32xf32>
    %121 = vector.extract_strided_slice %119 {offsets = [0, 32], sizes = [8, 32], strides = [1, 1]} : vector<8x64xf32> to vector<8x32xf32>
    %122 = vector.extract_strided_slice %113 {offsets = [0, 64], sizes = [8, 32], strides = [1, 1]} : vector<8x128xf32> to vector<8x32xf32>
    %123 = vector.extract_strided_slice %113 {offsets = [0, 96], sizes = [8, 32], strides = [1, 1]} : vector<8x128xf32> to vector<8x32xf32>
    %124 = arith.mulf %120, %123 : vector<8x32xf32>
    %125 = arith.addf %122, %124 : vector<8x32xf32>
    %126 = math.tanh %125 : vector<8x32xf32>
    %cst_48 = arith.constant 1.000000e+00 : f32
    %127 = vector.broadcast %cst_48 : f32 to vector<8x32xf32>
    %128 = arith.subf %127, %121 : vector<8x32xf32>
    %129 = arith.mulf %128, %126 : vector<8x32xf32>
    %130 = arith.mulf %121, %83 : vector<8x32xf32>
    %131 = arith.addf %129, %130 : vector<8x32xf32>
    %cst_49 = arith.constant dense<0.000000e+00> : vector<8x128xf32>
    %132 = tpu.matmul %131, %71, %cst_49 {dimension_numbers = #tpu.dot_dimension_numbers<[1], [0], [0], [1], [0, 0, 1, 1], [], []>} : vector<8x32xf32>, vector<32x128xf32>, vector<8x128xf32> -> vector<8x128xf32>
    %133 = arith.addf %132, %86 : vector<8x128xf32>
    %134 = vector.broadcast %7 : vector<1x128xf32> to vector<8x128xf32>
    %135 = arith.addf %133, %134 : vector<8x128xf32>
    %136 = vector.extract_strided_slice %135 {offsets = [0, 0], sizes = [8, 64], strides = [1, 1]} : vector<8x128xf32> to vector<8x64xf32>
    %137 = arith.negf %136 : vector<8x64xf32>
    %138 = math.exp %137 : vector<8x64xf32>
    %cst_50 = arith.constant 1.000000e+00 : f32
    %139 = vector.broadcast %cst_50 : f32 to vector<8x64xf32>
    %140 = arith.addf %139, %138 : vector<8x64xf32>
    %141 = arith.divf %139, %140 : vector<8x64xf32>
    %142 = vector.extract_strided_slice %141 {offsets = [0, 0], sizes = [8, 32], strides = [1, 1]} : vector<8x64xf32> to vector<8x32xf32>
    %143 = vector.extract_strided_slice %141 {offsets = [0, 32], sizes = [8, 32], strides = [1, 1]} : vector<8x64xf32> to vector<8x32xf32>
    %144 = vector.extract_strided_slice %135 {offsets = [0, 64], sizes = [8, 32], strides = [1, 1]} : vector<8x128xf32> to vector<8x32xf32>
    %145 = vector.extract_strided_slice %135 {offsets = [0, 96], sizes = [8, 32], strides = [1, 1]} : vector<8x128xf32> to vector<8x32xf32>
    %146 = arith.mulf %142, %145 : vector<8x32xf32>
    %147 = arith.addf %144, %146 : vector<8x32xf32>
    %148 = math.tanh %147 : vector<8x32xf32>
    %cst_51 = arith.constant 1.000000e+00 : f32
    %149 = vector.broadcast %cst_51 : f32 to vector<8x32xf32>
    %150 = arith.subf %149, %143 : vector<8x32xf32>
    %151 = arith.mulf %150, %148 : vector<8x32xf32>
    %152 = arith.mulf %143, %84 : vector<8x32xf32>
    %153 = arith.addf %151, %152 : vector<8x32xf32>
    %154 = arith.index_cast %c0_i32 : i32 to index
    %c0_52 = arith.constant 0 : index
    %c0_53 = arith.constant 0 : index
    %155 = vector.load %arg9[%154, %c0_52, %c0_53] : memref<8x8x32xf32, #tpu.memory_space<vmem>>, vector<1x8x32xf32>
    %156 = vector.shape_cast %155 : vector<1x8x32xf32> to vector<8x32xf32>
    %157 = vector.shape_cast %153 : vector<8x32xf32> to vector<1x8x32xf32>
    tpu.vector_store %arg9[%154, %c0_52, %c0_53], %157 {strides = array<i32>} : memref<8x8x32xf32, #tpu.memory_space<vmem>>, vector<1x8x32xf32>,
    %c1_i32 = arith.constant 1 : i32
    %158 = arith.index_cast %c1_i32 : i32 to index
    %c0_54 = arith.constant 0 : index
    %c0_55 = arith.constant 0 : index
    %159 = vector.load %arg8[%158, %c0_54, %c0_55] : memref<8x8x32xf32, #tpu.memory_space<vmem>>, vector<1x8x32xf32>
    %160 = vector.shape_cast %159 : vector<1x8x32xf32> to vector<8x32xf32>
    %161 = arith.mulf %109, %160 : vector<8x32xf32>
    %162 = arith.mulf %131, %160 : vector<8x32xf32>
    %163 = arith.mulf %153, %160 : vector<8x32xf32>
    %cst_56 = arith.constant dense<0.000000e+00> : vector<8x128xf32>
    %164 = tpu.matmul %162, %70, %cst_56 {dimension_numbers = #tpu.dot_dimension_numbers<[1], [0], [0], [1], [0, 0, 1, 1], [], []>} : vector<8x32xf32>, vector<32x128xf32>, vector<8x128xf32> -> vector<8x128xf32>
    %cst_57 = arith.constant dense<0.000000e+00> : vector<8x128xf32>
    %165 = tpu.matmul %163, %72, %cst_57 {dimension_numbers = #tpu.dot_dimension_numbers<[1], [0], [0], [1], [0, 0, 1, 1], [], []>} : vector<8x32xf32>, vector<32x128xf32>, vector<8x128xf32> -> vector<8x128xf32>
    %166 = arith.index_cast %c1_i32 : i32 to index
    %c0_58 = arith.constant 0 : index
    %c0_59 = arith.constant 0 : index
    %167 = vector.load %arg7[%166, %c0_58, %c0_59] : memref<8x8x128xf32, #tpu.memory_space<vmem>>, vector<1x8x128xf32>
    %168 = vector.shape_cast %167 : vector<1x8x128xf32> to vector<8x128xf32>
    %cst_60 = arith.constant dense<0.000000e+00> : vector<8x128xf32>
    %169 = tpu.matmul %161, %68, %cst_60 {dimension_numbers = #tpu.dot_dimension_numbers<[1], [0], [0], [1], [0, 0, 1, 1], [], []>} : vector<8x32xf32>, vector<32x128xf32>, vector<8x128xf32> -> vector<8x128xf32>
    %170 = arith.addf %168, %169 : vector<8x128xf32>
    %171 = vector.extract_strided_slice %170 {offsets = [0, 0], sizes = [8, 64], strides = [1, 1]} : vector<8x128xf32> to vector<8x64xf32>
    %172 = arith.negf %171 : vector<8x64xf32>
    %173 = math.exp %172 : vector<8x64xf32>
    %cst_61 = arith.constant 1.000000e+00 : f32
    %174 = vector.broadcast %cst_61 : f32 to vector<8x64xf32>
    %175 = arith.addf %174, %173 : vector<8x64xf32>
    %176 = arith.divf %174, %175 : vector<8x64xf32>
    %177 = vector.extract_strided_slice %176 {offsets = [0, 0], sizes = [8, 32], strides = [1, 1]} : vector<8x64xf32> to vector<8x32xf32>
    %178 = vector.extract_strided_slice %176 {offsets = [0, 32], sizes = [8, 32], strides = [1, 1]} : vector<8x64xf32> to vector<8x32xf32>
    %179 = vector.extract_strided_slice %170 {offsets = [0, 64], sizes = [8, 32], strides = [1, 1]} : vector<8x128xf32> to vector<8x32xf32>
    %180 = vector.extract_strided_slice %170 {offsets = [0, 96], sizes = [8, 32], strides = [1, 1]} : vector<8x128xf32> to vector<8x32xf32>
    %181 = arith.mulf %177, %180 : vector<8x32xf32>
    %182 = arith.addf %179, %181 : vector<8x32xf32>
    %183 = math.tanh %182 : vector<8x32xf32>
    %cst_62 = arith.constant 1.000000e+00 : f32
    %184 = vector.broadcast %cst_62 : f32 to vector<8x32xf32>
    %185 = arith.subf %184, %178 : vector<8x32xf32>
    %186 = arith.mulf %185, %183 : vector<8x32xf32>
    %187 = arith.mulf %178, %161 : vector<8x32xf32>
    %188 = arith.addf %186, %187 : vector<8x32xf32>
    %cst_63 = arith.constant dense<0.000000e+00> : vector<8x128xf32>
    %189 = tpu.matmul %188, %69, %cst_63 {dimension_numbers = #tpu.dot_dimension_numbers<[1], [0], [0], [1], [0, 0, 1, 1], [], []>} : vector<8x32xf32>, vector<32x128xf32>, vector<8x128xf32> -> vector<8x128xf32>
    %190 = arith.addf %189, %164 : vector<8x128xf32>
    %191 = vector.broadcast %6 : vector<1x128xf32> to vector<8x128xf32>
    %192 = arith.addf %190, %191 : vector<8x128xf32>
    %193 = vector.extract_strided_slice %192 {offsets = [0, 0], sizes = [8, 64], strides = [1, 1]} : vector<8x128xf32> to vector<8x64xf32>
    %194 = arith.negf %193 : vector<8x64xf32>
    %195 = math.exp %194 : vector<8x64xf32>
    %cst_64 = arith.constant 1.000000e+00 : f32
    %196 = vector.broadcast %cst_64 : f32 to vector<8x64xf32>
    %197 = arith.addf %196, %195 : vector<8x64xf32>
    %198 = arith.divf %196, %197 : vector<8x64xf32>
    %199 = vector.extract_strided_slice %198 {offsets = [0, 0], sizes = [8, 32], strides = [1, 1]} : vector<8x64xf32> to vector<8x32xf32>
    %200 = vector.extract_strided_slice %198 {offsets = [0, 32], sizes = [8, 32], strides = [1, 1]} : vector<8x64xf32> to vector<8x32xf32>
    %201 = vector.extract_strided_slice %192 {offsets = [0, 64], sizes = [8, 32], strides = [1, 1]} : vector<8x128xf32> to vector<8x32xf32>
    %202 = vector.extract_strided_slice %192 {offsets = [0, 96], sizes = [8, 32], strides = [1, 1]} : vector<8x128xf32> to vector<8x32xf32>
    %203 = arith.mulf %199, %202 : vector<8x32xf32>
    %204 = arith.addf %201, %203 : vector<8x32xf32>
    %205 = math.tanh %204 : vector<8x32xf32>
    %cst_65 = arith.constant 1.000000e+00 : f32
    %206 = vector.broadcast %cst_65 : f32 to vector<8x32xf32>
    %207 = arith.subf %206, %200 : vector<8x32xf32>
    %208 = arith.mulf %207, %205 : vector<8x32xf32>
    %209 = arith.mulf %200, %162 : vector<8x32xf32>
    %210 = arith.addf %208, %209 : vector<8x32xf32>
    %cst_66 = arith.constant dense<0.000000e+00> : vector<8x128xf32>
    %211 = tpu.matmul %210, %71, %cst_66 {dimension_numbers = #tpu.dot_dimension_numbers<[1], [0], [0], [1], [0, 0, 1, 1], [], []>} : vector<8x32xf32>, vector<32x128xf32>, vector<8x128xf32> -> vector<8x128xf32>
    %212 = arith.addf %211, %165 : vector<8x128xf32>
    %213 = vector.broadcast %7 : vector<1x128xf32> to vector<8x128xf32>
    %214 = arith.addf %212, %213 : vector<8x128xf32>
    %215 = vector.extract_strided_slice %214 {offsets = [0, 0], sizes = [8, 64], strides = [1, 1]} : vector<8x128xf32> to vector<8x64xf32>
    %216 = arith.negf %215 : vector<8x64xf32>
    %217 = math.exp %216 : vector<8x64xf32>
    %cst_67 = arith.constant 1.000000e+00 : f32
    %218 = vector.broadcast %cst_67 : f32 to vector<8x64xf32>
    %219 = arith.addf %218, %217 : vector<8x64xf32>
    %220 = arith.divf %218, %219 : vector<8x64xf32>
    %221 = vector.extract_strided_slice %220 {offsets = [0, 0], sizes = [8, 32], strides = [1, 1]} : vector<8x64xf32> to vector<8x32xf32>
    %222 = vector.extract_strided_slice %220 {offsets = [0, 32], sizes = [8, 32], strides = [1, 1]} : vector<8x64xf32> to vector<8x32xf32>
    %223 = vector.extract_strided_slice %214 {offsets = [0, 64], sizes = [8, 32], strides = [1, 1]} : vector<8x128xf32> to vector<8x32xf32>
    %224 = vector.extract_strided_slice %214 {offsets = [0, 96], sizes = [8, 32], strides = [1, 1]} : vector<8x128xf32> to vector<8x32xf32>
    %225 = arith.mulf %221, %224 : vector<8x32xf32>
    %226 = arith.addf %223, %225 : vector<8x32xf32>
    %227 = math.tanh %226 : vector<8x32xf32>
    %cst_68 = arith.constant 1.000000e+00 : f32
    %228 = vector.broadcast %cst_68 : f32 to vector<8x32xf32>
    %229 = arith.subf %228, %222 : vector<8x32xf32>
    %230 = arith.mulf %229, %227 : vector<8x32xf32>
    %231 = arith.mulf %222, %163 : vector<8x32xf32>
    %232 = arith.addf %230, %231 : vector<8x32xf32>
    %233 = arith.index_cast %c1_i32 : i32 to index
    %c0_69 = arith.constant 0 : index
    %c0_70 = arith.constant 0 : index
    %234 = vector.load %arg9[%233, %c0_69, %c0_70] : memref<8x8x32xf32, #tpu.memory_space<vmem>>, vector<1x8x32xf32>
    %235 = vector.shape_cast %234 : vector<1x8x32xf32> to vector<8x32xf32>
    %236 = vector.shape_cast %232 : vector<8x32xf32> to vector<1x8x32xf32>
    tpu.vector_store %arg9[%233, %c0_69, %c0_70], %236 {strides = array<i32>} : memref<8x8x32xf32, #tpu.memory_space<vmem>>, vector<1x8x32xf32>,
    %c2_i32 = arith.constant 2 : i32
    %237 = arith.index_cast %c2_i32 : i32 to index
    %c0_71 = arith.constant 0 : index
    %c0_72 = arith.constant 0 : index
    %238 = vector.load %arg8[%237, %c0_71, %c0_72] : memref<8x8x32xf32, #tpu.memory_space<vmem>>, vector<1x8x32xf32>
    %239 = vector.shape_cast %238 : vector<1x8x32xf32> to vector<8x32xf32>
    %240 = arith.mulf %188, %239 : vector<8x32xf32>
    %241 = arith.mulf %210, %239 : vector<8x32xf32>
    %242 = arith.mulf %232, %239 : vector<8x32xf32>
    %cst_73 = arith.constant dense<0.000000e+00> : vector<8x128xf32>
    %243 = tpu.matmul %241, %70, %cst_73 {dimension_numbers = #tpu.dot_dimension_numbers<[1], [0], [0], [1], [0, 0, 1, 1], [], []>} : vector<8x32xf32>, vector<32x128xf32>, vector<8x128xf32> -> vector<8x128xf32>
    %cst_74 = arith.constant dense<0.000000e+00> : vector<8x128xf32>
    %244 = tpu.matmul %242, %72, %cst_74 {dimension_numbers = #tpu.dot_dimension_numbers<[1], [0], [0], [1], [0, 0, 1, 1], [], []>} : vector<8x32xf32>, vector<32x128xf32>, vector<8x128xf32> -> vector<8x128xf32>
    %245 = arith.index_cast %c2_i32 : i32 to index
    %c0_75 = arith.constant 0 : index
    %c0_76 = arith.constant 0 : index
    %246 = vector.load %arg7[%245, %c0_75, %c0_76] : memref<8x8x128xf32, #tpu.memory_space<vmem>>, vector<1x8x128xf32>
    %247 = vector.shape_cast %246 : vector<1x8x128xf32> to vector<8x128xf32>
    %cst_77 = arith.constant dense<0.000000e+00> : vector<8x128xf32>
    %248 = tpu.matmul %240, %68, %cst_77 {dimension_numbers = #tpu.dot_dimension_numbers<[1], [0], [0], [1], [0, 0, 1, 1], [], []>} : vector<8x32xf32>, vector<32x128xf32>, vector<8x128xf32> -> vector<8x128xf32>
    %249 = arith.addf %247, %248 : vector<8x128xf32>
    %250 = vector.extract_strided_slice %249 {offsets = [0, 0], sizes = [8, 64], strides = [1, 1]} : vector<8x128xf32> to vector<8x64xf32>
    %251 = arith.negf %250 : vector<8x64xf32>
    %252 = math.exp %251 : vector<8x64xf32>
    %cst_78 = arith.constant 1.000000e+00 : f32
    %253 = vector.broadcast %cst_78 : f32 to vector<8x64xf32>
    %254 = arith.addf %253, %252 : vector<8x64xf32>
    %255 = arith.divf %253, %254 : vector<8x64xf32>
    %256 = vector.extract_strided_slice %255 {offsets = [0, 0], sizes = [8, 32], strides = [1, 1]} : vector<8x64xf32> to vector<8x32xf32>
    %257 = vector.extract_strided_slice %255 {offsets = [0, 32], sizes = [8, 32], strides = [1, 1]} : vector<8x64xf32> to vector<8x32xf32>
    %258 = vector.extract_strided_slice %249 {offsets = [0, 64], sizes = [8, 32], strides = [1, 1]} : vector<8x128xf32> to vector<8x32xf32>
    %259 = vector.extract_strided_slice %249 {offsets = [0, 96], sizes = [8, 32], strides = [1, 1]} : vector<8x128xf32> to vector<8x32xf32>
    %260 = arith.mulf %256, %259 : vector<8x32xf32>
    %261 = arith.addf %258, %260 : vector<8x32xf32>
    %262 = math.tanh %261 : vector<8x32xf32>
    %cst_79 = arith.constant 1.000000e+00 : f32
    %263 = vector.broadcast %cst_79 : f32 to vector<8x32xf32>
    %264 = arith.subf %263, %257 : vector<8x32xf32>
    %265 = arith.mulf %264, %262 : vector<8x32xf32>
    %266 = arith.mulf %257, %240 : vector<8x32xf32>
    %267 = arith.addf %265, %266 : vector<8x32xf32>
    %cst_80 = arith.constant dense<0.000000e+00> : vector<8x128xf32>
    %268 = tpu.matmul %267, %69, %cst_80 {dimension_numbers = #tpu.dot_dimension_numbers<[1], [0], [0], [1], [0, 0, 1, 1], [], []>} : vector<8x32xf32>, vector<32x128xf32>, vector<8x128xf32> -> vector<8x128xf32>
    %269 = arith.addf %268, %243 : vector<8x128xf32>
    %270 = vector.broadcast %6 : vector<1x128xf32> to vector<8x128xf32>
    %271 = arith.addf %269, %270 : vector<8x128xf32>
    %272 = vector.extract_strided_slice %271 {offsets = [0, 0], sizes = [8, 64], strides = [1, 1]} : vector<8x128xf32> to vector<8x64xf32>
    %273 = arith.negf %272 : vector<8x64xf32>
    %274 = math.exp %273 : vector<8x64xf32>
    %cst_81 = arith.constant 1.000000e+00 : f32
    %275 = vector.broadcast %cst_81 : f32 to vector<8x64xf32>
    %276 = arith.addf %275, %274 : vector<8x64xf32>
    %277 = arith.divf %275, %276 : vector<8x64xf32>
    %278 = vector.extract_strided_slice %277 {offsets = [0, 0], sizes = [8, 32], strides = [1, 1]} : vector<8x64xf32> to vector<8x32xf32>
    %279 = vector.extract_strided_slice %277 {offsets = [0, 32], sizes = [8, 32], strides = [1, 1]} : vector<8x64xf32> to vector<8x32xf32>
    %280 = vector.extract_strided_slice %271 {offsets = [0, 64], sizes = [8, 32], strides = [1, 1]} : vector<8x128xf32> to vector<8x32xf32>
    %281 = vector.extract_strided_slice %271 {offsets = [0, 96], sizes = [8, 32], strides = [1, 1]} : vector<8x128xf32> to vector<8x32xf32>
    %282 = arith.mulf %278, %281 : vector<8x32xf32>
    %283 = arith.addf %280, %282 : vector<8x32xf32>
    %284 = math.tanh %283 : vector<8x32xf32>
    %cst_82 = arith.constant 1.000000e+00 : f32
    %285 = vector.broadcast %cst_82 : f32 to vector<8x32xf32>
    %286 = arith.subf %285, %279 : vector<8x32xf32>
    %287 = arith.mulf %286, %284 : vector<8x32xf32>
    %288 = arith.mulf %279, %241 : vector<8x32xf32>
    %289 = arith.addf %287, %288 : vector<8x32xf32>
    %cst_83 = arith.constant dense<0.000000e+00> : vector<8x128xf32>
    %290 = tpu.matmul %289, %71, %cst_83 {dimension_numbers = #tpu.dot_dimension_numbers<[1], [0], [0], [1], [0, 0, 1, 1], [], []>} : vector<8x32xf32>, vector<32x128xf32>, vector<8x128xf32> -> vector<8x128xf32>
    %291 = arith.addf %290, %244 : vector<8x128xf32>
    %292 = vector.broadcast %7 : vector<1x128xf32> to vector<8x128xf32>
    %293 = arith.addf %291, %292 : vector<8x128xf32>
    %294 = vector.extract_strided_slice %293 {offsets = [0, 0], sizes = [8, 64], strides = [1, 1]} : vector<8x128xf32> to vector<8x64xf32>
    %295 = arith.negf %294 : vector<8x64xf32>
    %296 = math.exp %295 : vector<8x64xf32>
    %cst_84 = arith.constant 1.000000e+00 : f32
    %297 = vector.broadcast %cst_84 : f32 to vector<8x64xf32>
    %298 = arith.addf %297, %296 : vector<8x64xf32>
    %299 = arith.divf %297, %298 : vector<8x64xf32>
    %300 = vector.extract_strided_slice %299 {offsets = [0, 0], sizes = [8, 32], strides = [1, 1]} : vector<8x64xf32> to vector<8x32xf32>
    %301 = vector.extract_strided_slice %299 {offsets = [0, 32], sizes = [8, 32], strides = [1, 1]} : vector<8x64xf32> to vector<8x32xf32>
    %302 = vector.extract_strided_slice %293 {offsets = [0, 64], sizes = [8, 32], strides = [1, 1]} : vector<8x128xf32> to vector<8x32xf32>
    %303 = vector.extract_strided_slice %293 {offsets = [0, 96], sizes = [8, 32], strides = [1, 1]} : vector<8x128xf32> to vector<8x32xf32>
    %304 = arith.mulf %300, %303 : vector<8x32xf32>
    %305 = arith.addf %302, %304 : vector<8x32xf32>
    %306 = math.tanh %305 : vector<8x32xf32>
    %cst_85 = arith.constant 1.000000e+00 : f32
    %307 = vector.broadcast %cst_85 : f32 to vector<8x32xf32>
    %308 = arith.subf %307, %301 : vector<8x32xf32>
    %309 = arith.mulf %308, %306 : vector<8x32xf32>
    %310 = arith.mulf %301, %242 : vector<8x32xf32>
    %311 = arith.addf %309, %310 : vector<8x32xf32>
    %312 = arith.index_cast %c2_i32 : i32 to index
    %c0_86 = arith.constant 0 : index
    %c0_87 = arith.constant 0 : index
    %313 = vector.load %arg9[%312, %c0_86, %c0_87] : memref<8x8x32xf32, #tpu.memory_space<vmem>>, vector<1x8x32xf32>
    %314 = vector.shape_cast %313 : vector<1x8x32xf32> to vector<8x32xf32>
    %315 = vector.shape_cast %311 : vector<8x32xf32> to vector<1x8x32xf32>
    tpu.vector_store %arg9[%312, %c0_86, %c0_87], %315 {strides = array<i32>} : memref<8x8x32xf32, #tpu.memory_space<vmem>>, vector<1x8x32xf32>,
    %c3_i32 = arith.constant 3 : i32
    %316 = arith.index_cast %c3_i32 : i32 to index
    %c0_88 = arith.constant 0 : index
    %c0_89 = arith.constant 0 : index
    %317 = vector.load %arg8[%316, %c0_88, %c0_89] : memref<8x8x32xf32, #tpu.memory_space<vmem>>, vector<1x8x32xf32>
    %318 = vector.shape_cast %317 : vector<1x8x32xf32> to vector<8x32xf32>
    %319 = arith.mulf %267, %318 : vector<8x32xf32>
    %320 = arith.mulf %289, %318 : vector<8x32xf32>
    %321 = arith.mulf %311, %318 : vector<8x32xf32>
    %cst_90 = arith.constant dense<0.000000e+00> : vector<8x128xf32>
    %322 = tpu.matmul %320, %70, %cst_90 {dimension_numbers = #tpu.dot_dimension_numbers<[1], [0], [0], [1], [0, 0, 1, 1], [], []>} : vector<8x32xf32>, vector<32x128xf32>, vector<8x128xf32> -> vector<8x128xf32>
    %cst_91 = arith.constant dense<0.000000e+00> : vector<8x128xf32>
    %323 = tpu.matmul %321, %72, %cst_91 {dimension_numbers = #tpu.dot_dimension_numbers<[1], [0], [0], [1], [0, 0, 1, 1], [], []>} : vector<8x32xf32>, vector<32x128xf32>, vector<8x128xf32> -> vector<8x128xf32>
    %324 = arith.index_cast %c3_i32 : i32 to index
    %c0_92 = arith.constant 0 : index
    %c0_93 = arith.constant 0 : index
    %325 = vector.load %arg7[%324, %c0_92, %c0_93] : memref<8x8x128xf32, #tpu.memory_space<vmem>>, vector<1x8x128xf32>
    %326 = vector.shape_cast %325 : vector<1x8x128xf32> to vector<8x128xf32>
    %cst_94 = arith.constant dense<0.000000e+00> : vector<8x128xf32>
    %327 = tpu.matmul %319, %68, %cst_94 {dimension_numbers = #tpu.dot_dimension_numbers<[1], [0], [0], [1], [0, 0, 1, 1], [], []>} : vector<8x32xf32>, vector<32x128xf32>, vector<8x128xf32> -> vector<8x128xf32>
    %328 = arith.addf %326, %327 : vector<8x128xf32>
    %329 = vector.extract_strided_slice %328 {offsets = [0, 0], sizes = [8, 64], strides = [1, 1]} : vector<8x128xf32> to vector<8x64xf32>
    %330 = arith.negf %329 : vector<8x64xf32>
    %331 = math.exp %330 : vector<8x64xf32>
    %cst_95 = arith.constant 1.000000e+00 : f32
    %332 = vector.broadcast %cst_95 : f32 to vector<8x64xf32>
    %333 = arith.addf %332, %331 : vector<8x64xf32>
    %334 = arith.divf %332, %333 : vector<8x64xf32>
    %335 = vector.extract_strided_slice %334 {offsets = [0, 0], sizes = [8, 32], strides = [1, 1]} : vector<8x64xf32> to vector<8x32xf32>
    %336 = vector.extract_strided_slice %334 {offsets = [0, 32], sizes = [8, 32], strides = [1, 1]} : vector<8x64xf32> to vector<8x32xf32>
    %337 = vector.extract_strided_slice %328 {offsets = [0, 64], sizes = [8, 32], strides = [1, 1]} : vector<8x128xf32> to vector<8x32xf32>
    %338 = vector.extract_strided_slice %328 {offsets = [0, 96], sizes = [8, 32], strides = [1, 1]} : vector<8x128xf32> to vector<8x32xf32>
    %339 = arith.mulf %335, %338 : vector<8x32xf32>
    %340 = arith.addf %337, %339 : vector<8x32xf32>
    %341 = math.tanh %340 : vector<8x32xf32>
    %cst_96 = arith.constant 1.000000e+00 : f32
    %342 = vector.broadcast %cst_96 : f32 to vector<8x32xf32>
    %343 = arith.subf %342, %336 : vector<8x32xf32>
    %344 = arith.mulf %343, %341 : vector<8x32xf32>
    %345 = arith.mulf %336, %319 : vector<8x32xf32>
    %346 = arith.addf %344, %345 : vector<8x32xf32>
    %cst_97 = arith.constant dense<0.000000e+00> : vector<8x128xf32>
    %347 = tpu.matmul %346, %69, %cst_97 {dimension_numbers = #tpu.dot_dimension_numbers<[1], [0], [0], [1], [0, 0, 1, 1], [], []>} : vector<8x32xf32>, vector<32x128xf32>, vector<8x128xf32> -> vector<8x128xf32>
    %348 = arith.addf %347, %322 : vector<8x128xf32>
    %349 = vector.broadcast %6 : vector<1x128xf32> to vector<8x128xf32>
    %350 = arith.addf %348, %349 : vector<8x128xf32>
    %351 = vector.extract_strided_slice %350 {offsets = [0, 0], sizes = [8, 64], strides = [1, 1]} : vector<8x128xf32> to vector<8x64xf32>
    %352 = arith.negf %351 : vector<8x64xf32>
    %353 = math.exp %352 : vector<8x64xf32>
    %cst_98 = arith.constant 1.000000e+00 : f32
    %354 = vector.broadcast %cst_98 : f32 to vector<8x64xf32>
    %355 = arith.addf %354, %353 : vector<8x64xf32>
    %356 = arith.divf %354, %355 : vector<8x64xf32>
    %357 = vector.extract_strided_slice %356 {offsets = [0, 0], sizes = [8, 32], strides = [1, 1]} : vector<8x64xf32> to vector<8x32xf32>
    %358 = vector.extract_strided_slice %356 {offsets = [0, 32], sizes = [8, 32], strides = [1, 1]} : vector<8x64xf32> to vector<8x32xf32>
    %359 = vector.extract_strided_slice %350 {offsets = [0, 64], sizes = [8, 32], strides = [1, 1]} : vector<8x128xf32> to vector<8x32xf32>
    %360 = vector.extract_strided_slice %350 {offsets = [0, 96], sizes = [8, 32], strides = [1, 1]} : vector<8x128xf32> to vector<8x32xf32>
    %361 = arith.mulf %357, %360 : vector<8x32xf32>
    %362 = arith.addf %359, %361 : vector<8x32xf32>
    %363 = math.tanh %362 : vector<8x32xf32>
    %cst_99 = arith.constant 1.000000e+00 : f32
    %364 = vector.broadcast %cst_99 : f32 to vector<8x32xf32>
    %365 = arith.subf %364, %358 : vector<8x32xf32>
    %366 = arith.mulf %365, %363 : vector<8x32xf32>
    %367 = arith.mulf %358, %320 : vector<8x32xf32>
    %368 = arith.addf %366, %367 : vector<8x32xf32>
    %cst_100 = arith.constant dense<0.000000e+00> : vector<8x128xf32>
    %369 = tpu.matmul %368, %71, %cst_100 {dimension_numbers = #tpu.dot_dimension_numbers<[1], [0], [0], [1], [0, 0, 1, 1], [], []>} : vector<8x32xf32>, vector<32x128xf32>, vector<8x128xf32> -> vector<8x128xf32>
    %370 = arith.addf %369, %323 : vector<8x128xf32>
    %371 = vector.broadcast %7 : vector<1x128xf32> to vector<8x128xf32>
    %372 = arith.addf %370, %371 : vector<8x128xf32>
    %373 = vector.extract_strided_slice %372 {offsets = [0, 0], sizes = [8, 64], strides = [1, 1]} : vector<8x128xf32> to vector<8x64xf32>
    %374 = arith.negf %373 : vector<8x64xf32>
    %375 = math.exp %374 : vector<8x64xf32>
    %cst_101 = arith.constant 1.000000e+00 : f32
    %376 = vector.broadcast %cst_101 : f32 to vector<8x64xf32>
    %377 = arith.addf %376, %375 : vector<8x64xf32>
    %378 = arith.divf %376, %377 : vector<8x64xf32>
    %379 = vector.extract_strided_slice %378 {offsets = [0, 0], sizes = [8, 32], strides = [1, 1]} : vector<8x64xf32> to vector<8x32xf32>
    %380 = vector.extract_strided_slice %378 {offsets = [0, 32], sizes = [8, 32], strides = [1, 1]} : vector<8x64xf32> to vector<8x32xf32>
    %381 = vector.extract_strided_slice %372 {offsets = [0, 64], sizes = [8, 32], strides = [1, 1]} : vector<8x128xf32> to vector<8x32xf32>
    %382 = vector.extract_strided_slice %372 {offsets = [0, 96], sizes = [8, 32], strides = [1, 1]} : vector<8x128xf32> to vector<8x32xf32>
    %383 = arith.mulf %379, %382 : vector<8x32xf32>
    %384 = arith.addf %381, %383 : vector<8x32xf32>
    %385 = math.tanh %384 : vector<8x32xf32>
    %cst_102 = arith.constant 1.000000e+00 : f32
    %386 = vector.broadcast %cst_102 : f32 to vector<8x32xf32>
    %387 = arith.subf %386, %380 : vector<8x32xf32>
    %388 = arith.mulf %387, %385 : vector<8x32xf32>
    %389 = arith.mulf %380, %321 : vector<8x32xf32>
    %390 = arith.addf %388, %389 : vector<8x32xf32>
    %391 = arith.index_cast %c3_i32 : i32 to index
    %c0_103 = arith.constant 0 : index
    %c0_104 = arith.constant 0 : index
    %392 = vector.load %arg9[%391, %c0_103, %c0_104] : memref<8x8x32xf32, #tpu.memory_space<vmem>>, vector<1x8x32xf32>
    %393 = vector.shape_cast %392 : vector<1x8x32xf32> to vector<8x32xf32>
    %394 = vector.shape_cast %390 : vector<8x32xf32> to vector<1x8x32xf32>
    tpu.vector_store %arg9[%391, %c0_103, %c0_104], %394 {strides = array<i32>} : memref<8x8x32xf32, #tpu.memory_space<vmem>>, vector<1x8x32xf32>,
    %c4_i32 = arith.constant 4 : i32
    %395 = arith.index_cast %c4_i32 : i32 to index
    %c0_105 = arith.constant 0 : index
    %c0_106 = arith.constant 0 : index
    %396 = vector.load %arg8[%395, %c0_105, %c0_106] : memref<8x8x32xf32, #tpu.memory_space<vmem>>, vector<1x8x32xf32>
    %397 = vector.shape_cast %396 : vector<1x8x32xf32> to vector<8x32xf32>
    %398 = arith.mulf %346, %397 : vector<8x32xf32>
    %399 = arith.mulf %368, %397 : vector<8x32xf32>
    %400 = arith.mulf %390, %397 : vector<8x32xf32>
    %cst_107 = arith.constant dense<0.000000e+00> : vector<8x128xf32>
    %401 = tpu.matmul %399, %70, %cst_107 {dimension_numbers = #tpu.dot_dimension_numbers<[1], [0], [0], [1], [0, 0, 1, 1], [], []>} : vector<8x32xf32>, vector<32x128xf32>, vector<8x128xf32> -> vector<8x128xf32>
    %cst_108 = arith.constant dense<0.000000e+00> : vector<8x128xf32>
    %402 = tpu.matmul %400, %72, %cst_108 {dimension_numbers = #tpu.dot_dimension_numbers<[1], [0], [0], [1], [0, 0, 1, 1], [], []>} : vector<8x32xf32>, vector<32x128xf32>, vector<8x128xf32> -> vector<8x128xf32>
    %403 = arith.index_cast %c4_i32 : i32 to index
    %c0_109 = arith.constant 0 : index
    %c0_110 = arith.constant 0 : index
    %404 = vector.load %arg7[%403, %c0_109, %c0_110] : memref<8x8x128xf32, #tpu.memory_space<vmem>>, vector<1x8x128xf32>
    %405 = vector.shape_cast %404 : vector<1x8x128xf32> to vector<8x128xf32>
    %cst_111 = arith.constant dense<0.000000e+00> : vector<8x128xf32>
    %406 = tpu.matmul %398, %68, %cst_111 {dimension_numbers = #tpu.dot_dimension_numbers<[1], [0], [0], [1], [0, 0, 1, 1], [], []>} : vector<8x32xf32>, vector<32x128xf32>, vector<8x128xf32> -> vector<8x128xf32>
    %407 = arith.addf %405, %406 : vector<8x128xf32>
    %408 = vector.extract_strided_slice %407 {offsets = [0, 0], sizes = [8, 64], strides = [1, 1]} : vector<8x128xf32> to vector<8x64xf32>
    %409 = arith.negf %408 : vector<8x64xf32>
    %410 = math.exp %409 : vector<8x64xf32>
    %cst_112 = arith.constant 1.000000e+00 : f32
    %411 = vector.broadcast %cst_112 : f32 to vector<8x64xf32>
    %412 = arith.addf %411, %410 : vector<8x64xf32>
    %413 = arith.divf %411, %412 : vector<8x64xf32>
    %414 = vector.extract_strided_slice %413 {offsets = [0, 0], sizes = [8, 32], strides = [1, 1]} : vector<8x64xf32> to vector<8x32xf32>
    %415 = vector.extract_strided_slice %413 {offsets = [0, 32], sizes = [8, 32], strides = [1, 1]} : vector<8x64xf32> to vector<8x32xf32>
    %416 = vector.extract_strided_slice %407 {offsets = [0, 64], sizes = [8, 32], strides = [1, 1]} : vector<8x128xf32> to vector<8x32xf32>
    %417 = vector.extract_strided_slice %407 {offsets = [0, 96], sizes = [8, 32], strides = [1, 1]} : vector<8x128xf32> to vector<8x32xf32>
    %418 = arith.mulf %414, %417 : vector<8x32xf32>
    %419 = arith.addf %416, %418 : vector<8x32xf32>
    %420 = math.tanh %419 : vector<8x32xf32>
    %cst_113 = arith.constant 1.000000e+00 : f32
    %421 = vector.broadcast %cst_113 : f32 to vector<8x32xf32>
    %422 = arith.subf %421, %415 : vector<8x32xf32>
    %423 = arith.mulf %422, %420 : vector<8x32xf32>
    %424 = arith.mulf %415, %398 : vector<8x32xf32>
    %425 = arith.addf %423, %424 : vector<8x32xf32>
    %cst_114 = arith.constant dense<0.000000e+00> : vector<8x128xf32>
    %426 = tpu.matmul %425, %69, %cst_114 {dimension_numbers = #tpu.dot_dimension_numbers<[1], [0], [0], [1], [0, 0, 1, 1], [], []>} : vector<8x32xf32>, vector<32x128xf32>, vector<8x128xf32> -> vector<8x128xf32>
    %427 = arith.addf %426, %401 : vector<8x128xf32>
    %428 = vector.broadcast %6 : vector<1x128xf32> to vector<8x128xf32>
    %429 = arith.addf %427, %428 : vector<8x128xf32>
    %430 = vector.extract_strided_slice %429 {offsets = [0, 0], sizes = [8, 64], strides = [1, 1]} : vector<8x128xf32> to vector<8x64xf32>
    %431 = arith.negf %430 : vector<8x64xf32>
    %432 = math.exp %431 : vector<8x64xf32>
    %cst_115 = arith.constant 1.000000e+00 : f32
    %433 = vector.broadcast %cst_115 : f32 to vector<8x64xf32>
    %434 = arith.addf %433, %432 : vector<8x64xf32>
    %435 = arith.divf %433, %434 : vector<8x64xf32>
    %436 = vector.extract_strided_slice %435 {offsets = [0, 0], sizes = [8, 32], strides = [1, 1]} : vector<8x64xf32> to vector<8x32xf32>
    %437 = vector.extract_strided_slice %435 {offsets = [0, 32], sizes = [8, 32], strides = [1, 1]} : vector<8x64xf32> to vector<8x32xf32>
    %438 = vector.extract_strided_slice %429 {offsets = [0, 64], sizes = [8, 32], strides = [1, 1]} : vector<8x128xf32> to vector<8x32xf32>
    %439 = vector.extract_strided_slice %429 {offsets = [0, 96], sizes = [8, 32], strides = [1, 1]} : vector<8x128xf32> to vector<8x32xf32>
    %440 = arith.mulf %436, %439 : vector<8x32xf32>
    %441 = arith.addf %438, %440 : vector<8x32xf32>
    %442 = math.tanh %441 : vector<8x32xf32>
    %cst_116 = arith.constant 1.000000e+00 : f32
    %443 = vector.broadcast %cst_116 : f32 to vector<8x32xf32>
    %444 = arith.subf %443, %437 : vector<8x32xf32>
    %445 = arith.mulf %444, %442 : vector<8x32xf32>
    %446 = arith.mulf %437, %399 : vector<8x32xf32>
    %447 = arith.addf %445, %446 : vector<8x32xf32>
    %cst_117 = arith.constant dense<0.000000e+00> : vector<8x128xf32>
    %448 = tpu.matmul %447, %71, %cst_117 {dimension_numbers = #tpu.dot_dimension_numbers<[1], [0], [0], [1], [0, 0, 1, 1], [], []>} : vector<8x32xf32>, vector<32x128xf32>, vector<8x128xf32> -> vector<8x128xf32>
    %449 = arith.addf %448, %402 : vector<8x128xf32>
    %450 = vector.broadcast %7 : vector<1x128xf32> to vector<8x128xf32>
    %451 = arith.addf %449, %450 : vector<8x128xf32>
    %452 = vector.extract_strided_slice %451 {offsets = [0, 0], sizes = [8, 64], strides = [1, 1]} : vector<8x128xf32> to vector<8x64xf32>
    %453 = arith.negf %452 : vector<8x64xf32>
    %454 = math.exp %453 : vector<8x64xf32>
    %cst_118 = arith.constant 1.000000e+00 : f32
    %455 = vector.broadcast %cst_118 : f32 to vector<8x64xf32>
    %456 = arith.addf %455, %454 : vector<8x64xf32>
    %457 = arith.divf %455, %456 : vector<8x64xf32>
    %458 = vector.extract_strided_slice %457 {offsets = [0, 0], sizes = [8, 32], strides = [1, 1]} : vector<8x64xf32> to vector<8x32xf32>
    %459 = vector.extract_strided_slice %457 {offsets = [0, 32], sizes = [8, 32], strides = [1, 1]} : vector<8x64xf32> to vector<8x32xf32>
    %460 = vector.extract_strided_slice %451 {offsets = [0, 64], sizes = [8, 32], strides = [1, 1]} : vector<8x128xf32> to vector<8x32xf32>
    %461 = vector.extract_strided_slice %451 {offsets = [0, 96], sizes = [8, 32], strides = [1, 1]} : vector<8x128xf32> to vector<8x32xf32>
    %462 = arith.mulf %458, %461 : vector<8x32xf32>
    %463 = arith.addf %460, %462 : vector<8x32xf32>
    %464 = math.tanh %463 : vector<8x32xf32>
    %cst_119 = arith.constant 1.000000e+00 : f32
    %465 = vector.broadcast %cst_119 : f32 to vector<8x32xf32>
    %466 = arith.subf %465, %459 : vector<8x32xf32>
    %467 = arith.mulf %466, %464 : vector<8x32xf32>
    %468 = arith.mulf %459, %400 : vector<8x32xf32>
    %469 = arith.addf %467, %468 : vector<8x32xf32>
    %470 = arith.index_cast %c4_i32 : i32 to index
    %c0_120 = arith.constant 0 : index
    %c0_121 = arith.constant 0 : index
    %471 = vector.load %arg9[%470, %c0_120, %c0_121] : memref<8x8x32xf32, #tpu.memory_space<vmem>>, vector<1x8x32xf32>
    %472 = vector.shape_cast %471 : vector<1x8x32xf32> to vector<8x32xf32>
    %473 = vector.shape_cast %469 : vector<8x32xf32> to vector<1x8x32xf32>
    tpu.vector_store %arg9[%470, %c0_120, %c0_121], %473 {strides = array<i32>} : memref<8x8x32xf32, #tpu.memory_space<vmem>>, vector<1x8x32xf32>,
    %c5_i32 = arith.constant 5 : i32
    %474 = arith.index_cast %c5_i32 : i32 to index
    %c0_122 = arith.constant 0 : index
    %c0_123 = arith.constant 0 : index
    %475 = vector.load %arg8[%474, %c0_122, %c0_123] : memref<8x8x32xf32, #tpu.memory_space<vmem>>, vector<1x8x32xf32>
    %476 = vector.shape_cast %475 : vector<1x8x32xf32> to vector<8x32xf32>
    %477 = arith.mulf %425, %476 : vector<8x32xf32>
    %478 = arith.mulf %447, %476 : vector<8x32xf32>
    %479 = arith.mulf %469, %476 : vector<8x32xf32>
    %cst_124 = arith.constant dense<0.000000e+00> : vector<8x128xf32>
    %480 = tpu.matmul %478, %70, %cst_124 {dimension_numbers = #tpu.dot_dimension_numbers<[1], [0], [0], [1], [0, 0, 1, 1], [], []>} : vector<8x32xf32>, vector<32x128xf32>, vector<8x128xf32> -> vector<8x128xf32>
    %cst_125 = arith.constant dense<0.000000e+00> : vector<8x128xf32>
    %481 = tpu.matmul %479, %72, %cst_125 {dimension_numbers = #tpu.dot_dimension_numbers<[1], [0], [0], [1], [0, 0, 1, 1], [], []>} : vector<8x32xf32>, vector<32x128xf32>, vector<8x128xf32> -> vector<8x128xf32>
    %482 = arith.index_cast %c5_i32 : i32 to index
    %c0_126 = arith.constant 0 : index
    %c0_127 = arith.constant 0 : index
    %483 = vector.load %arg7[%482, %c0_126, %c0_127] : memref<8x8x128xf32, #tpu.memory_space<vmem>>, vector<1x8x128xf32>
    %484 = vector.shape_cast %483 : vector<1x8x128xf32> to vector<8x128xf32>
    %cst_128 = arith.constant dense<0.000000e+00> : vector<8x128xf32>
    %485 = tpu.matmul %477, %68, %cst_128 {dimension_numbers = #tpu.dot_dimension_numbers<[1], [0], [0], [1], [0, 0, 1, 1], [], []>} : vector<8x32xf32>, vector<32x128xf32>, vector<8x128xf32> -> vector<8x128xf32>
    %486 = arith.addf %484, %485 : vector<8x128xf32>
    %487 = vector.extract_strided_slice %486 {offsets = [0, 0], sizes = [8, 64], strides = [1, 1]} : vector<8x128xf32> to vector<8x64xf32>
    %488 = arith.negf %487 : vector<8x64xf32>
    %489 = math.exp %488 : vector<8x64xf32>
    %cst_129 = arith.constant 1.000000e+00 : f32
    %490 = vector.broadcast %cst_129 : f32 to vector<8x64xf32>
    %491 = arith.addf %490, %489 : vector<8x64xf32>
    %492 = arith.divf %490, %491 : vector<8x64xf32>
    %493 = vector.extract_strided_slice %492 {offsets = [0, 0], sizes = [8, 32], strides = [1, 1]} : vector<8x64xf32> to vector<8x32xf32>
    %494 = vector.extract_strided_slice %492 {offsets = [0, 32], sizes = [8, 32], strides = [1, 1]} : vector<8x64xf32> to vector<8x32xf32>
    %495 = vector.extract_strided_slice %486 {offsets = [0, 64], sizes = [8, 32], strides = [1, 1]} : vector<8x128xf32> to vector<8x32xf32>
    %496 = vector.extract_strided_slice %486 {offsets = [0, 96], sizes = [8, 32], strides = [1, 1]} : vector<8x128xf32> to vector<8x32xf32>
    %497 = arith.mulf %493, %496 : vector<8x32xf32>
    %498 = arith.addf %495, %497 : vector<8x32xf32>
    %499 = math.tanh %498 : vector<8x32xf32>
    %cst_130 = arith.constant 1.000000e+00 : f32
    %500 = vector.broadcast %cst_130 : f32 to vector<8x32xf32>
    %501 = arith.subf %500, %494 : vector<8x32xf32>
    %502 = arith.mulf %501, %499 : vector<8x32xf32>
    %503 = arith.mulf %494, %477 : vector<8x32xf32>
    %504 = arith.addf %502, %503 : vector<8x32xf32>
    %cst_131 = arith.constant dense<0.000000e+00> : vector<8x128xf32>
    %505 = tpu.matmul %504, %69, %cst_131 {dimension_numbers = #tpu.dot_dimension_numbers<[1], [0], [0], [1], [0, 0, 1, 1], [], []>} : vector<8x32xf32>, vector<32x128xf32>, vector<8x128xf32> -> vector<8x128xf32>
    %506 = arith.addf %505, %480 : vector<8x128xf32>
    %507 = vector.broadcast %6 : vector<1x128xf32> to vector<8x128xf32>
    %508 = arith.addf %506, %507 : vector<8x128xf32>
    %509 = vector.extract_strided_slice %508 {offsets = [0, 0], sizes = [8, 64], strides = [1, 1]} : vector<8x128xf32> to vector<8x64xf32>
    %510 = arith.negf %509 : vector<8x64xf32>
    %511 = math.exp %510 : vector<8x64xf32>
    %cst_132 = arith.constant 1.000000e+00 : f32
    %512 = vector.broadcast %cst_132 : f32 to vector<8x64xf32>
    %513 = arith.addf %512, %511 : vector<8x64xf32>
    %514 = arith.divf %512, %513 : vector<8x64xf32>
    %515 = vector.extract_strided_slice %514 {offsets = [0, 0], sizes = [8, 32], strides = [1, 1]} : vector<8x64xf32> to vector<8x32xf32>
    %516 = vector.extract_strided_slice %514 {offsets = [0, 32], sizes = [8, 32], strides = [1, 1]} : vector<8x64xf32> to vector<8x32xf32>
    %517 = vector.extract_strided_slice %508 {offsets = [0, 64], sizes = [8, 32], strides = [1, 1]} : vector<8x128xf32> to vector<8x32xf32>
    %518 = vector.extract_strided_slice %508 {offsets = [0, 96], sizes = [8, 32], strides = [1, 1]} : vector<8x128xf32> to vector<8x32xf32>
    %519 = arith.mulf %515, %518 : vector<8x32xf32>
    %520 = arith.addf %517, %519 : vector<8x32xf32>
    %521 = math.tanh %520 : vector<8x32xf32>
    %cst_133 = arith.constant 1.000000e+00 : f32
    %522 = vector.broadcast %cst_133 : f32 to vector<8x32xf32>
    %523 = arith.subf %522, %516 : vector<8x32xf32>
    %524 = arith.mulf %523, %521 : vector<8x32xf32>
    %525 = arith.mulf %516, %478 : vector<8x32xf32>
    %526 = arith.addf %524, %525 : vector<8x32xf32>
    %cst_134 = arith.constant dense<0.000000e+00> : vector<8x128xf32>
    %527 = tpu.matmul %526, %71, %cst_134 {dimension_numbers = #tpu.dot_dimension_numbers<[1], [0], [0], [1], [0, 0, 1, 1], [], []>} : vector<8x32xf32>, vector<32x128xf32>, vector<8x128xf32> -> vector<8x128xf32>
    %528 = arith.addf %527, %481 : vector<8x128xf32>
    %529 = vector.broadcast %7 : vector<1x128xf32> to vector<8x128xf32>
    %530 = arith.addf %528, %529 : vector<8x128xf32>
    %531 = vector.extract_strided_slice %530 {offsets = [0, 0], sizes = [8, 64], strides = [1, 1]} : vector<8x128xf32> to vector<8x64xf32>
    %532 = arith.negf %531 : vector<8x64xf32>
    %533 = math.exp %532 : vector<8x64xf32>
    %cst_135 = arith.constant 1.000000e+00 : f32
    %534 = vector.broadcast %cst_135 : f32 to vector<8x64xf32>
    %535 = arith.addf %534, %533 : vector<8x64xf32>
    %536 = arith.divf %534, %535 : vector<8x64xf32>
    %537 = vector.extract_strided_slice %536 {offsets = [0, 0], sizes = [8, 32], strides = [1, 1]} : vector<8x64xf32> to vector<8x32xf32>
    %538 = vector.extract_strided_slice %536 {offsets = [0, 32], sizes = [8, 32], strides = [1, 1]} : vector<8x64xf32> to vector<8x32xf32>
    %539 = vector.extract_strided_slice %530 {offsets = [0, 64], sizes = [8, 32], strides = [1, 1]} : vector<8x128xf32> to vector<8x32xf32>
    %540 = vector.extract_strided_slice %530 {offsets = [0, 96], sizes = [8, 32], strides = [1, 1]} : vector<8x128xf32> to vector<8x32xf32>
    %541 = arith.mulf %537, %540 : vector<8x32xf32>
    %542 = arith.addf %539, %541 : vector<8x32xf32>
    %543 = math.tanh %542 : vector<8x32xf32>
    %cst_136 = arith.constant 1.000000e+00 : f32
    %544 = vector.broadcast %cst_136 : f32 to vector<8x32xf32>
    %545 = arith.subf %544, %538 : vector<8x32xf32>
    %546 = arith.mulf %545, %543 : vector<8x32xf32>
    %547 = arith.mulf %538, %479 : vector<8x32xf32>
    %548 = arith.addf %546, %547 : vector<8x32xf32>
    %549 = arith.index_cast %c5_i32 : i32 to index
    %c0_137 = arith.constant 0 : index
    %c0_138 = arith.constant 0 : index
    %550 = vector.load %arg9[%549, %c0_137, %c0_138] : memref<8x8x32xf32, #tpu.memory_space<vmem>>, vector<1x8x32xf32>
    %551 = vector.shape_cast %550 : vector<1x8x32xf32> to vector<8x32xf32>
    %552 = vector.shape_cast %548 : vector<8x32xf32> to vector<1x8x32xf32>
    tpu.vector_store %arg9[%549, %c0_137, %c0_138], %552 {strides = array<i32>} : memref<8x8x32xf32, #tpu.memory_space<vmem>>, vector<1x8x32xf32>,
    %c6_i32 = arith.constant 6 : i32
    %553 = arith.index_cast %c6_i32 : i32 to index
    %c0_139 = arith.constant 0 : index
    %c0_140 = arith.constant 0 : index
    %554 = vector.load %arg8[%553, %c0_139, %c0_140] : memref<8x8x32xf32, #tpu.memory_space<vmem>>, vector<1x8x32xf32>
    %555 = vector.shape_cast %554 : vector<1x8x32xf32> to vector<8x32xf32>
    %556 = arith.mulf %504, %555 : vector<8x32xf32>
    %557 = arith.mulf %526, %555 : vector<8x32xf32>
    %558 = arith.mulf %548, %555 : vector<8x32xf32>
    %cst_141 = arith.constant dense<0.000000e+00> : vector<8x128xf32>
    %559 = tpu.matmul %557, %70, %cst_141 {dimension_numbers = #tpu.dot_dimension_numbers<[1], [0], [0], [1], [0, 0, 1, 1], [], []>} : vector<8x32xf32>, vector<32x128xf32>, vector<8x128xf32> -> vector<8x128xf32>
    %cst_142 = arith.constant dense<0.000000e+00> : vector<8x128xf32>
    %560 = tpu.matmul %558, %72, %cst_142 {dimension_numbers = #tpu.dot_dimension_numbers<[1], [0], [0], [1], [0, 0, 1, 1], [], []>} : vector<8x32xf32>, vector<32x128xf32>, vector<8x128xf32> -> vector<8x128xf32>
    %561 = arith.index_cast %c6_i32 : i32 to index
    %c0_143 = arith.constant 0 : index
    %c0_144 = arith.constant 0 : index
    %562 = vector.load %arg7[%561, %c0_143, %c0_144] : memref<8x8x128xf32, #tpu.memory_space<vmem>>, vector<1x8x128xf32>
    %563 = vector.shape_cast %562 : vector<1x8x128xf32> to vector<8x128xf32>
    %cst_145 = arith.constant dense<0.000000e+00> : vector<8x128xf32>
    %564 = tpu.matmul %556, %68, %cst_145 {dimension_numbers = #tpu.dot_dimension_numbers<[1], [0], [0], [1], [0, 0, 1, 1], [], []>} : vector<8x32xf32>, vector<32x128xf32>, vector<8x128xf32> -> vector<8x128xf32>
    %565 = arith.addf %563, %564 : vector<8x128xf32>
    %566 = vector.extract_strided_slice %565 {offsets = [0, 0], sizes = [8, 64], strides = [1, 1]} : vector<8x128xf32> to vector<8x64xf32>
    %567 = arith.negf %566 : vector<8x64xf32>
    %568 = math.exp %567 : vector<8x64xf32>
    %cst_146 = arith.constant 1.000000e+00 : f32
    %569 = vector.broadcast %cst_146 : f32 to vector<8x64xf32>
    %570 = arith.addf %569, %568 : vector<8x64xf32>
    %571 = arith.divf %569, %570 : vector<8x64xf32>
    %572 = vector.extract_strided_slice %571 {offsets = [0, 0], sizes = [8, 32], strides = [1, 1]} : vector<8x64xf32> to vector<8x32xf32>
    %573 = vector.extract_strided_slice %571 {offsets = [0, 32], sizes = [8, 32], strides = [1, 1]} : vector<8x64xf32> to vector<8x32xf32>
    %574 = vector.extract_strided_slice %565 {offsets = [0, 64], sizes = [8, 32], strides = [1, 1]} : vector<8x128xf32> to vector<8x32xf32>
    %575 = vector.extract_strided_slice %565 {offsets = [0, 96], sizes = [8, 32], strides = [1, 1]} : vector<8x128xf32> to vector<8x32xf32>
    %576 = arith.mulf %572, %575 : vector<8x32xf32>
    %577 = arith.addf %574, %576 : vector<8x32xf32>
    %578 = math.tanh %577 : vector<8x32xf32>
    %cst_147 = arith.constant 1.000000e+00 : f32
    %579 = vector.broadcast %cst_147 : f32 to vector<8x32xf32>
    %580 = arith.subf %579, %573 : vector<8x32xf32>
    %581 = arith.mulf %580, %578 : vector<8x32xf32>
    %582 = arith.mulf %573, %556 : vector<8x32xf32>
    %583 = arith.addf %581, %582 : vector<8x32xf32>
    %cst_148 = arith.constant dense<0.000000e+00> : vector<8x128xf32>
    %584 = tpu.matmul %583, %69, %cst_148 {dimension_numbers = #tpu.dot_dimension_numbers<[1], [0], [0], [1], [0, 0, 1, 1], [], []>} : vector<8x32xf32>, vector<32x128xf32>, vector<8x128xf32> -> vector<8x128xf32>
    %585 = arith.addf %584, %559 : vector<8x128xf32>
    %586 = vector.broadcast %6 : vector<1x128xf32> to vector<8x128xf32>
    %587 = arith.addf %585, %586 : vector<8x128xf32>
    %588 = vector.extract_strided_slice %587 {offsets = [0, 0], sizes = [8, 64], strides = [1, 1]} : vector<8x128xf32> to vector<8x64xf32>
    %589 = arith.negf %588 : vector<8x64xf32>
    %590 = math.exp %589 : vector<8x64xf32>
    %cst_149 = arith.constant 1.000000e+00 : f32
    %591 = vector.broadcast %cst_149 : f32 to vector<8x64xf32>
    %592 = arith.addf %591, %590 : vector<8x64xf32>
    %593 = arith.divf %591, %592 : vector<8x64xf32>
    %594 = vector.extract_strided_slice %593 {offsets = [0, 0], sizes = [8, 32], strides = [1, 1]} : vector<8x64xf32> to vector<8x32xf32>
    %595 = vector.extract_strided_slice %593 {offsets = [0, 32], sizes = [8, 32], strides = [1, 1]} : vector<8x64xf32> to vector<8x32xf32>
    %596 = vector.extract_strided_slice %587 {offsets = [0, 64], sizes = [8, 32], strides = [1, 1]} : vector<8x128xf32> to vector<8x32xf32>
    %597 = vector.extract_strided_slice %587 {offsets = [0, 96], sizes = [8, 32], strides = [1, 1]} : vector<8x128xf32> to vector<8x32xf32>
    %598 = arith.mulf %594, %597 : vector<8x32xf32>
    %599 = arith.addf %596, %598 : vector<8x32xf32>
    %600 = math.tanh %599 : vector<8x32xf32>
    %cst_150 = arith.constant 1.000000e+00 : f32
    %601 = vector.broadcast %cst_150 : f32 to vector<8x32xf32>
    %602 = arith.subf %601, %595 : vector<8x32xf32>
    %603 = arith.mulf %602, %600 : vector<8x32xf32>
    %604 = arith.mulf %595, %557 : vector<8x32xf32>
    %605 = arith.addf %603, %604 : vector<8x32xf32>
    %cst_151 = arith.constant dense<0.000000e+00> : vector<8x128xf32>
    %606 = tpu.matmul %605, %71, %cst_151 {dimension_numbers = #tpu.dot_dimension_numbers<[1], [0], [0], [1], [0, 0, 1, 1], [], []>} : vector<8x32xf32>, vector<32x128xf32>, vector<8x128xf32> -> vector<8x128xf32>
    %607 = arith.addf %606, %560 : vector<8x128xf32>
    %608 = vector.broadcast %7 : vector<1x128xf32> to vector<8x128xf32>
    %609 = arith.addf %607, %608 : vector<8x128xf32>
    %610 = vector.extract_strided_slice %609 {offsets = [0, 0], sizes = [8, 64], strides = [1, 1]} : vector<8x128xf32> to vector<8x64xf32>
    %611 = arith.negf %610 : vector<8x64xf32>
    %612 = math.exp %611 : vector<8x64xf32>
    %cst_152 = arith.constant 1.000000e+00 : f32
    %613 = vector.broadcast %cst_152 : f32 to vector<8x64xf32>
    %614 = arith.addf %613, %612 : vector<8x64xf32>
    %615 = arith.divf %613, %614 : vector<8x64xf32>
    %616 = vector.extract_strided_slice %615 {offsets = [0, 0], sizes = [8, 32], strides = [1, 1]} : vector<8x64xf32> to vector<8x32xf32>
    %617 = vector.extract_strided_slice %615 {offsets = [0, 32], sizes = [8, 32], strides = [1, 1]} : vector<8x64xf32> to vector<8x32xf32>
    %618 = vector.extract_strided_slice %609 {offsets = [0, 64], sizes = [8, 32], strides = [1, 1]} : vector<8x128xf32> to vector<8x32xf32>
    %619 = vector.extract_strided_slice %609 {offsets = [0, 96], sizes = [8, 32], strides = [1, 1]} : vector<8x128xf32> to vector<8x32xf32>
    %620 = arith.mulf %616, %619 : vector<8x32xf32>
    %621 = arith.addf %618, %620 : vector<8x32xf32>
    %622 = math.tanh %621 : vector<8x32xf32>
    %cst_153 = arith.constant 1.000000e+00 : f32
    %623 = vector.broadcast %cst_153 : f32 to vector<8x32xf32>
    %624 = arith.subf %623, %617 : vector<8x32xf32>
    %625 = arith.mulf %624, %622 : vector<8x32xf32>
    %626 = arith.mulf %617, %558 : vector<8x32xf32>
    %627 = arith.addf %625, %626 : vector<8x32xf32>
    %628 = arith.index_cast %c6_i32 : i32 to index
    %c0_154 = arith.constant 0 : index
    %c0_155 = arith.constant 0 : index
    %629 = vector.load %arg9[%628, %c0_154, %c0_155] : memref<8x8x32xf32, #tpu.memory_space<vmem>>, vector<1x8x32xf32>
    %630 = vector.shape_cast %629 : vector<1x8x32xf32> to vector<8x32xf32>
    %631 = vector.shape_cast %627 : vector<8x32xf32> to vector<1x8x32xf32>
    tpu.vector_store %arg9[%628, %c0_154, %c0_155], %631 {strides = array<i32>} : memref<8x8x32xf32, #tpu.memory_space<vmem>>, vector<1x8x32xf32>,
    %c7_i32 = arith.constant 7 : i32
    %632 = arith.index_cast %c7_i32 : i32 to index
    %c0_156 = arith.constant 0 : index
    %c0_157 = arith.constant 0 : index
    %633 = vector.load %arg8[%632, %c0_156, %c0_157] : memref<8x8x32xf32, #tpu.memory_space<vmem>>, vector<1x8x32xf32>
    %634 = vector.shape_cast %633 : vector<1x8x32xf32> to vector<8x32xf32>
    %635 = arith.mulf %583, %634 : vector<8x32xf32>
    %636 = arith.mulf %605, %634 : vector<8x32xf32>
    %637 = arith.mulf %627, %634 : vector<8x32xf32>
    %cst_158 = arith.constant dense<0.000000e+00> : vector<8x128xf32>
    %638 = tpu.matmul %636, %70, %cst_158 {dimension_numbers = #tpu.dot_dimension_numbers<[1], [0], [0], [1], [0, 0, 1, 1], [], []>} : vector<8x32xf32>, vector<32x128xf32>, vector<8x128xf32> -> vector<8x128xf32>
    %cst_159 = arith.constant dense<0.000000e+00> : vector<8x128xf32>
    %639 = tpu.matmul %637, %72, %cst_159 {dimension_numbers = #tpu.dot_dimension_numbers<[1], [0], [0], [1], [0, 0, 1, 1], [], []>} : vector<8x32xf32>, vector<32x128xf32>, vector<8x128xf32> -> vector<8x128xf32>
    %640 = arith.index_cast %c7_i32 : i32 to index
    %c0_160 = arith.constant 0 : index
    %c0_161 = arith.constant 0 : index
    %641 = vector.load %arg7[%640, %c0_160, %c0_161] : memref<8x8x128xf32, #tpu.memory_space<vmem>>, vector<1x8x128xf32>
    %642 = vector.shape_cast %641 : vector<1x8x128xf32> to vector<8x128xf32>
    %cst_162 = arith.constant dense<0.000000e+00> : vector<8x128xf32>
    %643 = tpu.matmul %635, %68, %cst_162 {dimension_numbers = #tpu.dot_dimension_numbers<[1], [0], [0], [1], [0, 0, 1, 1], [], []>} : vector<8x32xf32>, vector<32x128xf32>, vector<8x128xf32> -> vector<8x128xf32>
    %644 = arith.addf %642, %643 : vector<8x128xf32>
    %645 = vector.extract_strided_slice %644 {offsets = [0, 0], sizes = [8, 64], strides = [1, 1]} : vector<8x128xf32> to vector<8x64xf32>
    %646 = arith.negf %645 : vector<8x64xf32>
    %647 = math.exp %646 : vector<8x64xf32>
    %cst_163 = arith.constant 1.000000e+00 : f32
    %648 = vector.broadcast %cst_163 : f32 to vector<8x64xf32>
    %649 = arith.addf %648, %647 : vector<8x64xf32>
    %650 = arith.divf %648, %649 : vector<8x64xf32>
    %651 = vector.extract_strided_slice %650 {offsets = [0, 0], sizes = [8, 32], strides = [1, 1]} : vector<8x64xf32> to vector<8x32xf32>
    %652 = vector.extract_strided_slice %650 {offsets = [0, 32], sizes = [8, 32], strides = [1, 1]} : vector<8x64xf32> to vector<8x32xf32>
    %653 = vector.extract_strided_slice %644 {offsets = [0, 64], sizes = [8, 32], strides = [1, 1]} : vector<8x128xf32> to vector<8x32xf32>
    %654 = vector.extract_strided_slice %644 {offsets = [0, 96], sizes = [8, 32], strides = [1, 1]} : vector<8x128xf32> to vector<8x32xf32>
    %655 = arith.mulf %651, %654 : vector<8x32xf32>
    %656 = arith.addf %653, %655 : vector<8x32xf32>
    %657 = math.tanh %656 : vector<8x32xf32>
    %cst_164 = arith.constant 1.000000e+00 : f32
    %658 = vector.broadcast %cst_164 : f32 to vector<8x32xf32>
    %659 = arith.subf %658, %652 : vector<8x32xf32>
    %660 = arith.mulf %659, %657 : vector<8x32xf32>
    %661 = arith.mulf %652, %635 : vector<8x32xf32>
    %662 = arith.addf %660, %661 : vector<8x32xf32>
    %cst_165 = arith.constant dense<0.000000e+00> : vector<8x128xf32>
    %663 = tpu.matmul %662, %69, %cst_165 {dimension_numbers = #tpu.dot_dimension_numbers<[1], [0], [0], [1], [0, 0, 1, 1], [], []>} : vector<8x32xf32>, vector<32x128xf32>, vector<8x128xf32> -> vector<8x128xf32>
    %664 = arith.addf %663, %638 : vector<8x128xf32>
    %665 = vector.broadcast %6 : vector<1x128xf32> to vector<8x128xf32>
    %666 = arith.addf %664, %665 : vector<8x128xf32>
    %667 = vector.extract_strided_slice %666 {offsets = [0, 0], sizes = [8, 64], strides = [1, 1]} : vector<8x128xf32> to vector<8x64xf32>
    %668 = arith.negf %667 : vector<8x64xf32>
    %669 = math.exp %668 : vector<8x64xf32>
    %cst_166 = arith.constant 1.000000e+00 : f32
    %670 = vector.broadcast %cst_166 : f32 to vector<8x64xf32>
    %671 = arith.addf %670, %669 : vector<8x64xf32>
    %672 = arith.divf %670, %671 : vector<8x64xf32>
    %673 = vector.extract_strided_slice %672 {offsets = [0, 0], sizes = [8, 32], strides = [1, 1]} : vector<8x64xf32> to vector<8x32xf32>
    %674 = vector.extract_strided_slice %672 {offsets = [0, 32], sizes = [8, 32], strides = [1, 1]} : vector<8x64xf32> to vector<8x32xf32>
    %675 = vector.extract_strided_slice %666 {offsets = [0, 64], sizes = [8, 32], strides = [1, 1]} : vector<8x128xf32> to vector<8x32xf32>
    %676 = vector.extract_strided_slice %666 {offsets = [0, 96], sizes = [8, 32], strides = [1, 1]} : vector<8x128xf32> to vector<8x32xf32>
    %677 = arith.mulf %673, %676 : vector<8x32xf32>
    %678 = arith.addf %675, %677 : vector<8x32xf32>
    %679 = math.tanh %678 : vector<8x32xf32>
    %cst_167 = arith.constant 1.000000e+00 : f32
    %680 = vector.broadcast %cst_167 : f32 to vector<8x32xf32>
    %681 = arith.subf %680, %674 : vector<8x32xf32>
    %682 = arith.mulf %681, %679 : vector<8x32xf32>
    %683 = arith.mulf %674, %636 : vector<8x32xf32>
    %684 = arith.addf %682, %683 : vector<8x32xf32>
    %cst_168 = arith.constant dense<0.000000e+00> : vector<8x128xf32>
    %685 = tpu.matmul %684, %71, %cst_168 {dimension_numbers = #tpu.dot_dimension_numbers<[1], [0], [0], [1], [0, 0, 1, 1], [], []>} : vector<8x32xf32>, vector<32x128xf32>, vector<8x128xf32> -> vector<8x128xf32>
    %686 = arith.addf %685, %639 : vector<8x128xf32>
    %687 = vector.broadcast %7 : vector<1x128xf32> to vector<8x128xf32>
    %688 = arith.addf %686, %687 : vector<8x128xf32>
    %689 = vector.extract_strided_slice %688 {offsets = [0, 0], sizes = [8, 64], strides = [1, 1]} : vector<8x128xf32> to vector<8x64xf32>
    %690 = arith.negf %689 : vector<8x64xf32>
    %691 = math.exp %690 : vector<8x64xf32>
    %cst_169 = arith.constant 1.000000e+00 : f32
    %692 = vector.broadcast %cst_169 : f32 to vector<8x64xf32>
    %693 = arith.addf %692, %691 : vector<8x64xf32>
    %694 = arith.divf %692, %693 : vector<8x64xf32>
    %695 = vector.extract_strided_slice %694 {offsets = [0, 0], sizes = [8, 32], strides = [1, 1]} : vector<8x64xf32> to vector<8x32xf32>
    %696 = vector.extract_strided_slice %694 {offsets = [0, 32], sizes = [8, 32], strides = [1, 1]} : vector<8x64xf32> to vector<8x32xf32>
    %697 = vector.extract_strided_slice %688 {offsets = [0, 64], sizes = [8, 32], strides = [1, 1]} : vector<8x128xf32> to vector<8x32xf32>
    %698 = vector.extract_strided_slice %688 {offsets = [0, 96], sizes = [8, 32], strides = [1, 1]} : vector<8x128xf32> to vector<8x32xf32>
    %699 = arith.mulf %695, %698 : vector<8x32xf32>
    %700 = arith.addf %697, %699 : vector<8x32xf32>
    %701 = math.tanh %700 : vector<8x32xf32>
    %cst_170 = arith.constant 1.000000e+00 : f32
    %702 = vector.broadcast %cst_170 : f32 to vector<8x32xf32>
    %703 = arith.subf %702, %696 : vector<8x32xf32>
    %704 = arith.mulf %703, %701 : vector<8x32xf32>
    %705 = arith.mulf %696, %637 : vector<8x32xf32>
    %706 = arith.addf %704, %705 : vector<8x32xf32>
    %707 = arith.index_cast %c7_i32 : i32 to index
    %c0_171 = arith.constant 0 : index
    %c0_172 = arith.constant 0 : index
    %708 = vector.load %arg9[%707, %c0_171, %c0_172] : memref<8x8x32xf32, #tpu.memory_space<vmem>>, vector<1x8x32xf32>
    %709 = vector.shape_cast %708 : vector<1x8x32xf32> to vector<8x32xf32>
    %710 = vector.shape_cast %706 : vector<8x32xf32> to vector<1x8x32xf32>
    tpu.vector_store %arg9[%707, %c0_171, %c0_172], %710 {strides = array<i32>} : memref<8x8x32xf32, #tpu.memory_space<vmem>>, vector<1x8x32xf32>,
    %c8_i32 = arith.constant 8 : i32
    %c176 = arith.constant 176 : index
    %c0_173 = arith.constant 0 : index
    %711 = vector.load %arg4[%c176, %c0_173] : memref<208x128xf32, #tpu.memory_space<vmem>>, vector<32x128xf32>
    %c0_174 = arith.constant 0 : index
    %c0_175 = arith.constant 0 : index
    %c0_176 = arith.constant 0 : index
    %712 = vector.load %arg9[%c0_174, %c0_175, %c0_176] : memref<8x8x32xf32, #tpu.memory_space<vmem>>, vector<8x8x32xf32>
    %713 = vector.shape_cast %712 : vector<8x8x32xf32> to vector<64x32xf32>
    %cst_177 = arith.constant dense<0.000000e+00> : vector<64x128xf32>
    %714 = tpu.matmul %713, %711, %cst_177 {dimension_numbers = #tpu.dot_dimension_numbers<[1], [0], [0], [1], [0, 0, 1, 1], [], []>} : vector<64x32xf32>, vector<32x128xf32>, vector<64x128xf32> -> vector<64x128xf32>
    %715 = vector.extract_strided_slice %714 {offsets = [0, 0], sizes = [64, 4], strides = [1, 1]} : vector<64x128xf32> to vector<64x4xf32>
    %716 = vector.broadcast %8 : vector<1x4xf32> to vector<64x4xf32>
    %717 = arith.addf %715, %716 : vector<64x4xf32>
    %cst_178 = arith.constant dense<0xFF800000> : vector<64xf32>
    %718 = vector.multi_reduction <maximumf>, %717, %cst_178 [1] : vector<64x4xf32> to vector<64xf32>
    %719 = vector.shape_cast %718 : vector<64xf32> to vector<64x1xf32>
    %720 = vector.broadcast %719 : vector<64x1xf32> to vector<64x4xf32>
    %721 = arith.subf %717, %720 : vector<64x4xf32>
    %722 = math.exp %721 : vector<64x4xf32>
    %cst_179 = arith.constant dense<0.000000e+00> : vector<64xf32>
    %723 = vector.multi_reduction <add>, %722, %cst_179 [1] : vector<64x4xf32> to vector<64xf32>
    %724 = vector.shape_cast %723 : vector<64xf32> to vector<64x1xf32>
    %725 = tpu.reciprocal %724 {approx = true} : vector<64x1xf32> -> vector<64x1xf32>
    %726 = vector.broadcast %725 : vector<64x1xf32> to vector<64x4xf32>
    %727 = arith.mulf %722, %726 : vector<64x4xf32>
    %728 = vector.shape_cast %727 : vector<64x4xf32> to vector<8x8x4xf32>
    %c0_180 = arith.constant 0 : index
    %c0_181 = arith.constant 0 : index
    %c0_182 = arith.constant 0 : index
    %729 = vector.load %arg6[%c0_180, %c0_181, %c0_182] : memref<8x8x4xf32, #tpu.memory_space<vmem>>, vector<8x8x4xf32>
    tpu.vector_store %arg6[%c0_180, %c0_181, %c0_182], %728 {strides = array<i32>} : memref<8x8x4xf32, #tpu.memory_space<vmem>>, vector<8x8x4xf32>,
    return
  }
  func.func @transform_0(%arg0: i32) -> (i32, i32, i32) {
    %c0_i32 = arith.constant 0 : i32
    %c0_i32_0 = arith.constant 0 : i32
    %c0_i32_1 = arith.constant 0 : i32
    %c0_i32_2 = arith.constant 0 : i32
    return %c0_i32, %c0_i32_0, %c0_i32_1 : i32, i32, i32
  }
  func.func @transform_1(%arg0: i32) -> (i32, i32, i32) {
    %c0_i32 = arith.constant 0 : i32
    %c0_i32_0 = arith.constant 0 : i32
    %c0_i32_1 = arith.constant 0 : i32
    %c0_i32_2 = arith.constant 0 : i32
    return %c0_i32, %c0_i32_0, %c0_i32_1 : i32, i32, i32
  }
  func.func @transform_2(%arg0: i32) -> (i32, i32, i32) {
    %c0_i32 = arith.constant 0 : i32
    %c0_i32_0 = arith.constant 0 : i32
    %c0_i32_1 = arith.constant 0 : i32
    %c0_i32_2 = arith.constant 0 : i32
    return %c0_i32, %c0_i32_0, %c0_i32_1 : i32, i32, i32
  }
  func.func @transform_3(%arg0: i32) -> (i32, i32) {
    %c0_i32 = arith.constant 0 : i32
    %c0_i32_0 = arith.constant 0 : i32
    %c0_i32_1 = arith.constant 0 : i32
    return %c0_i32, %c0_i32_0 : i32, i32
  }
  func.func @transform_4(%arg0: i32) -> (i32, i32) {
    %c0_i32 = arith.constant 0 : i32
    %c0_i32_0 = arith.constant 0 : i32
    %c0_i32_1 = arith.constant 0 : i32
    return %c0_i32, %c0_i32_0 : i32, i32
  }
  func.func @transform_5(%arg0: i32) -> (i32, i32, i32) {
    %c0_i32 = arith.constant 0 : i32
    %c0_i32_0 = arith.constant 0 : i32
    %c0_i32_1 = arith.constant 0 : i32
    %c0_i32_2 = arith.constant 0 : i32
    return %c0_i32, %c0_i32_0, %c0_i32_1 : i32, i32, i32
  }
}

</mosaic_0001>

<bundles_post_ra>
// kernel: tpu_custom_call.1
= control target key start
LH: loop header
LB: loop body
LE: loop exit
PB: predicated region body
PF: predicated region fallthrough
CT: control target
= control target key end

     0   :  { %10 = vsyncpa [#allocation6], 0  ;;  %s6693_s0 = inlined_call_operand.hbm [shape: f32[8,16,16], index: 0, kind: input, shape index: {}]   ;;  %s6694_s1 = inlined_call_operand.vmem [shape: f32[8,8,1], index: 1, kind: input, shape index: {}]   ;;  %s6695_s2 = inlined_call_operand.vmem [shape: f32[3,8,32], index: 2, kind: input, shape index: {}]   ;;  %s6696_s3 = inlined_call_operand.hbm [shape: f32[208,128], index: 3, kind: input, shape index: {}]   ;;  %s6697_s4 = inlined_call_operand.vmem [shape: f32[8,128], index: 4, kind: input, shape index: {}]   ;;  %s6698_s5 = inlined_call_operand.vmem [shape: f32[8,8,4], index: 5, kind: output, shape index: {}]  }
   0x1   :  { %11 = vsyncpa [#allocation8], 0  ;;  %s5776_s18 = smov [#allocation5]   ;;  %s5728_s22 = scalar_lea.hbm %s6693_s0, 2048 }
   0x2   :  { %s17_s19 = sshll.u32 %s5776_s18, 4  ;;  %p5729_p0 = scmp.ne.s32.totalorder %s6693_s0, %s5728_s22  ;;  %s18_s19 = int_to_ptr.vmem [resolvable:$true] %s17_s19 }
   0x3   :  { %p5732_p1 = scmp.lt.u32.totalorder %s5728_s22, %s6693_s0 }
   0x5   :  { %p5734_p2 = pnand %p5732_p1, %p5729_p0 }
   0x7   :  { %5737 = shalt.err (!%p5734_p2)
}
   0x8   :  { %s5738_s27 = scalar_lea.vmem %s18_s19, 2048  ;;  %p5743_p4 = scmp.lt.s32.totalorder %s18_s19, %s18_s19 }
   0x9   :  { %p5739_p3 = scmp.ne.s32.totalorder %s18_s19, %s5738_s27  ;;  %p5744_p5 = scmp.lt.s32.totalorder %s5738_s27, %s5738_s27 }
   0xb   :  { %p5745_p6 = por %p5744_p5, %p5743_p4 }
   0xd   :  { %p5746_p7 = pnand %p5745_p6, %p5739_p3 }
   0xf   :  { %5749 = shalt.err (!%p5746_p7)
}
  0x10   :  { %s5777_s28 = smov 128   ;;  %s5778_s29 = smov 8  }
  0x11   :  { %23 = dma.hbm_to_vmem [thread:$0]  %s6693_s0, 2048, %s18_s19, [#allocation6], %s5777_s28, %s5777_s28, %s5778_s29  }
  0x12   :  { %s5779_s7 = smov [#allocation7]   ;;  %s5750_s11 = scalar_lea.hbm %s6696_s3, 3328 }
  0x13   :  { %s33_s8 = sshll.u32 %s5779_s7, 4  ;;  %p5751_p8 = scmp.ne.s32.totalorder %s6696_s3, %s5750_s11  ;;  %s34_s8 = int_to_ptr.vmem [resolvable:$true] %s33_s8 }
  0x14   :  { %p5754_p9 = scmp.lt.u32.totalorder %s5750_s11, %s6696_s3 }
  0x16   :  { %p5756_p10 = pnand %p5754_p9, %p5751_p8 }
  0x18   :  { %5759 = shalt.err (!%p5756_p10)
}
  0x19   :  { %s5760_s16 = scalar_lea.vmem %s34_s8, 3328  ;;  %p5765_p12 = scmp.lt.s32.totalorder %s34_s8, %s34_s8 }
  0x1a   :  { %p5761_p11 = scmp.ne.s32.totalorder %s34_s8, %s5760_s16  ;;  %p5766_p13 = scmp.lt.s32.totalorder %s5760_s16, %s5760_s16 }
  0x1c   :  { %p5767_p0 = por %p5766_p13, %p5765_p12 }
  0x1e   :  { %p5768_p1 = pnand %p5767_p0, %p5761_p11 }
  0x20   :  { %5771 = shalt.err (!%p5768_p1)
}
  0x21   :  { %39 = dma.hbm_to_vmem [thread:$0]  %s6696_s3, 3328, %s34_s8, [#allocation8], %s5777_s28, %s5777_s28, %s5778_s29  }
  0x22   :  { %5772 = dma.done.wait [#allocation6], 2048  }
  0x23   :  { %5773 = vsyncadd [#allocation6], 4294965248 }
  0x24   :  { %5774 = dma.done.wait [#allocation8], 3328  }
  0x25   :  { %5775 = vsyncadd [#allocation8], 4294963968  ;;  %v5780_v0 = vmov 0   ;;  %v66_v1 = vld [vmem:[%s6694_s1 + $0x18] sm:$0xff]  ;;  %v64_v2 = vld [vmem:[%s6694_s1 + $0x8] sm:$0xff]  ;;  %vm290_vm0 = vcmask 130048   ;;  %v112_v10 = vlaneseq }
  0x26   :  { %5520 = vset.pattern.permute.xlu1 %v5780_v0  ;;  %5519 = vset.pattern.permute.xlu0 %v5780_v0  ;;  %v65_v3 = vld [vmem:[%s6694_s1 + $0x10] sm:$0xff]  ;;  %v63_v4 = vld [vmem:[%s6694_s1] sm:$0xff]  ;;  %v285_v6 = vld [vmem:[#allocation7 + $0x8] sm:$0xff]  ;;  %v5781_v9 = vmov 0.0|0.0   ;;  %vm168_vm1 = vcmask 261120   ;;  %vm5783_vm2 = vmmov 0  }
  0x27   :  { %89 = vperm.xlu1 %5520, %v66_v1   ;;  %79 = vperm.xlu0 %5519, %v64_v2   ;;  %v284_v5 = vld [vmem:[#allocation7] sm:$0xff]  ;;  %v5860_v11 = vshrl.u32 %v112_v10, 7  ;;  %v50_v2 = vld [vmem:[#allocation5 + $0x18] sm:$0xff]  ;;  %s5785_s29 = smov 32   ;;  %s5786_s9 = smov 64   ;;  %vm4370_vm3 = vcmask 31744  }
  0x28   :  { %v5253_v7 = vpack.c.bf16 %v285_v6, %v284_v5  ;;  %v5854_v8 = vld [vmem:[#allocation5] sm:$0xff]  ;;  %s5787_s10 = smov 96  }
  0x29   :  { %4781 = vmatprep.mubr.msk.f32.mxu0 %vm290_vm0, %v5854_v8  ;;  %v114_v12 = vsub.s32 6, %v5860_v11  ;;  %v180_v13 = vsub.s32 4, %v5860_v11  ;;  %v5867_v14 = vld [vmem:[%s6697_s4] sm:$0xff]  ;;  %v126_v15 = vsub.s32 7, %v5860_v11  ;;  %v191_v16 = vsub.s32 5, %v5860_v11 }
  0x2a   :  { %5254 = vmatprep.subr.bf16.mxu0 %v5253_v7  ;;  %5505 = vmatprep.subr.bf16.mxu1 %v5253_v7  ;;  %v51_v62 = vld [vmem:[#allocation5 + $0x20] sm:$0xff] }
  0x2b   :  { %84 = vperm.xlu0 %5519, %v65_v3   ;;  %74 = vperm.xlu1 %5520, %v63_v4   ;;  %v5872_v17 = vrot.slane %v5867_v14, %v114_v12  ;;  %v5875_v18 = vrot.slane %v5867_v14, %v180_v13  ;;  %v5878_v19 = vrot.slane %v5867_v14, %v126_v15  ;;  %v49_v12 = vld [vmem:[#allocation5 + $0x10] sm:$0xff] }
  0x2c   :  { %5256 = vmatpush3.bf16.msra.mxu0 %v5253_v7  ;;  %5506 = vmatpush3.bf16.msra.mxu1 %v5253_v7  ;;  %v5881_v20 = vrot.slane %v5867_v14, %v191_v16  ;;  %v54_v7 = vld [vmem:[#allocation5 + $0x38] sm:$0xff]  ;;  %v256_v16 = vsub.f32 1.0, %v50_v2 }
  0x2d   :  { %5269 = vmatprep.subr.bf16.mxu0 %v5781_v9  ;;  %5257 = vmatprep.subr.bf16.mxu1 %v5781_v9 }
  0xa6   :  { %v90_v21 = vpop.permute.xlu1 %89  ;;  %v80_v22 = vpop.permute.xlu0 %79 }
  0xa7   :  { %v119_v23 = vmul.f32 %v5872_v17, %v90_v21  ;;  %v184_v24 = vmul.f32 %v5875_v18, %v90_v21  ;;  %v117_v25 = vmul.f32 %v5872_v17, %v80_v22  ;;  %v182_v26 = vmul.f32 %v5875_v18, %v80_v22  ;;  %v52_v21 = vld [vmem:[#allocation5 + $0x28] sm:$0xff] }
  0xa9   :  { %v131_v27 = vadd.f32 %v5878_v19, %v119_v23  ;;  %v195_v28 = vadd.f32 %v5881_v20, %v184_v24  ;;  %v129_v29 = vadd.f32 %v5878_v19, %v117_v25  ;;  %v193_v30 = vadd.f32 %v5881_v20, %v182_v26  ;;  %v428_v26 = vld [vmem:[#allocation7 + $0x10] sm:$0xff] }
  0xaa   :  { %v85_v31 = vpop.permute.xlu0 %84  ;;  %v75_v32 = vpop.permute.xlu1 %74  ;;  %v270_v25 = vmul.f32 %v50_v2, %v49_v12 }
  0xab   :  { %v139_v33 = vmax.f32 %v131_v27, 0.0  ;;  %v202_v34 = vmax.f32 %v195_v28, 0.0  ;;  %v137_v35 = vmax.f32 %v129_v29, 0.0  ;;  %v200_v36 = vmax.f32 %v193_v30, 0.0  ;;  %v429_v27 = vld [vmem:[#allocation7 + $0x18] sm:$0xff] }
  0xac   :  { %v118_v37 = vmul.f32 %v5872_v17, %v85_v31  ;;  %v183_v38 = vmul.f32 %v5875_v18, %v85_v31  ;;  %v116_v39 = vmul.f32 %v5872_v17, %v75_v32  ;;  %v258_v29 = vsub.f32 1.0, %v54_v7 }
  0xad   :  { %v147_v40 = vsub.f32 0.0, %v139_v33  ;;  %v209_v41 = vsub.f32 0.0, %v202_v34  ;;  %v145_v42 = vsub.f32 0.0, %v137_v35  ;;  %v207_v43 = vsub.f32 0.0, %v200_v36  ;;  %v5906_v34 = vld [vmem:[#allocation5 + $0x30] sm:$0xff] }
  0xae   :  { %v130_v44 = vadd.f32 %v5878_v19, %v118_v37  ;;  %v194_v45 = vadd.f32 %v5881_v20, %v183_v38  ;;  %v128_v46 = vadd.f32 %v5878_v19, %v116_v39  ;;  %v5782_v30 = vmov 1.0  }
  0xaf   :  { %v158_v47 = vmul.f32 1.442695, %v147_v40  ;;  %v218_v48 = vmul.f32 1.442695, %v209_v41  ;;  %v154_v49 = vmul.f32 1.442695, %v145_v42  ;;  %v5908_v36 = vpack.c.bf16 %v429_v27, %v428_v26 }
  0xb0   :  { %v214_v50 = vmul.f32 1.442695, %v207_v43  ;;  %v138_v51 = vmax.f32 %v130_v44, 0.0  ;;  %v201_v52 = vmax.f32 %v194_v45, 0.0  ;;  %v136_v53 = vmax.f32 %v128_v46, 0.0  ;;  %v430_v42 = vld [vmem:[#allocation7 + $0x20] sm:$0xff] }
  0xb1   :  { %5521 = vpow2.f32 %v158_v47  ;;  %v257_v33 = vsub.f32 1.0, %v52_v21  ;;  %v271_v38 = vmul.f32 %v52_v21, %v51_v62  ;;  %v272_v41 = vmul.f32 %v54_v7, %v5906_v34  ;;  %v431_v43 = vld [vmem:[#allocation7 + $0x28] sm:$0xff]  ;;  %v448_v47 = vld [vmem:[%s6695_s2] sm:$0xff] }
  0xb2   :  { %5523 = vpow2.f32 %v218_v48  ;;  %v146_v54 = vsub.f32 0.0, %v138_v51  ;;  %v208_v55 = vsub.f32 0.0, %v201_v52  ;;  %v144_v56 = vsub.f32 0.0, %v136_v53 }
  0xb3   :  { %5525 = vpow2.f32 %v154_v49  ;;  %v5913_v46 = vpack.c.bf16 %v431_v43, %v430_v42  ;;  %v5784_v51 = vmov 0.0   ;;  %v288_v52 = vsub.s32 0, %v5860_v11 }
  0xb4   :  { %5527 = vpow2.f32 %v214_v50  ;;  %v156_v57 = vmul.f32 1.442695, %v146_v54  ;;  %v216_v58 = vmul.f32 1.442695, %v208_v55  ;;  %v152_v59 = vmul.f32 1.442695, %v144_v56 }
  0xb5   :  { %v5935_v55 = vrot.slane %v5867_v14, %v288_v52 }
  0xb6   :  { %5529 = vpow2.f32 %v156_v57 }
  0xb7   :  { %5531 = vpow2.f32 %v216_v58 }
  0xb8   :  { %5533 = vpow2.f32 %v152_v59 }
  0xbb   :  { %v5522_v60 = vpop.eup %5521 }
  0xbc   :  { %v5524_v61 = vpop.eup %5523  ;;  %172 = vst.msk [vmem:[#allocation3 + $0x18] sm:$0xff] %vm168_vm1, %v5522_v60 }
  0xbd   :  { %v5526_v63 = vpop.eup %5525  ;;  %v237_v0 = vsub.f32 1.0, %v5524_v61  ;;  %v230_v4 = vmul.f32 %v5524_v61, %v51_v62  ;;  %v67_v62 = vld [vmem:[%s6694_s1 + $0x20] sm:$0xff] }
  0xbe   :  { %v5528_v1 = vpop.eup %5527  ;;  %170 = vst.msk [vmem:[#allocation3 + $0x8] sm:$0xff] %vm168_vm1, %v5526_v63  ;;  %v69_v63 = vld [vmem:[%s6694_s1 + $0x30] sm:$0xff] }
  0xbf   :  { %v235_v3 = vsub.f32 1.0, %v5528_v1  ;;  %v244_v5 = vmul.f32 %v237_v0, %v5854_v8  ;;  %v228_v13 = vmul.f32 %v5528_v1, %v5854_v8 }
  0xc0   :  { %v5530_v6 = vpop.eup %5529 }
  0xc1   :  { %v5532_v10 = vpop.eup %5531  ;;  %171 = vst.msk [vmem:[#allocation3 + $0x10] sm:$0xff] %vm168_vm1, %v5530_v6  ;;  %v242_v15 = vmul.f32 %v235_v3, %v5854_v8  ;;  %v251_v28 = vadd.f32 %v244_v5, %v230_v4 }
  0xc2   :  { %v5534_v22 = vpop.eup %5533  ;;  %v236_v23 = vsub.f32 1.0, %v5532_v10  ;;  %v229_v31 = vmul.f32 %v5532_v10, %v49_v12 }
  0xc3   :  { %169 = vst.msk [vmem:[#allocation3] sm:$0xff] %vm168_vm1, %v5534_v22  ;;  %v249_v24 = vadd.f32 %v242_v15, %v228_v13  ;;  %v265_v40 = vmul.f32 %v258_v29, %v251_v28 }
  0xc4   :  { %177 = vst.msk [vmem:[#allocation3] sm:$0xff] %vm168_vm1, %v5782_v30  ;;  %v243_v32 = vmul.f32 %v236_v23, %v5854_v8 }
  0xc5   :  { %v263_v35 = vmul.f32 %v256_v16, %v249_v24  ;;  %v279_v48 = vadd.f32 %v272_v41, %v265_v40 }
  0xc6   :  { %v250_v37 = vadd.f32 %v243_v32, %v229_v31 }
  0xc7   :  { %v277_v39 = vadd.f32 %v270_v25, %v263_v35  ;;  %v56_v35 = vld [vmem:[#allocation5 + $0x48] sm:$0xff] }
  0xc8   :  { %v264_v44 = vmul.f32 %v257_v33, %v250_v37  ;;  %v259_v41 = vsub.f32 1.0, %v56_v35 }
  0xc9   :  { %4782 = vmatmul.mubr.msk.f32.vlgmr.msra.gmra.mrb[0].mxu0 %vm290_vm0, %v277_v39 }
  0xca   :  { %5271 = vmatpush3.bf16.msra.mxu0 %v5908_v36  ;;  %v278_v45 = vadd.f32 %v271_v38, %v264_v44  ;;  %v5958_v38 = vld [vmem:[#allocation5 + $0x40] sm:$0xff] }
  0xcb   :  { %5272 = vmatprep.subr.bf16.mxu0 %v5781_v9  ;;  %v5919_v49 = vld [vmem:[#allocation3] sm:$0xff]  ;;  %v273_v43 = vmul.f32 %v56_v35, %v5958_v38 }
  0xcc   :  { %4784 = vmatprep.mubr.msk.f32.mxu0 %vm290_vm0, %v278_v45  ;;  %v454_v50 = vmul.f32 %v5919_v49, %v448_v47 }
  0xcd   :  { %4785 = vmatmul.mubr.msk.f32.gmra.mrb[2].mxu0 %vm290_vm0, %v279_v48 }
  0xce   :  { %5274 = vmatpush3.bf16.msra.mxu0 %v5913_v46  ;;  %4823 = vmatprep.mubr.msk.f32.mxu0 %vm5783_vm2, %v5784_v51 }
  0xcf   :  { %5281 = vmatprep.subr.bf16.mxu0 %v5781_v9 }
  0xd1   :  { %4824 = vmatmul.mubr.msk.f32.vlgmr.msra.gmra.mrb[4].mxu0 %vm168_vm1, %v454_v50 }
  0xd2   :  { %4845 = vmatprep.mubr.msk.f32.mxu0 %vm5783_vm2, %v5784_v51 }
 0x19c   :  { %v5932_v53 = vpop.f32.mrb[0].mxu0 }
 0x19d   :  { %v381_v54 = vpop.f32.mrb[1].mxu0 }
 0x19e   :  { %v382_v58 = vadd.f32 %v381_v54, %v5935_v55  ;;  %v70_v54 = vld [vmem:[%s6694_s1 + $0x38] sm:$0xff] }
 0x1a0   :  { %v5937_v56 = vpop.f32.mrb[2].mxu0 }
 0x1a1   :  { %v5939_v57 = vpop.f32.mrb[3].mxu0 }
 0x1a4   :  { %v673_v59 = vpop.f32.mrb[4].mxu0 }
 0x1a5   :  { %v677_v60 = vadd.f32 %v673_v59, %v382_v58  ;;  %v4825_v61 = vpop.f32.mrb[5].mxu0 }
 0x1a7   :  { %685 = vrot.lane.b32.xlu0 %v677_v60, %s5785_s29  ;;  %v4486_v0 = vmul.f32 -1.442695, %v677_v60 }
 0x1a9   :  { %5535 = vpow2.f32 %v4486_v0 }
 0x1ab   :  { %94 = vperm.xlu0 %5519, %v67_v62  }
 0x1af   :  { %701 = vrot.lane.b32.xlu0 %v454_v50, %s5785_s29 }
 0x1b3   :  { %104 = vperm.xlu0 %5519, %v69_v63   ;;  %v5536_v1 = vpop.eup %5535 }
 0x1b4   :  { %v681_v2 = vadd.f32 1.0, %v5536_v1 }
 0x1b6   :  { %5537 = vrcp.f32 %v681_v2 }
 0x1c0   :  { %v5538_v3 = vpop.eup %5537 }
 0x1c1   :  { %v695_v58 = vsub.f32 1.0, %v5538_v3 }
 0x219   :  { %v686_v4 = vpop.permute.xlu0 %685 }
 0x21a   :  { %v688_v5 = vmul.f32 %v5538_v3, %v686_v4 }
 0x21c   :  { %690 = vrot.lane.b32.xlu1 %v688_v5, %s5786_s9 }
 0x22a   :  { %v95_v6 = vpop.permute.xlu0 %94 }
 0x22b   :  { %v120_v7 = vmul.f32 %v5872_v17, %v95_v6  ;;  %v185_v10 = vmul.f32 %v5875_v18, %v95_v6 }
 0x22d   :  { %v132_v12 = vadd.f32 %v5878_v19, %v120_v7  ;;  %v196_v13 = vadd.f32 %v5881_v20, %v185_v10 }
 0x22e   :  { %v702_v15 = vpop.permute.xlu0 %701 }
 0x22f   :  { %v140_v16 = vmax.f32 %v132_v12, 0.0  ;;  %v203_v21 = vmax.f32 %v196_v13, 0.0 }
 0x231   :  { %v148_v22 = vsub.f32 0.0, %v140_v16  ;;  %v210_v23 = vsub.f32 0.0, %v203_v21 }
 0x232   :  { %v105_v24 = vpop.permute.xlu0 %104 }
 0x233   :  { %v160_v25 = vmul.f32 1.442695, %v148_v22  ;;  %v220_v26 = vmul.f32 1.442695, %v210_v23  ;;  %v122_v27 = vmul.f32 %v5872_v17, %v105_v24  ;;  %v187_v59 = vmul.f32 %v5875_v18, %v105_v24 }
 0x235   :  { %5539 = vpow2.f32 %v160_v25  ;;  %v134_v28 = vadd.f32 %v5878_v19, %v122_v27  ;;  %v198_v0 = vadd.f32 %v5881_v20, %v187_v59 }
 0x236   :  { %5541 = vpow2.f32 %v220_v26 }
 0x237   :  { %v142_v29 = vmax.f32 %v134_v28, 0.0  ;;  %v205_v1 = vmax.f32 %v198_v0, 0.0 }
 0x239   :  { %v150_v30 = vsub.f32 0.0, %v142_v29  ;;  %v212_v2 = vsub.f32 0.0, %v205_v1 }
 0x23b   :  { %v164_v31 = vmul.f32 1.442695, %v150_v30  ;;  %v224_v4 = vmul.f32 1.442695, %v212_v2  ;;  %v61_v2 = vld [vmem:[#allocation5 + $0x70] sm:$0xff] }
 0x23d   :  { %5543 = vpow2.f32 %v164_v31 }
 0x23f   :  { %v5540_v32 = vpop.eup %5539 }
 0x240   :  { %v5542_v33 = vpop.eup %5541  ;;  %173 = vst.msk [vmem:[#allocation3 + $0x20] sm:$0xff] %vm168_vm1, %v5540_v32 }
 0x241   :  { %v238_v37 = vsub.f32 1.0, %v5542_v33  ;;  %v231_v39 = vmul.f32 %v5542_v33, %v5906_v34  ;;  %v68_v34 = vld [vmem:[%s6694_s1 + $0x28] sm:$0xff] }
 0x243   :  { %v245_v40 = vmul.f32 %v238_v37, %v5854_v8 }
 0x245   :  { %v252_v42 = vadd.f32 %v245_v40, %v231_v39  ;;  %v60_v39 = vld [vmem:[#allocation5 + $0x68] sm:$0xff]  ;;  %v58_v40 = vld [vmem:[#allocation5 + $0x58] sm:$0xff] }
 0x247   :  { %v5544_v44 = vpop.eup %5543  ;;  %v266_v45 = vmul.f32 %v259_v41, %v252_v42 }
 0x248   :  { %175 = vst.msk [vmem:[#allocation3 + $0x30] sm:$0xff] %vm168_vm1, %v5544_v44  ;;  %v261_v44 = vsub.f32 1.0, %v60_v39 }
 0x249   :  { %v280_v47 = vadd.f32 %v273_v43, %v266_v45 }
 0x24b   :  { %4787 = vmatprep.mubr.msk.f32.mxu1 %vm290_vm0, %v280_v47 }
 0x28e   :  { %v691_v48 = vpop.permute.xlu1 %690 }
 0x28f   :  { %v693_v50 = vadd.f32 %v691_v48, %v677_v60  ;;  %v704_v60 = vmul.f32 %v5538_v3, %v702_v15 }
 0x291   :  { %5545 = vtanh.f32 %v693_v50  ;;  %v260_v50 = vsub.f32 1.0, %v58_v40 }
 0x292   :  { %5547 = vpow2.f32 %v224_v4 }
 0x29b   :  { %v5546_v52 = vpop.eup %5545 }
 0x29c   :  { %697 = vrot.lane.b32.xlu1 %v5546_v52, %s5787_s10  ;;  %v5548_v32 = vpop.eup %5547  ;;  %v59_v52 = vld [vmem:[#allocation5 + $0x60] sm:$0xff] }
 0x29d   :  { %v275_v1 = vmul.f32 %v60_v39, %v59_v52 }
 0x2a0   :  { %99 = vperm.xlu1 %5520, %v68_v34  }
 0x2a4   :  { %109 = vperm.xlu1 %5520, %v70_v54   ;;  %v62_v54 = vld [vmem:[#allocation5 + $0x78] sm:$0xff] }
 0x30e   :  { %v698_v61 = vpop.permute.xlu1 %697 }
 0x30f   :  { %v700_v62 = vmul.f32 %v698_v61, %v695_v58 }
 0x311   :  { %v5973_v63 = vadd.f32 %v704_v60, %v700_v62  ;;  %v436_v60 = vld [vmem:[#allocation7 + $0x50] sm:$0xff]  ;;  %v437_v62 = vld [vmem:[#allocation7 + $0x58] sm:$0xff] }
 0x313   :  { %707 = vrot.lane.b32.xlu0 %v5973_v63, %s5787_s10 }
 0x31f   :  { %v100_v5 = vpop.permute.xlu1 %99 }
 0x320   :  { %v121_v6 = vmul.f32 %v5872_v17, %v100_v5  ;;  %v186_v7 = vmul.f32 %v5875_v18, %v100_v5 }
 0x322   :  { %v133_v10 = vadd.f32 %v5878_v19, %v121_v6  ;;  %v197_v3 = vadd.f32 %v5881_v20, %v186_v7  ;;  %v262_v6 = vsub.f32 1.0, %v62_v54  ;;  %v5992_v7 = vpack.c.bf16 %v437_v62, %v436_v60 }
 0x323   :  { %v110_v12 = vpop.permute.xlu1 %109 }
 0x324   :  { %v141_v13 = vmax.f32 %v133_v10, 0.0  ;;  %v204_v15 = vmax.f32 %v197_v3, 0.0  ;;  %v123_v16 = vmul.f32 %v5872_v17, %v110_v12  ;;  %v188_v21 = vmul.f32 %v5875_v18, %v110_v12  ;;  %v57_v18 = vld [vmem:[#allocation5 + $0x50] sm:$0xff] }
 0x325   :  { %v240_v17 = vsub.f32 1.0, %v5548_v32  ;;  %v233_v41 = vmul.f32 %v5548_v32, %v57_v18  ;;  %v274_v59 = vmul.f32 %v58_v40, %v57_v18  ;;  %v276_v12 = vmul.f32 %v62_v54, %v61_v2  ;;  %v432_v32 = vld [vmem:[#allocation7 + $0x30] sm:$0xff]  ;;  %v434_v18 = vld [vmem:[#allocation7 + $0x40] sm:$0xff] }
 0x326   :  { %v149_v22 = vsub.f32 0.0, %v141_v13  ;;  %v211_v23 = vsub.f32 0.0, %v204_v15  ;;  %v135_v24 = vadd.f32 %v5878_v19, %v123_v16  ;;  %v199_v25 = vadd.f32 %v5881_v20, %v188_v21  ;;  %v438_v13 = vld [vmem:[#allocation7 + $0x60] sm:$0xff]  ;;  %v439_v15 = vld [vmem:[#allocation7 + $0x68] sm:$0xff] }
 0x327   :  { %v247_v37 = vmul.f32 %v240_v17, %v5854_v8 }
 0x328   :  { %v162_v26 = vmul.f32 1.442695, %v149_v22  ;;  %v222_v27 = vmul.f32 1.442695, %v211_v23  ;;  %v143_v28 = vmax.f32 %v135_v24, 0.0  ;;  %v206_v29 = vmax.f32 %v199_v25, 0.0 }
 0x329   :  { %v254_v43 = vadd.f32 %v247_v37, %v233_v41  ;;  %v5997_v22 = vpack.c.bf16 %v439_v15, %v438_v13  ;;  %v444_v24 = vld [vmem:[#allocation7 + $0x90] sm:$0xff]  ;;  %v445_v25 = vld [vmem:[#allocation7 + $0x98] sm:$0xff]  ;;  %v435_v37 = vld [vmem:[#allocation7 + $0x48] sm:$0xff] }
 0x32a   :  { %5549 = vpow2.f32 %v162_v26  ;;  %v151_v30 = vsub.f32 0.0, %v143_v28  ;;  %v213_v31 = vsub.f32 0.0, %v206_v29  ;;  %v446_v28 = vld [vmem:[#allocation7 + $0xa0] sm:$0xff]  ;;  %v447_v29 = vld [vmem:[#allocation7 + $0xa8] sm:$0xff] }
 0x32b   :  { %5551 = vpow2.f32 %v222_v27  ;;  %v268_v0 = vmul.f32 %v261_v44, %v254_v43  ;;  %v6008_v27 = vpack.c.bf16 %v445_v25, %v444_v24  ;;  %v928_v13 = vld [vmem:[#allocation3 + $0x8] sm:$0xff] }
 0x32c   :  { %v166_v33 = vmul.f32 1.442695, %v151_v30  ;;  %v226_v35 = vmul.f32 1.442695, %v213_v31  ;;  %v6013_v30 = vpack.c.bf16 %v447_v29, %v446_v28  ;;  %v4482_v31 = vld [vmem:[%s6695_s2 + $0x10] sm:$0xff] }
 0x32d   :  { %v282_v16 = vadd.f32 %v275_v1, %v268_v0 }
 0x32e   :  { %5553 = vpow2.f32 %v166_v33  ;;  %v433_v33 = vld [vmem:[#allocation7 + $0x38] sm:$0xff] }
 0x32f   :  { %5555 = vpow2.f32 %v226_v35  ;;  %v6022_v35 = vmul.f32 %v4482_v31, %v5919_v49  ;;  %v6025_v17 = vpack.c.bf16 %v433_v33, %v432_v32  ;;  %v891_v32 = vsub.s32 2, %v5860_v11 }
 0x331   :  { %v6110_v33 = vrot.slane %v5867_v14, %v891_v32 }
 0x334   :  { %v5550_v19 = vpop.eup %5549 }
 0x335   :  { %v5552_v20 = vpop.eup %5551  ;;  %174 = vst.msk [vmem:[#allocation3 + $0x28] sm:$0xff] %vm168_vm1, %v5550_v19  ;;  %v6031_v19 = vpack.c.bf16 %v435_v37, %v434_v18 }
 0x336   :  { %v239_v42 = vsub.f32 1.0, %v5552_v20  ;;  %v232_v47 = vmul.f32 %v5552_v20, %v5958_v38 }
 0x338   :  { %v5554_v45 = vpop.eup %5553  ;;  %v246_v48 = vmul.f32 %v239_v42, %v5854_v8 }
 0x339   :  { %v5556_v34 = vpop.eup %5555  ;;  %176 = vst.msk [vmem:[#allocation3 + $0x38] sm:$0xff] %vm168_vm1, %v5554_v45 }
 0x33a   :  { %v253_v58 = vadd.f32 %v246_v48, %v232_v47  ;;  %v241_v61 = vsub.f32 1.0, %v5556_v34  ;;  %v234_v5 = vmul.f32 %v5556_v34, %v59_v52  ;;  %v783_v47 = vsub.s32 1, %v5860_v11 }
 0x33c   :  { %v267_v4 = vmul.f32 %v260_v50, %v253_v58  ;;  %v248_v38 = vmul.f32 %v241_v61, %v5854_v8  ;;  %v4481_v8 = vld [vmem:[%s6695_s2 + $0x8] sm:$0xff]  ;;  %v6057_v48 = vrot.slane %v5867_v14, %v783_v47  ;;  %v387_v47 = vadd.f32 %v5932_v53, %v5935_v55 }
 0x33d   :  { %v455_v26 = vmul.f32 %v4481_v8, %v5919_v49 }
 0x33e   :  { %v281_v10 = vadd.f32 %v274_v59, %v267_v4  ;;  %v255_v3 = vadd.f32 %v248_v38, %v234_v5  ;;  %v440_v4 = vld [vmem:[#allocation7 + $0x70] sm:$0xff]  ;;  %v441_v5 = vld [vmem:[#allocation7 + $0x78] sm:$0xff]  ;;  %v442_v38 = vld [vmem:[#allocation7 + $0x80] sm:$0xff] }
 0x340   :  { %4788 = vmatmul.mubr.msk.f32.vlgmr.msra.gmra.mrb[0].mxu1 %vm290_vm0, %v281_v10  ;;  %v269_v21 = vmul.f32 %v262_v6, %v255_v3  ;;  %v6063_v6 = vpack.c.bf16 %v441_v5, %v440_v4  ;;  %v443_v10 = vld [vmem:[#allocation7 + $0x88] sm:$0xff] }
 0x341   :  { %4790 = vmatprep.mubr.msk.f32.mxu1 %vm290_vm0, %v282_v16  ;;  %5259 = vmatpush3.bf16.msra.mxu1 %v5992_v7  ;;  %v6066_v3 = vpack.c.bf16 %v443_v10, %v442_v38 }
 0x342   :  { %v283_v23 = vadd.f32 %v276_v12, %v269_v21  ;;  %5260 = vmatprep.subr.bf16.mxu1 %v5781_v9  ;;  %5283 = vmatpush3.bf16.msra.mxu0 %v6063_v6 }
 0x343   :  { %5284 = vmatprep.subr.bf16.mxu0 %v5781_v9 }
 0x344   :  { %4791 = vmatmul.mubr.msk.f32.gmra.mrb[2].mxu1 %vm290_vm0, %v283_v23 }
 0x345   :  { %5262 = vmatpush3.bf16.msra.mxu1 %v5997_v22  ;;  %4801 = vmatprep.mubr.msk.f32.mxu1 %vm5783_vm2, %v5784_v51 }
 0x346   :  { %5263 = vmatprep.subr.bf16.mxu1 %v5781_v9  ;;  %5286 = vmatpush3.bf16.msra.mxu0 %v6066_v3 }
 0x347   :  { %5293 = vmatprep.subr.bf16.mxu0 %v5781_v9 }
 0x348   :  { %4802 = vmatmul.mubr.msk.f32.vlgmr.msra.gmra.mrb[4].mxu1 %vm168_vm1, %v455_v26 }
 0x349   :  { %5265 = vmatpush3.bf16.msra.mxu1 %v6008_v27  ;;  %4812 = vmatprep.mubr.msk.f32.mxu1 %vm5783_vm2, %v5784_v51 }
 0x34a   :  { %5266 = vmatprep.subr.bf16.mxu1 %v5781_v9 }
 0x34d   :  { %5268 = vmatpush3.bf16.msra.mxu1 %v6013_v30 }
 0x34e   :  { %5275 = vmatprep.subr.bf16.mxu1 %v5781_v9 }
 0x350   :  { %4813 = vmatmul.mubr.msk.f32.vlgmr.msra.gmra.mrb[6].mxu1 %vm168_vm1, %v6022_v35 }
 0x351   :  { %5277 = vmatpush3.bf16.msra.mxu1 %v6025_v17  ;;  %4834 = vmatprep.mubr.msk.f32.mxu1 %vm5783_vm2, %v5784_v51 }
 0x352   :  { %5278 = vmatprep.subr.bf16.mxu1 %v5781_v9 }
 0x355   :  { %5280 = vmatpush3.bf16.msra.mxu1 %v6031_v19 }
 0x356   :  { %5287 = vmatprep.subr.bf16.mxu1 %v5781_v9 }
 0x385   :  { %v708_v49 = vpop.permute.xlu0 %707 }
 0x386   :  { %4835 = vmatmul.mubr.msk.f32.vlgmr.msra.gmra.mrb[8].mxu1 %vm168_vm1, %v708_v49 }
 0x387   :  { %5289 = vmatpush3.bf16.msra.mxu1 %v5992_v7  ;;  %4856 = vmatprep.mubr.msk.f32.mxu1 %vm5783_vm2, %v5784_v51 }
 0x388   :  { %5290 = vmatprep.subr.bf16.mxu1 %v5781_v9 }
 0x38b   :  { %5292 = vmatpush3.bf16.msra.mxu1 %v5997_v22 }
 0x38c   :  { %5299 = vmatprep.subr.bf16.mxu1 %v5781_v9 }
 0x413   :  { %v6045_v39 = vpop.f32.mrb[0].mxu1 }
 0x414   :  { %v6047_v20 = vpop.f32.mrb[1].mxu1 }
 0x417   :  { %v6049_v40 = vpop.f32.mrb[2].mxu1 }
 0x418   :  { %v6051_v41 = vpop.f32.mrb[3].mxu1 }
 0x41b   :  { %v526_v42 = vpop.f32.mrb[4].mxu1 }
 0x41c   :  { %v4803_v43 = vpop.f32.mrb[5].mxu1 }
 0x423   :  { %v6053_v44 = vpop.f32.mrb[6].mxu1 }
 0x424   :  { %v4814_v45 = vpop.f32.mrb[7].mxu1 }
 0x459   :  { %v777_v50 = vpop.f32.mrb[8].mxu1 }
 0x45a   :  { %v778_v52 = vadd.f32 %v777_v50, %v526_v42  ;;  %v4836_v34 = vpop.f32.mrb[9].mxu1 }
 0x45c   :  { %v785_v54 = vadd.f32 %v6057_v48, %v778_v52 }
 0x45e   :  { %793 = vrot.lane.b32.xlu1 %v785_v54, %s5785_s29  ;;  %v4488_v58 = vmul.f32 -1.442695, %v785_v54 }
 0x460   :  { %5557 = vpow2.f32 %v4488_v58 }
 0x46a   :  { %v5558_v59 = vpop.eup %5557 }
 0x46b   :  { %v789_v61 = vadd.f32 1.0, %v5558_v59 }
 0x46d   :  { %5559 = vrcp.f32 %v789_v61 }
 0x477   :  { %v5560_v60 = vpop.eup %5559 }
 0x478   :  { %v803_v16 = vsub.f32 1.0, %v5560_v60 }
 0x4d0   :  { %v794_v62 = vpop.permute.xlu1 %793 }
 0x4d1   :  { %v796_v0 = vmul.f32 %v5560_v60, %v794_v62 }
 0x4d3   :  { %798 = vrot.lane.b32.xlu0 %v796_v0, %s5786_s9 }
 0x4d7   :  { %809 = vrot.lane.b32.xlu0 %v455_v26, %s5785_s29 }
 0x545   :  { %v799_v1 = vpop.permute.xlu0 %798 }
 0x546   :  { %v801_v2 = vadd.f32 %v799_v1, %v785_v54 }
 0x548   :  { %5561 = vtanh.f32 %v801_v2 }
 0x549   :  { %v810_v15 = vpop.permute.xlu0 %809 }
 0x54a   :  { %v812_v8 = vmul.f32 %v5560_v60, %v810_v15 }
 0x552   :  { %v5562_v12 = vpop.eup %5561 }
 0x553   :  { %805 = vrot.lane.b32.xlu1 %v5562_v12, %s5787_s10 }
 0x557   :  { %930 = vrot.lane.b32.xlu1 %v928_v13, %s5785_s29 }
 0x5c5   :  { %v806_v21 = vpop.permute.xlu1 %805 }
 0x5c6   :  { %v808_v23 = vmul.f32 %v806_v21, %v803_v16 }
 0x5c8   :  { %v813_v24 = vadd.f32 %v812_v8, %v808_v23 }
 0x5c9   :  { %v6073_v25 = vpop.permute.xlu1 %930 }
 0x5ca   :  { %815 = vrot.lane.b32.xlu0 %v813_v24, %s5787_s10  ;;  %v6077_v26 = vmul.f32 %v6073_v25, %v813_v24  ;;  %v6083_v28 = vmul.f32 %v6073_v25, %v5973_v63 }
 0x5cc   :  { %937 = vrot.lane.b32.xlu1 %v6077_v26, %s5787_s10 }
 0x5ce   :  { %1089 = vrot.lane.b32.xlu0 %v6083_v28, %s5787_s10 }
 0x63c   :  { %v816_v29 = vpop.permute.xlu0 %815 }
 0x63d   :  { %4846 = vmatmul.mubr.msk.f32.vlgmr.msra.gmra.mrb[6].mxu0 %vm168_vm1, %v816_v29 }
 0x63e   :  { %v938_v31 = vpop.permute.xlu1 %937  ;;  %5295 = vmatpush3.bf16.msra.mxu0 %v6008_v27  ;;  %4867 = vmatprep.mubr.msk.f32.mxu0 %vm5783_vm2, %v5784_v51 }
 0x63f   :  { %4857 = vmatmul.mubr.msk.f32.vlgmr.msra.gmra.mrb[10].mxu1 %vm168_vm1, %v938_v31  ;;  %5296 = vmatprep.subr.bf16.mxu0 %v5781_v9 }
 0x640   :  { %5301 = vmatpush3.bf16.msra.mxu1 %v5908_v36  ;;  %4878 = vmatprep.mubr.msk.f32.mxu1 %vm5783_vm2, %v5784_v51  ;;  %v1090_v63 = vpop.permute.xlu0 %1089 }
 0x641   :  { %5302 = vmatprep.subr.bf16.mxu1 %v5781_v9 }
 0x642   :  { %5298 = vmatpush3.bf16.msra.mxu0 %v6013_v30 }
 0x643   :  { %5305 = vmatprep.subr.bf16.mxu0 %v5781_v9 }
 0x644   :  { %5304 = vmatpush3.bf16.msra.mxu1 %v5913_v46 }
 0x645   :  { %5311 = vmatprep.subr.bf16.mxu1 %v5781_v9 }
 0x647   :  { %4879 = vmatmul.mubr.msk.f32.vlgmr.msra.gmra.mrb[12].mxu1 %vm168_vm1, %v1090_v63 }
 0x648   :  { %5313 = vmatpush3.bf16.msra.mxu1 %v6063_v6  ;;  %4900 = vmatprep.mubr.msk.f32.mxu1 %vm5783_vm2, %v5784_v51 }
 0x649   :  { %5314 = vmatprep.subr.bf16.mxu1 %v5781_v9 }
 0x64c   :  { %5316 = vmatpush3.bf16.msra.mxu1 %v6066_v3 }
 0x64d   :  { %5323 = vmatprep.subr.bf16.mxu1 %v5781_v9 }
 0x710   :  { %v885_v18 = vpop.f32.mrb[6].mxu0 }
 0x711   :  { %v886_v37 = vadd.f32 %v885_v18, %v6053_v44  ;;  %v4847_v49 = vpop.f32.mrb[7].mxu0 }
 0x712   :  { %v6113_v42 = vpop.f32.mrb[10].mxu1 }
 0x713   :  { %v893_v43 = vadd.f32 %v6110_v33, %v886_v37  ;;  %v4858_v45 = vpop.f32.mrb[11].mxu1 }
 0x715   :  { %901 = vrot.lane.b32.xlu1 %v893_v43, %s5785_s29  ;;  %v4490_v14 = vmul.f32 -1.442695, %v893_v43 }
 0x717   :  { %5563 = vpow2.f32 %v4490_v14 }
 0x71a   :  { %v1159_v50 = vpop.f32.mrb[12].mxu1 }
 0x71b   :  { %v1163_v52 = vadd.f32 %v1159_v50, %v387_v47  ;;  %v4880_v34 = vpop.f32.mrb[13].mxu1 }
 0x71d   :  { %1171 = vrot.lane.b32.xlu0 %v1163_v52, %s5785_s29  ;;  %v4494_v54 = vmul.f32 -1.442695, %v1163_v52 }
 0x71f   :  { %5565 = vpow2.f32 %v4494_v54 }
 0x721   :  { %v5564_v44 = vpop.eup %5563 }
 0x722   :  { %v897_v58 = vadd.f32 1.0, %v5564_v44 }
 0x724   :  { %5567 = vrcp.f32 %v897_v58 }
 0x729   :  { %v5566_v59 = vpop.eup %5565 }
 0x72a   :  { %v1167_v61 = vadd.f32 1.0, %v5566_v59  ;;  %v1398_v59 = vld [vmem:[#allocation3 + $0x10] sm:$0xff] }
 0x72c   :  { %5569 = vrcp.f32 %v1167_v61 }
 0x72e   :  { %v5568_v60 = vpop.eup %5567 }
 0x72f   :  { %v911_v16 = vsub.f32 1.0, %v5568_v60 }
 0x736   :  { %v5570_v53 = vpop.eup %5569 }
 0x737   :  { %v1181_v29 = vsub.f32 1.0, %v5570_v53  ;;  %v1187_v63 = vmul.f32 %v5570_v53, %v6083_v28 }
 0x787   :  { %v902_v62 = vpop.permute.xlu1 %901 }
 0x788   :  { %v904_v0 = vmul.f32 %v5568_v60, %v902_v62 }
 0x78a   :  { %906 = vrot.lane.b32.xlu1 %v904_v0, %s5786_s9 }
 0x78f   :  { %v1172_v1 = vpop.permute.xlu0 %1171 }
 0x790   :  { %v1174_v2 = vmul.f32 %v5570_v53, %v1172_v1 }
 0x792   :  { %1176 = vrot.lane.b32.xlu0 %v1174_v2, %s5786_s9 }
 0x796   :  { %917 = vrot.lane.b32.xlu0 %v6022_v35, %s5785_s29 }
 0x7fc   :  { %v907_v4 = vpop.permute.xlu1 %906 }
 0x7fd   :  { %v909_v5 = vadd.f32 %v907_v4, %v893_v43 }
 0x7ff   :  { %5571 = vtanh.f32 %v909_v5 }
 0x804   :  { %v1177_v38 = vpop.permute.xlu0 %1176 }
 0x805   :  { %v1179_v10 = vadd.f32 %v1177_v38, %v1163_v52 }
 0x807   :  { %5573 = vtanh.f32 %v1179_v10 }
 0x808   :  { %v918_v15 = vpop.permute.xlu0 %917 }
 0x809   :  { %v5572_v12 = vpop.eup %5571  ;;  %v920_v8 = vmul.f32 %v5568_v60, %v918_v15 }
 0x80a   :  { %913 = vrot.lane.b32.xlu1 %v5572_v12, %s5787_s10 }
 0x811   :  { %v5574_v13 = vpop.eup %5573 }
 0x812   :  { %1183 = vrot.lane.b32.xlu1 %v5574_v13, %s5787_s10 }
 0x87c   :  { %v914_v21 = vpop.permute.xlu1 %913 }
 0x87d   :  { %v916_v23 = vmul.f32 %v914_v21, %v911_v16 }
 0x87f   :  { %v6126_v24 = vadd.f32 %v920_v8, %v916_v23 }
 0x881   :  { %v6130_v35 = vmul.f32 %v6073_v25, %v6126_v24 }
 0x883   :  { %1012 = vrot.lane.b32.xlu0 %v6130_v35, %s5787_s10 }
 0x884   :  { %v1184_v31 = vpop.permute.xlu1 %1183 }
 0x885   :  { %v1186_v32 = vmul.f32 %v1184_v31, %v1181_v29  ;;  %v392_v29 = vadd.f32 %v5939_v57, %v5935_v55 }
 0x887   :  { %v1188_v18 = vadd.f32 %v1187_v63, %v1186_v32 }
 0x889   :  { %1190 = vrot.lane.b32.xlu1 %v1188_v18, %s5787_s10 }
 0x8f5   :  { %v1013_v37 = vpop.permute.xlu0 %1012 }
 0x8f6   :  { %4868 = vmatmul.mubr.msk.f32.vlgmr.msra.gmra.mrb[8].mxu0 %vm168_vm1, %v1013_v37 }
 0x8f7   :  { %5307 = vmatpush3.bf16.msra.mxu0 %v6025_v17  ;;  %4889 = vmatprep.mubr.msk.f32.mxu0 %vm5783_vm2, %v5784_v51 }
 0x8f8   :  { %5308 = vmatprep.subr.bf16.mxu0 %v5781_v9 }
 0x8fb   :  { %5310 = vmatpush3.bf16.msra.mxu0 %v6031_v19  ;;  %v1191_v25 = vpop.permute.xlu1 %1190 }
 0x8fc   :  { %5317 = vmatprep.subr.bf16.mxu0 %v5781_v9 }
 0x8fe   :  { %4890 = vmatmul.mubr.msk.f32.vlgmr.msra.gmra.mrb[10].mxu0 %vm168_vm1, %v1191_v25 }
 0x8ff   :  { %5319 = vmatpush3.bf16.msra.mxu0 %v5992_v7  ;;  %4911 = vmatprep.mubr.msk.f32.mxu0 %vm5783_vm2, %v5784_v51 }
 0x900   :  { %5320 = vmatprep.subr.bf16.mxu0 %v5781_v9 }
 0x903   :  { %5322 = vmatpush3.bf16.msra.mxu0 %v5997_v22 }
 0x904   :  { %5329 = vmatprep.subr.bf16.mxu0 %v5781_v9 }
 0x9c9   :  { %v1082_v28 = vpop.f32.mrb[8].mxu0 }
 0x9ca   :  { %v4869_v49 = vpop.f32.mrb[9].mxu0 }
 0x9d1   :  { %v1260_v43 = vpop.f32.mrb[10].mxu0 }
 0x9d2   :  { %v1261_v45 = vadd.f32 %v1260_v43, %v6113_v42  ;;  %v4891_v47 = vpop.f32.mrb[11].mxu0 }
 0x9d4   :  { %v1264_v50 = vadd.f32 %v1261_v45, %v6057_v48 }
 0x9d6   :  { %1272 = vrot.lane.b32.xlu0 %v1264_v50, %s5785_s29  ;;  %v4496_v52 = vmul.f32 -1.442695, %v1264_v50 }
 0x9d8   :  { %5575 = vpow2.f32 %v4496_v52 }
 0x9e2   :  { %v5576_v34 = vpop.eup %5575 }
 0x9e3   :  { %v1268_v14 = vadd.f32 1.0, %v5576_v34 }
 0x9e5   :  { %5577 = vrcp.f32 %v1268_v14 }
 0x9ef   :  { %v5578_v54 = vpop.eup %5577 }
 0x9f0   :  { %v1282_v62 = vsub.f32 1.0, %v5578_v54  ;;  %v1288_v53 = vmul.f32 %v5578_v54, %v6077_v26 }
 0xa48   :  { %v1273_v44 = vpop.permute.xlu0 %1272 }
 0xa49   :  { %v1275_v58 = vmul.f32 %v5578_v54, %v1273_v44 }
 0xa4b   :  { %1277 = vrot.lane.b32.xlu1 %v1275_v58, %s5786_s9 }
 0xa4f   :  { %1400 = vrot.lane.b32.xlu1 %v1398_v59, %s5785_s29 }
 0xabd   :  { %v1278_v61 = vpop.permute.xlu1 %1277 }
 0xabe   :  { %v1280_v42 = vadd.f32 %v1278_v61, %v1264_v50 }
 0xac0   :  { %5579 = vtanh.f32 %v1280_v42 }
 0xac1   :  { %v6157_v4 = vpop.permute.xlu1 %1400 }
 0xac2   :  { %v6166_v38 = vmul.f32 %v6157_v4, %v1188_v18 }
 0xaca   :  { %v5580_v60 = vpop.eup %5579 }
 0xacb   :  { %1284 = vrot.lane.b32.xlu0 %v5580_v60, %s5787_s10 }
 0xb3d   :  { %v1285_v0 = vpop.permute.xlu0 %1284 }
 0xb3e   :  { %v1287_v1 = vmul.f32 %v1285_v0, %v1282_v62 }
 0xb40   :  { %v1289_v2 = vadd.f32 %v1288_v53, %v1287_v1 }
 0xb42   :  { %1291 = vrot.lane.b32.xlu0 %v1289_v2, %s5787_s10  ;;  %v6161_v5 = vmul.f32 %v6157_v4, %v1289_v2 }
 0xb44   :  { %1407 = vrot.lane.b32.xlu1 %v6161_v5, %s5787_s10 }
 0xb46   :  { %1559 = vrot.lane.b32.xlu0 %v6166_v38, %s5787_s10 }
 0xbb4   :  { %v1292_v10 = vpop.permute.xlu0 %1291 }
 0xbb5   :  { %4901 = vmatmul.mubr.msk.f32.vlgmr.msra.gmra.mrb[14].mxu1 %vm168_vm1, %v1292_v10 }
 0xbb6   :  { %v1408_v26 = vpop.permute.xlu1 %1407  ;;  %5325 = vmatpush3.bf16.msra.mxu1 %v6008_v27  ;;  %4922 = vmatprep.mubr.msk.f32.mxu1 %vm5783_vm2, %v5784_v51 }
 0xbb7   :  { %4912 = vmatmul.mubr.msk.f32.vlgmr.msra.gmra.mrb[12].mxu0 %vm168_vm1, %v1408_v26  ;;  %5326 = vmatprep.subr.bf16.mxu1 %v5781_v9 }
 0xbb8   :  { %5331 = vmatpush3.bf16.msra.mxu0 %v5908_v36  ;;  %4933 = vmatprep.mubr.msk.f32.mxu0 %vm5783_vm2, %v5784_v51  ;;  %v1560_v12 = vpop.permute.xlu0 %1559 }
 0xbb9   :  { %5332 = vmatprep.subr.bf16.mxu0 %v5781_v9 }
 0xbba   :  { %5328 = vmatpush3.bf16.msra.mxu1 %v6013_v30 }
 0xbbb   :  { %5335 = vmatprep.subr.bf16.mxu1 %v5781_v9 }
 0xbbc   :  { %5334 = vmatpush3.bf16.msra.mxu0 %v5913_v46 }
 0xbbd   :  { %5341 = vmatprep.subr.bf16.mxu0 %v5781_v9 }
 0xbbf   :  { %4934 = vmatmul.mubr.msk.f32.vlgmr.msra.gmra.mrb[14].mxu0 %vm168_vm1, %v1560_v12 }
 0xbc0   :  { %5343 = vmatpush3.bf16.msra.mxu0 %v6063_v6  ;;  %4955 = vmatprep.mubr.msk.f32.mxu0 %vm5783_vm2, %v5784_v51 }
 0xbc1   :  { %5344 = vmatprep.subr.bf16.mxu0 %v5781_v9 }
 0xbc4   :  { %5346 = vmatpush3.bf16.msra.mxu0 %v6066_v3 }
 0xbc5   :  { %5353 = vmatprep.subr.bf16.mxu0 %v5781_v9 }
 0xc88   :  { %v1361_v13 = vpop.f32.mrb[14].mxu1 }
 0xc89   :  { %v1362_v15 = vadd.f32 %v1361_v13, %v1082_v28  ;;  %v4902_v16 = vpop.f32.mrb[15].mxu1 }
 0xc8a   :  { %v6191_v21 = vpop.f32.mrb[12].mxu0 }
 0xc8b   :  { %v1365_v8 = vadd.f32 %v1362_v15, %v6110_v33  ;;  %v4913_v23 = vpop.f32.mrb[13].mxu0 }
 0xc8d   :  { %1373 = vrot.lane.b32.xlu1 %v1365_v8, %s5785_s29  ;;  %v4498_v18 = vmul.f32 -1.442695, %v1365_v8 }
 0xc8f   :  { %5581 = vpow2.f32 %v4498_v18 }
 0xc92   :  { %v1629_v31 = vpop.f32.mrb[14].mxu0 }
 0xc93   :  { %v1633_v63 = vadd.f32 %v1629_v31, %v392_v29  ;;  %v4935_v32 = vpop.f32.mrb[15].mxu0 }
 0xc95   :  { %1641 = vrot.lane.b32.xlu0 %v1633_v63, %s5785_s29  ;;  %v4502_v37 = vmul.f32 -1.442695, %v1633_v63 }
 0xc97   :  { %5583 = vpow2.f32 %v4502_v37 }
 0xc99   :  { %v5582_v25 = vpop.eup %5581 }
 0xc9a   :  { %v1369_v28 = vadd.f32 1.0, %v5582_v25 }
 0xc9c   :  { %5585 = vrcp.f32 %v1369_v28  ;;  %v1868_v28 = vld [vmem:[#allocation3 + $0x18] sm:$0xff] }
 0xca1   :  { %v5584_v49 = vpop.eup %5583 }
 0xca2   :  { %v1637_v43 = vadd.f32 1.0, %v5584_v49 }
 0xca4   :  { %5587 = vrcp.f32 %v1637_v43 }
 0xca6   :  { %v5586_v45 = vpop.eup %5585 }
 0xca7   :  { %v1383_v42 = vsub.f32 1.0, %v5586_v45  ;;  %v1389_v62 = vmul.f32 %v5586_v45, %v6130_v35 }
 0xcae   :  { %v5588_v57 = vpop.eup %5587 }
 0xcaf   :  { %v1651_v2 = vsub.f32 1.0, %v5588_v57  ;;  %v1657_v26 = vmul.f32 %v5588_v57, %v6166_v38 }
 0xcff   :  { %v1374_v47 = vpop.permute.xlu1 %1373 }
 0xd00   :  { %v1376_v50 = vmul.f32 %v5586_v45, %v1374_v47 }
 0xd02   :  { %1378 = vrot.lane.b32.xlu1 %v1376_v50, %s5786_s9 }
 0xd07   :  { %v1642_v52 = vpop.permute.xlu0 %1641 }
 0xd08   :  { %v1644_v34 = vmul.f32 %v5588_v57, %v1642_v52 }
 0xd0a   :  { %1646 = vrot.lane.b32.xlu0 %v1644_v34, %s5786_s9 }
 0xd74   :  { %v1379_v14 = vpop.permute.xlu1 %1378 }
 0xd75   :  { %v1381_v54 = vadd.f32 %v1379_v14, %v1365_v8 }
 0xd77   :  { %5589 = vtanh.f32 %v1381_v54 }
 0xd7c   :  { %v1647_v44 = vpop.permute.xlu0 %1646 }
 0xd7d   :  { %v1649_v58 = vadd.f32 %v1647_v44, %v1633_v63 }
 0xd7f   :  { %5591 = vtanh.f32 %v1649_v58 }
 0xd81   :  { %v5590_v59 = vpop.eup %5589 }
 0xd82   :  { %1385 = vrot.lane.b32.xlu1 %v5590_v59, %s5787_s10 }
 0xd89   :  { %v5592_v61 = vpop.eup %5591 }
 0xd8a   :  { %1653 = vrot.lane.b32.xlu0 %v5592_v61, %s5787_s10 }
 0xdf4   :  { %v1386_v60 = vpop.permute.xlu1 %1385 }
 0xdf5   :  { %v1388_v0 = vmul.f32 %v1386_v60, %v1383_v42 }
 0xdf7   :  { %v6203_v53 = vadd.f32 %v1389_v62, %v1388_v0 }
 0xdf9   :  { %v6207_v1 = vmul.f32 %v6157_v4, %v6203_v53 }
 0xdfb   :  { %1482 = vrot.lane.b32.xlu1 %v6207_v1, %s5787_s10 }
 0xdfc   :  { %v1654_v10 = vpop.permute.xlu0 %1653 }
 0xdfd   :  { %v1656_v12 = vmul.f32 %v1654_v10, %v1651_v2  ;;  %v397_v2 = vadd.f32 %v5937_v56, %v5935_v55 }
 0xdff   :  { %v1658_v13 = vadd.f32 %v1657_v26, %v1656_v12 }
 0xe01   :  { %1660 = vrot.lane.b32.xlu0 %v1658_v13, %s5787_s10 }
 0xe6d   :  { %v1483_v15 = vpop.permute.xlu1 %1482 }
 0xe6e   :  { %4923 = vmatmul.mubr.msk.f32.vlgmr.msra.gmra.mrb[16].mxu1 %vm168_vm1, %v1483_v15 }
 0xe6f   :  { %5337 = vmatpush3.bf16.msra.mxu1 %v6025_v17  ;;  %4944 = vmatprep.mubr.msk.f32.mxu1 %vm5783_vm2, %v5784_v51 }
 0xe70   :  { %5338 = vmatprep.subr.bf16.mxu1 %v5781_v9 }
 0xe73   :  { %5340 = vmatpush3.bf16.msra.mxu1 %v6031_v19  ;;  %v1661_v35 = vpop.permute.xlu0 %1660 }
 0xe74   :  { %5347 = vmatprep.subr.bf16.mxu1 %v5781_v9 }
 0xe76   :  { %4945 = vmatmul.mubr.msk.f32.vlgmr.msra.gmra.mrb[18].mxu1 %vm168_vm1, %v1661_v35 }
 0xe77   :  { %5349 = vmatpush3.bf16.msra.mxu1 %v5992_v7  ;;  %4966 = vmatprep.mubr.msk.f32.mxu1 %vm5783_vm2, %v5784_v51 }
 0xe78   :  { %5350 = vmatprep.subr.bf16.mxu1 %v5781_v9 }
 0xe7b   :  { %5352 = vmatpush3.bf16.msra.mxu1 %v5997_v22 }
 0xe7c   :  { %5359 = vmatprep.subr.bf16.mxu1 %v5781_v9 }
 0xf41   :  { %v1552_v4 = vpop.f32.mrb[16].mxu1 }
 0xf42   :  { %v4924_v38 = vpop.f32.mrb[17].mxu1 }
 0xf49   :  { %v1730_v16 = vpop.f32.mrb[18].mxu1 }
 0xf4a   :  { %v1731_v8 = vadd.f32 %v1730_v16, %v6191_v21  ;;  %v4946_v23 = vpop.f32.mrb[19].mxu1 }
 0xf4c   :  { %v1734_v29 = vadd.f32 %v1731_v8, %v6057_v48 }
 0xf4e   :  { %1742 = vrot.lane.b32.xlu1 %v1734_v29, %s5785_s29  ;;  %v4504_v31 = vmul.f32 -1.442695, %v1734_v29 }
 0xf50   :  { %5593 = vpow2.f32 %v4504_v31 }
 0xf5a   :  { %v5594_v63 = vpop.eup %5593 }
 0xf5b   :  { %v1738_v32 = vadd.f32 1.0, %v5594_v63 }
 0xf5d   :  { %5595 = vrcp.f32 %v1738_v32 }
 0xf67   :  { %v5596_v18 = vpop.eup %5595 }
 0xf68   :  { %v1752_v45 = vsub.f32 1.0, %v5596_v18  ;;  %v1758_v50 = vmul.f32 %v5596_v18, %v6161_v5 }
 0xfc0   :  { %v1743_v37 = vpop.permute.xlu1 %1742 }
 0xfc1   :  { %v1745_v25 = vmul.f32 %v5596_v18, %v1743_v37 }
 0xfc3   :  { %1747 = vrot.lane.b32.xlu0 %v1745_v25, %s5786_s9 }
 0xfc7   :  { %1870 = vrot.lane.b32.xlu0 %v1868_v28, %s5785_s29 }
0x1035   :  { %v1748_v49 = vpop.permute.xlu0 %1747 }
0x1036   :  { %v1750_v21 = vadd.f32 %v1748_v49, %v1734_v29 }
0x1038   :  { %5597 = vtanh.f32 %v1750_v21 }
0x1039   :  { %v6234_v34 = vpop.permute.xlu0 %1870 }
0x103a   :  { %v6243_v54 = vmul.f32 %v6234_v34, %v1658_v13 }
0x1042   :  { %v5598_v43 = vpop.eup %5597 }
0x1043   :  { %1754 = vrot.lane.b32.xlu1 %v5598_v43, %s5787_s10 }
0x10b5   :  { %v1755_v47 = vpop.permute.xlu1 %1754 }
0x10b6   :  { %v1757_v57 = vmul.f32 %v1755_v47, %v1752_v45 }
0x10b8   :  { %v1759_v52 = vadd.f32 %v1758_v50, %v1757_v57 }
0x10ba   :  { %1761 = vrot.lane.b32.xlu1 %v1759_v52, %s5787_s10  ;;  %v6238_v14 = vmul.f32 %v6234_v34, %v1759_v52 }
0x10bc   :  { %1877 = vrot.lane.b32.xlu0 %v6238_v14, %s5787_s10 }
0x10be   :  { %2029 = vrot.lane.b32.xlu1 %v6243_v54, %s5787_s10 }
0x112c   :  { %v1762_v44 = vpop.permute.xlu1 %1761 }
0x112d   :  { %4956 = vmatmul.mubr.msk.f32.vlgmr.msra.gmra.mrb[16].mxu0 %vm168_vm1, %v1762_v44 }
0x112e   :  { %v1878_v5 = vpop.permute.xlu0 %1877  ;;  %5355 = vmatpush3.bf16.msra.mxu0 %v6008_v27  ;;  %4977 = vmatprep.mubr.msk.f32.mxu0 %vm5783_vm2, %v5784_v51 }
0x112f   :  { %4967 = vmatmul.mubr.msk.f32.vlgmr.msra.gmra.mrb[20].mxu1 %vm168_vm1, %v1878_v5  ;;  %5356 = vmatprep.subr.bf16.mxu0 %v5781_v9 }
0x1130   :  { %5361 = vmatpush3.bf16.msra.mxu1 %v5908_v36  ;;  %4988 = vmatprep.mubr.msk.f32.mxu1 %vm5783_vm2, %v5784_v51  ;;  %v2030_v58 = vpop.permute.xlu1 %2029 }
0x1131   :  { %5362 = vmatprep.subr.bf16.mxu1 %v5781_v9 }
0x1132   :  { %5358 = vmatpush3.bf16.msra.mxu0 %v6013_v30 }
0x1133   :  { %5365 = vmatprep.subr.bf16.mxu0 %v5781_v9 }
0x1134   :  { %5364 = vmatpush3.bf16.msra.mxu1 %v5913_v46 }
0x1135   :  { %5371 = vmatprep.subr.bf16.mxu1 %v5781_v9 }
0x1137   :  { %4989 = vmatmul.mubr.msk.f32.vlgmr.msra.gmra.mrb[22].mxu1 %vm168_vm1, %v2030_v58 }
0x1138   :  { %5373 = vmatpush3.bf16.msra.mxu1 %v6063_v6  ;;  %5010 = vmatprep.mubr.msk.f32.mxu1 %vm5783_vm2, %v5784_v51 }
0x1139   :  { %5374 = vmatprep.subr.bf16.mxu1 %v5781_v9 }
0x113c   :  { %5376 = vmatpush3.bf16.msra.mxu1 %v6066_v3 }
0x113d   :  { %5383 = vmatprep.subr.bf16.mxu1 %v5781_v9 }
0x1200   :  { %v1831_v59 = vpop.f32.mrb[16].mxu0 }
0x1201   :  { %v1832_v61 = vadd.f32 %v1831_v59, %v1552_v4  ;;  %v4957_v42 = vpop.f32.mrb[17].mxu0 }
0x1202   :  { %v6268_v60 = vpop.f32.mrb[20].mxu1 }
0x1203   :  { %v1835_v62 = vadd.f32 %v1832_v61, %v6110_v33  ;;  %v4968_v0 = vpop.f32.mrb[21].mxu1 }
0x1205   :  { %1843 = vrot.lane.b32.xlu0 %v1835_v62, %s5785_s29  ;;  %v4506_v13 = vmul.f32 -1.442695, %v1835_v62 }
0x1207   :  { %5599 = vpow2.f32 %v4506_v13 }
0x120a   :  { %v2099_v10 = vpop.f32.mrb[22].mxu1 }
0x120b   :  { %v2103_v26 = vadd.f32 %v2099_v10, %v397_v2  ;;  %v4990_v12 = vpop.f32.mrb[23].mxu1 }
0x120d   :  { %2111 = vrot.lane.b32.xlu1 %v2103_v26, %s5785_s29  ;;  %v4510_v15 = vmul.f32 -1.442695, %v2103_v26 }
0x120f   :  { %5601 = vpow2.f32 %v4510_v15 }
0x1211   :  { %v5600_v35 = vpop.eup %5599 }
0x1212   :  { %v1839_v4 = vadd.f32 1.0, %v5600_v35 }
0x1214   :  { %5603 = vrcp.f32 %v1839_v4  ;;  %v2338_v4 = vld [vmem:[#allocation3 + $0x20] sm:$0xff] }
0x1219   :  { %v5602_v38 = vpop.eup %5601 }
0x121a   :  { %v2107_v16 = vadd.f32 1.0, %v5602_v38 }
0x121c   :  { %5605 = vrcp.f32 %v2107_v16 }
0x121e   :  { %v5604_v8 = vpop.eup %5603 }
0x121f   :  { %v1853_v21 = vsub.f32 1.0, %v5604_v8  ;;  %v1859_v45 = vmul.f32 %v5604_v8, %v6207_v1 }
0x1226   :  { %v5606_v56 = vpop.eup %5605 }
0x1227   :  { %v2121_v52 = vsub.f32 1.0, %v5606_v56  ;;  %v2127_v5 = vmul.f32 %v5606_v56, %v6243_v54 }
0x1277   :  { %v1844_v23 = vpop.permute.xlu0 %1843 }
0x1278   :  { %v1846_v29 = vmul.f32 %v5604_v8, %v1844_v23 }
0x127a   :  { %1848 = vrot.lane.b32.xlu0 %v1846_v29, %s5786_s9 }
0x127f   :  { %v2112_v31 = vpop.permute.xlu1 %2111 }
0x1280   :  { %v2114_v63 = vmul.f32 %v5606_v56, %v2112_v31 }
0x1282   :  { %2116 = vrot.lane.b32.xlu1 %v2114_v63, %s5786_s9 }
0x12ec   :  { %v1849_v32 = vpop.permute.xlu0 %1848 }
0x12ed   :  { %v1851_v18 = vadd.f32 %v1849_v32, %v1835_v62 }
0x12ef   :  { %5607 = vtanh.f32 %v1851_v18 }
0x12f4   :  { %v2117_v37 = vpop.permute.xlu1 %2116 }
0x12f5   :  { %v2119_v25 = vadd.f32 %v2117_v37, %v2103_v26 }
0x12f7   :  { %5609 = vtanh.f32 %v2119_v25 }
0x12f9   :  { %v5608_v28 = vpop.eup %5607 }
0x12fa   :  { %1855 = vrot.lane.b32.xlu0 %v5608_v28, %s5787_s10 }
0x1301   :  { %v5610_v49 = vpop.eup %5609 }
0x1302   :  { %2123 = vrot.lane.b32.xlu1 %v5610_v49, %s5787_s10 }
0x136c   :  { %v1856_v43 = vpop.permute.xlu0 %1855 }
0x136d   :  { %v1858_v47 = vmul.f32 %v1856_v43, %v1853_v21 }
0x136f   :  { %v6280_v50 = vadd.f32 %v1859_v45, %v1858_v47 }
0x1371   :  { %v6284_v57 = vmul.f32 %v6234_v34, %v6280_v50 }
0x1373   :  { %1952 = vrot.lane.b32.xlu0 %v6284_v57, %s5787_s10 }
0x1374   :  { %v2124_v44 = vpop.permute.xlu1 %2123 }
0x1375   :  { %v2126_v58 = vmul.f32 %v2124_v44, %v2121_v52  ;;  %v402_v52 = vadd.f32 %v6047_v20, %v5935_v55 }
0x1377   :  { %v2128_v59 = vadd.f32 %v2127_v5, %v2126_v58 }
0x1379   :  { %2130 = vrot.lane.b32.xlu1 %v2128_v59, %s5787_s10 }
0x13e5   :  { %v1953_v61 = vpop.permute.xlu0 %1952 }
0x13e6   :  { %4978 = vmatmul.mubr.msk.f32.vlgmr.msra.gmra.mrb[18].mxu0 %vm168_vm1, %v1953_v61 }
0x13e7   :  { %5367 = vmatpush3.bf16.msra.mxu0 %v6025_v17  ;;  %4999 = vmatprep.mubr.msk.f32.mxu0 %vm5783_vm2, %v5784_v51 }
0x13e8   :  { %5368 = vmatprep.subr.bf16.mxu0 %v5781_v9 }
0x13eb   :  { %5370 = vmatpush3.bf16.msra.mxu0 %v6031_v19  ;;  %v2131_v1 = vpop.permute.xlu1 %2130 }
0x13ec   :  { %5377 = vmatprep.subr.bf16.mxu0 %v5781_v9 }
0x13ee   :  { %5000 = vmatmul.mubr.msk.f32.vlgmr.msra.gmra.mrb[20].mxu0 %vm168_vm1, %v2131_v1 }
0x13ef   :  { %5379 = vmatpush3.bf16.msra.mxu0 %v5992_v7  ;;  %5021 = vmatprep.mubr.msk.f32.mxu0 %vm5783_vm2, %v5784_v51 }
0x13f0   :  { %5380 = vmatprep.subr.bf16.mxu0 %v5781_v9 }
0x13f3   :  { %5382 = vmatpush3.bf16.msra.mxu0 %v5997_v22 }
0x13f4   :  { %5389 = vmatprep.subr.bf16.mxu0 %v5781_v9 }
0x14b9   :  { %v2022_v34 = vpop.f32.mrb[18].mxu0 }
0x14ba   :  { %v4979_v54 = vpop.f32.mrb[19].mxu0 }
0x14c1   :  { %v2200_v42 = vpop.f32.mrb[20].mxu0 }
0x14c2   :  { %v2201_v62 = vadd.f32 %v2200_v42, %v6268_v60  ;;  %v5001_v0 = vpop.f32.mrb[21].mxu0 }
0x14c4   :  { %v2204_v2 = vadd.f32 %v2201_v62, %v6057_v48 }
0x14c6   :  { %2212 = vrot.lane.b32.xlu0 %v2204_v2, %s5785_s29  ;;  %v4512_v10 = vmul.f32 -1.442695, %v2204_v2 }
0x14c8   :  { %5611 = vpow2.f32 %v4512_v10 }
0x14d2   :  { %v5612_v26 = vpop.eup %5611 }
0x14d3   :  { %v2208_v12 = vadd.f32 1.0, %v5612_v26 }
0x14d5   :  { %5613 = vrcp.f32 %v2208_v12 }
0x14df   :  { %v5614_v13 = vpop.eup %5613 }
0x14e0   :  { %v2222_v8 = vsub.f32 1.0, %v5614_v13  ;;  %v2228_v29 = vmul.f32 %v5614_v13, %v6238_v14 }
0x1538   :  { %v2213_v15 = vpop.permute.xlu0 %2212 }
0x1539   :  { %v2215_v35 = vmul.f32 %v5614_v13, %v2213_v15 }
0x153b   :  { %2217 = vrot.lane.b32.xlu1 %v2215_v35, %s5786_s9 }
0x153f   :  { %2340 = vrot.lane.b32.xlu1 %v2338_v4, %s5785_s29 }
0x15ad   :  { %v2218_v38 = vpop.permute.xlu1 %2217 }
0x15ae   :  { %v2220_v60 = vadd.f32 %v2218_v38, %v2204_v2 }
0x15b0   :  { %5615 = vtanh.f32 %v2220_v60 }
0x15b1   :  { %v6311_v63 = vpop.permute.xlu1 %2340 }
0x15b2   :  { %v6318_v18 = vmul.f32 %v6311_v63, %v2128_v59 }
0x15ba   :  { %v5616_v16 = vpop.eup %5615 }
0x15bb   :  { %2224 = vrot.lane.b32.xlu0 %v5616_v16, %s5787_s10 }
0x162d   :  { %v2225_v23 = vpop.permute.xlu0 %2224 }
0x162e   :  { %v2227_v56 = vmul.f32 %v2225_v23, %v2222_v8 }
0x1630   :  { %v2229_v31 = vadd.f32 %v2228_v29, %v2227_v56 }
0x1632   :  { %2231 = vrot.lane.b32.xlu0 %v2229_v31, %s5787_s10  ;;  %v6315_v32 = vmul.f32 %v6311_v63, %v2229_v31 }
0x1634   :  { %2347 = vrot.lane.b32.xlu1 %v6315_v32, %s5787_s10 }
0x1636   :  { %2499 = vrot.lane.b32.xlu0 %v6318_v18, %s5787_s10 }
0x16a4   :  { %v2232_v37 = vpop.permute.xlu0 %2231 }
0x16a5   :  { %5011 = vmatmul.mubr.msk.f32.vlgmr.msra.gmra.mrb[24].mxu1 %vm168_vm1, %v2232_v37 }
0x16a6   :  { %v2348_v14 = vpop.permute.xlu1 %2347  ;;  %5385 = vmatpush3.bf16.msra.mxu1 %v6008_v27  ;;  %5032 = vmatprep.mubr.msk.f32.mxu1 %vm5783_vm2, %v5784_v51 }
0x16a7   :  { %5022 = vmatmul.mubr.msk.f32.vlgmr.msra.gmra.mrb[22].mxu0 %vm168_vm1, %v2348_v14  ;;  %5386 = vmatprep.subr.bf16.mxu1 %v5781_v9 }
0x16a8   :  { %5391 = vmatpush3.bf16.msra.mxu0 %v5908_v36  ;;  %5043 = vmatprep.mubr.msk.f32.mxu0 %vm5783_vm2, %v5784_v51  ;;  %v2500_v25 = vpop.permute.xlu0 %2499 }
0x16a9   :  { %5392 = vmatprep.subr.bf16.mxu0 %v5781_v9 }
0x16aa   :  { %5388 = vmatpush3.bf16.msra.mxu1 %v6013_v30 }
0x16ab   :  { %5395 = vmatprep.subr.bf16.mxu1 %v5781_v9 }
0x16ac   :  { %5394 = vmatpush3.bf16.msra.mxu0 %v5913_v46 }
0x16ad   :  { %5401 = vmatprep.subr.bf16.mxu0 %v5781_v9 }
0x16af   :  { %5044 = vmatmul.mubr.msk.f32.vlgmr.msra.gmra.mrb[24].mxu0 %vm168_vm1, %v2500_v25 }
0x16b0   :  { %5403 = vmatpush3.bf16.msra.mxu0 %v6063_v6  ;;  %5065 = vmatprep.mubr.msk.f32.mxu0 %vm5783_vm2, %v5784_v51 }
0x16b1   :  { %5404 = vmatprep.subr.bf16.mxu0 %v5781_v9 }
0x16b4   :  { %5406 = vmatpush3.bf16.msra.mxu0 %v6066_v3 }
0x16b5   :  { %5413 = vmatprep.subr.bf16.mxu0 %v5781_v9 }
0x1778   :  { %v2301_v28 = vpop.f32.mrb[24].mxu1 }
0x1779   :  { %v2302_v49 = vadd.f32 %v2301_v28, %v2022_v34  ;;  %v5012_v21 = vpop.f32.mrb[25].mxu1 }
0x177a   :  { %v6345_v43 = vpop.f32.mrb[22].mxu0 }
0x177b   :  { %v2305_v45 = vadd.f32 %v2302_v49, %v6110_v33  ;;  %v5023_v47 = vpop.f32.mrb[23].mxu0 }
0x177d   :  { %2313 = vrot.lane.b32.xlu1 %v2305_v45, %s5785_s29  ;;  %v4514_v59 = vmul.f32 -1.442695, %v2305_v45 }
0x177f   :  { %5617 = vpow2.f32 %v4514_v59 }
0x1782   :  { %v2569_v44 = vpop.f32.mrb[24].mxu0 }
0x1783   :  { %v2573_v5 = vadd.f32 %v2569_v44, %v402_v52  ;;  %v5045_v58 = vpop.f32.mrb[25].mxu0 }
0x1785   :  { %2581 = vrot.lane.b32.xlu0 %v2573_v5, %s5785_s29  ;;  %v4518_v61 = vmul.f32 -1.442695, %v2573_v5 }
0x1787   :  { %5619 = vpow2.f32 %v4518_v61 }
0x1789   :  { %v5618_v1 = vpop.eup %5617 }
0x178a   :  { %v2309_v34 = vadd.f32 1.0, %v5618_v1 }
0x178c   :  { %5621 = vrcp.f32 %v2309_v34  ;;  %v2808_v34 = vld [vmem:[#allocation3 + $0x28] sm:$0xff] }
0x1791   :  { %v5620_v54 = vpop.eup %5619 }
0x1792   :  { %v2577_v42 = vadd.f32 1.0, %v5620_v54 }
0x1794   :  { %5623 = vrcp.f32 %v2577_v42 }
0x1796   :  { %v5622_v62 = vpop.eup %5621 }
0x1797   :  { %v2323_v60 = vsub.f32 1.0, %v5622_v62  ;;  %v2329_v8 = vmul.f32 %v5622_v62, %v6284_v57 }
0x179e   :  { %v5624_v20 = vpop.eup %5623 }
0x179f   :  { %v2591_v31 = vsub.f32 1.0, %v5624_v20  ;;  %v2597_v14 = vmul.f32 %v5624_v20, %v6318_v18 }
0x17ef   :  { %v2314_v0 = vpop.permute.xlu1 %2313 }
0x17f0   :  { %v2316_v2 = vmul.f32 %v5622_v62, %v2314_v0 }
0x17f2   :  { %2318 = vrot.lane.b32.xlu1 %v2316_v2, %s5786_s9 }
0x17f7   :  { %v2582_v10 = vpop.permute.xlu0 %2581 }
0x17f8   :  { %v2584_v26 = vmul.f32 %v5624_v20, %v2582_v10 }
0x17fa   :  { %2586 = vrot.lane.b32.xlu0 %v2584_v26, %s5786_s9 }
0x1864   :  { %v2319_v12 = vpop.permute.xlu1 %2318 }
0x1865   :  { %v2321_v13 = vadd.f32 %v2319_v12, %v2305_v45 }
0x1867   :  { %5625 = vtanh.f32 %v2321_v13 }
0x186c   :  { %v2587_v15 = vpop.permute.xlu0 %2586 }
0x186d   :  { %v2589_v35 = vadd.f32 %v2587_v15, %v2573_v5 }
0x186f   :  { %5627 = vtanh.f32 %v2589_v35 }
0x1871   :  { %v5626_v4 = vpop.eup %5625 }
0x1872   :  { %2325 = vrot.lane.b32.xlu1 %v5626_v4, %s5787_s10 }
0x1879   :  { %v5628_v38 = vpop.eup %5627 }
0x187a   :  { %2593 = vrot.lane.b32.xlu0 %v5628_v38, %s5787_s10 }
0x18e4   :  { %v2326_v16 = vpop.permute.xlu1 %2325 }
0x18e5   :  { %v2328_v23 = vmul.f32 %v2326_v16, %v2323_v60 }
0x18e7   :  { %v6357_v29 = vadd.f32 %v2329_v8, %v2328_v23 }
0x18e9   :  { %v6361_v56 = vmul.f32 %v6311_v63, %v6357_v29 }
0x18eb   :  { %2422 = vrot.lane.b32.xlu1 %v6361_v56, %s5787_s10 }
0x18ec   :  { %v2594_v37 = vpop.permute.xlu0 %2593 }
0x18ed   :  { %v2596_v25 = vmul.f32 %v2594_v37, %v2591_v31  ;;  %v407_v31 = vadd.f32 %v6045_v39, %v5935_v55 }
0x18ef   :  { %v2598_v28 = vadd.f32 %v2597_v14, %v2596_v25 }
0x18f1   :  { %2600 = vrot.lane.b32.xlu0 %v2598_v28, %s5787_s10 }
0x195d   :  { %v2423_v49 = vpop.permute.xlu1 %2422 }
0x195e   :  { %5033 = vmatmul.mubr.msk.f32.vlgmr.msra.gmra.mrb[26].mxu1 %vm168_vm1, %v2423_v49 }
0x195f   :  { %5397 = vmatpush3.bf16.msra.mxu1 %v6025_v17  ;;  %5054 = vmatprep.mubr.msk.f32.mxu1 %vm5783_vm2, %v5784_v51 }
0x1960   :  { %5398 = vmatprep.subr.bf16.mxu1 %v5781_v9 }
0x1963   :  { %5400 = vmatpush3.bf16.msra.mxu1 %v6031_v19  ;;  %v2601_v57 = vpop.permute.xlu0 %2600 }
0x1964   :  { %5407 = vmatprep.subr.bf16.mxu1 %v5781_v9 }
0x1966   :  { %5055 = vmatmul.mubr.msk.f32.vlgmr.msra.gmra.mrb[28].mxu1 %vm168_vm1, %v2601_v57 }
0x1967   :  { %5409 = vmatpush3.bf16.msra.mxu1 %v5992_v7  ;;  %5076 = vmatprep.mubr.msk.f32.mxu1 %vm5783_vm2, %v5784_v51 }
0x1968   :  { %5410 = vmatprep.subr.bf16.mxu1 %v5781_v9 }
0x196b   :  { %5412 = vmatpush3.bf16.msra.mxu1 %v5997_v22 }
0x196c   :  { %5419 = vmatprep.subr.bf16.mxu1 %v5781_v9 }
0x1a31   :  { %v2492_v63 = vpop.f32.mrb[26].mxu1 }
0x1a32   :  { %v5034_v18 = vpop.f32.mrb[27].mxu1 }
0x1a39   :  { %v2670_v21 = vpop.f32.mrb[28].mxu1 }
0x1a3a   :  { %v2671_v45 = vadd.f32 %v2670_v21, %v6345_v43  ;;  %v5056_v47 = vpop.f32.mrb[29].mxu1 }
0x1a3c   :  { %v2674_v52 = vadd.f32 %v2671_v45, %v6057_v48 }
0x1a3e   :  { %2682 = vrot.lane.b32.xlu1 %v2674_v52, %s5785_s29  ;;  %v4520_v44 = vmul.f32 -1.442695, %v2674_v52 }
0x1a40   :  { %5629 = vpow2.f32 %v4520_v44 }
0x1a4a   :  { %v5630_v5 = vpop.eup %5629 }
0x1a4b   :  { %v2678_v58 = vadd.f32 1.0, %v5630_v5 }
0x1a4d   :  { %5631 = vrcp.f32 %v2678_v58 }
0x1a57   :  { %v5632_v59 = vpop.eup %5631 }
0x1a58   :  { %v2692_v62 = vsub.f32 1.0, %v5632_v59  ;;  %v2698_v2 = vmul.f32 %v5632_v59, %v6315_v32 }
0x1ab0   :  { %v2683_v61 = vpop.permute.xlu1 %2682 }
0x1ab1   :  { %v2685_v1 = vmul.f32 %v5632_v59, %v2683_v61 }
0x1ab3   :  { %2687 = vrot.lane.b32.xlu0 %v2685_v1, %s5786_s9 }
0x1ab7   :  { %2810 = vrot.lane.b32.xlu0 %v2808_v34, %s5785_s29 }
0x1b25   :  { %v2688_v54 = vpop.permute.xlu0 %2687 }
0x1b26   :  { %v2690_v43 = vadd.f32 %v2688_v54, %v2674_v52 }
0x1b28   :  { %5633 = vtanh.f32 %v2690_v43 }
0x1b29   :  { %v6388_v26 = vpop.permute.xlu0 %2810 }
0x1b2a   :  { %v6395_v13 = vmul.f32 %v6388_v26, %v2598_v28 }
0x1b32   :  { %v5634_v42 = vpop.eup %5633 }
0x1b33   :  { %2694 = vrot.lane.b32.xlu1 %v5634_v42, %s5787_s10 }
0x1ba5   :  { %v2695_v0 = vpop.permute.xlu1 %2694 }
0x1ba6   :  { %v2697_v20 = vmul.f32 %v2695_v0, %v2692_v62 }
0x1ba8   :  { %v2699_v10 = vadd.f32 %v2698_v2, %v2697_v20 }
0x1baa   :  { %2701 = vrot.lane.b32.xlu1 %v2699_v10, %s5787_s10  ;;  %v6392_v12 = vmul.f32 %v6388_v26, %v2699_v10 }
0x1bac   :  { %2817 = vrot.lane.b32.xlu0 %v6392_v12, %s5787_s10 }
0x1bae   :  { %2969 = vrot.lane.b32.xlu1 %v6395_v13, %s5787_s10 }
0x1c1c   :  { %v2702_v15 = vpop.permute.xlu1 %2701 }
0x1c1d   :  { %5066 = vmatmul.mubr.msk.f32.vlgmr.msra.gmra.mrb[26].mxu0 %vm168_vm1, %v2702_v15 }
0x1c1e   :  { %v2818_v32 = vpop.permute.xlu0 %2817  ;;  %5415 = vmatpush3.bf16.msra.mxu0 %v6008_v27  ;;  %5087 = vmatprep.mubr.msk.f32.mxu0 %vm5783_vm2, %v5784_v51 }
0x1c1f   :  { %5077 = vmatmul.mubr.msk.f32.vlgmr.msra.gmra.mrb[30].mxu1 %vm168_vm1, %v2818_v32  ;;  %5416 = vmatprep.subr.bf16.mxu0 %v5781_v9 }
0x1c20   :  { %5421 = vmatpush3.bf16.msra.mxu1 %v5908_v36  ;;  %5098 = vmatprep.mubr.msk.f32.mxu1 %vm5783_vm2, %v5784_v51  ;;  %v2970_v35 = vpop.permute.xlu1 %2969 }
0x1c21   :  { %5422 = vmatprep.subr.bf16.mxu1 %v5781_v9 }
0x1c22   :  { %5418 = vmatpush3.bf16.msra.mxu0 %v6013_v30 }
0x1c23   :  { %5425 = vmatprep.subr.bf16.mxu0 %v5781_v9 }
0x1c24   :  { %5424 = vmatpush3.bf16.msra.mxu1 %v5913_v46 }
0x1c25   :  { %5431 = vmatprep.subr.bf16.mxu1 %v5781_v9 }
0x1c27   :  { %5099 = vmatmul.mubr.msk.f32.vlgmr.msra.gmra.mrb[32].mxu1 %vm168_vm1, %v2970_v35 }
0x1c28   :  { %5433 = vmatpush3.bf16.msra.mxu1 %v6063_v6  ;;  %5120 = vmatprep.mubr.msk.f32.mxu1 %vm5783_vm2, %v5784_v51 }
0x1c29   :  { %5434 = vmatprep.subr.bf16.mxu1 %v5781_v9 }
0x1c2c   :  { %5436 = vmatpush3.bf16.msra.mxu1 %v6066_v3 }
0x1c2d   :  { %5443 = vmatprep.subr.bf16.mxu1 %v5781_v9 }
0x1cf0   :  { %v2771_v4 = vpop.f32.mrb[26].mxu0 }
0x1cf1   :  { %v2772_v38 = vadd.f32 %v2771_v4, %v2492_v63  ;;  %v5067_v60 = vpop.f32.mrb[27].mxu0 }
0x1cf2   :  { %v6422_v16 = vpop.f32.mrb[30].mxu1 }
0x1cf3   :  { %v2775_v8 = vadd.f32 %v2772_v38, %v6110_v33  ;;  %v5078_v23 = vpop.f32.mrb[31].mxu1 }
0x1cf5   :  { %2783 = vrot.lane.b32.xlu0 %v2775_v8, %s5785_s29  ;;  %v4522_v28 = vmul.f32 -1.442695, %v2775_v8 }
0x1cf7   :  { %5635 = vpow2.f32 %v4522_v28 }
0x1cfa   :  { %v3039_v37 = vpop.f32.mrb[32].mxu1 }
0x1cfb   :  { %v3043_v14 = vadd.f32 %v3039_v37, %v407_v31  ;;  %v5100_v25 = vpop.f32.mrb[33].mxu1 }
0x1cfd   :  { %3051 = vrot.lane.b32.xlu1 %v3043_v14, %s5785_s29  ;;  %v4526_v49 = vmul.f32 -1.442695, %v3043_v14 }
0x1cff   :  { %5637 = vpow2.f32 %v4526_v49 }
0x1d01   :  { %v5636_v57 = vpop.eup %5635 }
0x1d02   :  { %v2779_v63 = vadd.f32 1.0, %v5636_v57 }
0x1d04   :  { %5639 = vrcp.f32 %v2779_v63  ;;  %v3278_v63 = vld [vmem:[#allocation3 + $0x30] sm:$0xff] }
0x1d09   :  { %v5638_v18 = vpop.eup %5637 }
0x1d0a   :  { %v3047_v21 = vadd.f32 1.0, %v5638_v18 }
0x1d0c   :  { %5641 = vrcp.f32 %v3047_v21 }
0x1d0e   :  { %v5640_v45 = vpop.eup %5639 }
0x1d0f   :  { %v2793_v43 = vsub.f32 1.0, %v5640_v45  ;;  %v2799_v62 = vmul.f32 %v5640_v45, %v6361_v56 }
0x1d16   :  { %v5642_v39 = vpop.eup %5641 }
0x1d17   :  { %v3061_v10 = vsub.f32 1.0, %v5642_v39  ;;  %v3067_v32 = vmul.f32 %v5642_v39, %v6395_v13 }
0x1d67   :  { %v2784_v47 = vpop.permute.xlu0 %2783 }
0x1d68   :  { %v2786_v52 = vmul.f32 %v5640_v45, %v2784_v47 }
0x1d6a   :  { %2788 = vrot.lane.b32.xlu0 %v2786_v52, %s5786_s9 }
0x1d6f   :  { %v3052_v44 = vpop.permute.xlu1 %3051 }
0x1d70   :  { %v3054_v5 = vmul.f32 %v5642_v39, %v3052_v44 }
0x1d72   :  { %3056 = vrot.lane.b32.xlu1 %v3054_v5, %s5786_s9 }
0x1ddc   :  { %v2789_v58 = vpop.permute.xlu0 %2788 }
0x1ddd   :  { %v2791_v59 = vadd.f32 %v2789_v58, %v2775_v8 }
0x1ddf   :  { %5643 = vtanh.f32 %v2791_v59 }
0x1de4   :  { %v3057_v61 = vpop.permute.xlu1 %3056 }
0x1de5   :  { %v3059_v1 = vadd.f32 %v3057_v61, %v3043_v14 }
0x1de7   :  { %5645 = vtanh.f32 %v3059_v1 }
0x1de9   :  { %v5644_v34 = vpop.eup %5643 }
0x1dea   :  { %2795 = vrot.lane.b32.xlu0 %v5644_v34, %s5787_s10 }
0x1df1   :  { %v5646_v54 = vpop.eup %5645 }
0x1df2   :  { %3063 = vrot.lane.b32.xlu1 %v5646_v54, %s5787_s10 }
0x1e5c   :  { %v2796_v42 = vpop.permute.xlu0 %2795 }
0x1e5d   :  { %v2798_v0 = vmul.f32 %v2796_v42, %v2793_v43 }
0x1e5f   :  { %v6434_v2 = vadd.f32 %v2799_v62, %v2798_v0 }
0x1e61   :  { %v6438_v20 = vmul.f32 %v6388_v26, %v6434_v2 }
0x1e63   :  { %2892 = vrot.lane.b32.xlu0 %v6438_v20, %s5787_s10 }
0x1e64   :  { %v3064_v15 = vpop.permute.xlu1 %3063 }
0x1e65   :  { %v3066_v35 = vmul.f32 %v3064_v15, %v3061_v10  ;;  %v412_v10 = vadd.f32 %v6051_v41, %v5935_v55 }
0x1e67   :  { %v3068_v4 = vadd.f32 %v3067_v32, %v3066_v35 }
0x1e69   :  { %3070 = vrot.lane.b32.xlu1 %v3068_v4, %s5787_s10 }
0x1ed5   :  { %v2893_v38 = vpop.permute.xlu0 %2892 }
0x1ed6   :  { %5088 = vmatmul.mubr.msk.f32.vlgmr.msra.gmra.mrb[28].mxu0 %vm168_vm1, %v2893_v38 }
0x1ed7   :  { %5427 = vmatpush3.bf16.msra.mxu0 %v6025_v17  ;;  %5109 = vmatprep.mubr.msk.f32.mxu0 %vm5783_vm2, %v5784_v51 }
0x1ed8   :  { %5428 = vmatprep.subr.bf16.mxu0 %v5781_v9 }
0x1edb   :  { %5430 = vmatpush3.bf16.msra.mxu0 %v6031_v19  ;;  %v3071_v56 = vpop.permute.xlu1 %3070 }
0x1edc   :  { %5437 = vmatprep.subr.bf16.mxu0 %v5781_v9 }
0x1ede   :  { %5110 = vmatmul.mubr.msk.f32.vlgmr.msra.gmra.mrb[30].mxu0 %vm168_vm1, %v3071_v56 }
0x1edf   :  { %5439 = vmatpush3.bf16.msra.mxu0 %v5992_v7  ;;  %5131 = vmatprep.mubr.msk.f32.mxu0 %vm5783_vm2, %v5784_v51 }
0x1ee0   :  { %5440 = vmatprep.subr.bf16.mxu0 %v5781_v9 }
0x1ee3   :  { %5442 = vmatpush3.bf16.msra.mxu0 %v5997_v22 }
0x1ee4   :  { %5449 = vmatprep.subr.bf16.mxu0 %v5781_v9 }
0x1fa9   :  { %v2962_v26 = vpop.f32.mrb[28].mxu0 }
0x1faa   :  { %v5089_v13 = vpop.f32.mrb[29].mxu0 }
0x1fb1   :  { %v3140_v60 = vpop.f32.mrb[30].mxu0 }
0x1fb2   :  { %v3141_v8 = vadd.f32 %v3140_v60, %v6422_v16  ;;  %v5111_v23 = vpop.f32.mrb[31].mxu0 }
0x1fb4   :  { %v3144_v31 = vadd.f32 %v3141_v8, %v6057_v48 }
0x1fb6   :  { %3152 = vrot.lane.b32.xlu0 %v3144_v31, %s5785_s29  ;;  %v4528_v37 = vmul.f32 -1.442695, %v3144_v31 }
0x1fb8   :  { %5647 = vpow2.f32 %v4528_v37 }
0x1fc2   :  { %v5648_v14 = vpop.eup %5647 }
0x1fc3   :  { %v3148_v25 = vadd.f32 1.0, %v5648_v14 }
0x1fc5   :  { %5649 = vrcp.f32 %v3148_v25 }
0x1fcf   :  { %v5650_v28 = vpop.eup %5649 }
0x1fd0   :  { %v3162_v45 = vsub.f32 1.0, %v5650_v28  ;;  %v3168_v52 = vmul.f32 %v5650_v28, %v6392_v12 }
0x2028   :  { %v3153_v49 = vpop.permute.xlu0 %3152 }
0x2029   :  { %v3155_v57 = vmul.f32 %v5650_v28, %v3153_v49 }
0x202b   :  { %3157 = vrot.lane.b32.xlu1 %v3155_v57, %s5786_s9 }
0x202f   :  { %3280 = vrot.lane.b32.xlu1 %v3278_v63, %s5785_s29 }
0x209d   :  { %v3158_v18 = vpop.permute.xlu1 %3157 }
0x209e   :  { %v3160_v16 = vadd.f32 %v3158_v18, %v3144_v31 }
0x20a0   :  { %5651 = vtanh.f32 %v3160_v16 }
0x20a1   :  { %v6465_v5 = vpop.permute.xlu1 %3280 }
0x20a2   :  { %v6472_v59 = vmul.f32 %v6465_v5, %v3068_v4 }
0x20aa   :  { %v5652_v21 = vpop.eup %5651 }
0x20ab   :  { %3164 = vrot.lane.b32.xlu0 %v5652_v21, %s5787_s10 }
0x211d   :  { %v3165_v47 = vpop.permute.xlu0 %3164 }
0x211e   :  { %v3167_v39 = vmul.f32 %v3165_v47, %v3162_v45 }
0x2120   :  { %v3169_v44 = vadd.f32 %v3168_v52, %v3167_v39 }
0x2122   :  { %3171 = vrot.lane.b32.xlu0 %v3169_v44, %s5787_s10  ;;  %v6469_v58 = vmul.f32 %v6465_v5, %v3169_v44 }
0x2124   :  { %3287 = vrot.lane.b32.xlu1 %v6469_v58, %s5787_s10 }
0x2126   :  { %3439 = vrot.lane.b32.xlu0 %v6472_v59, %s5787_s10 }
0x2194   :  { %v3172_v61 = vpop.permute.xlu0 %3171 }
0x2195   :  { %5121 = vmatmul.mubr.msk.f32.vlgmr.msra.gmra.mrb[34].mxu1 %vm168_vm1, %v3172_v61 }
0x2196   :  { %v3288_v12 = vpop.permute.xlu1 %3287  ;;  %5445 = vmatpush3.bf16.msra.mxu1 %v6008_v27  ;;  %5142 = vmatprep.mubr.msk.f32.mxu1 %vm5783_vm2, %v5784_v51 }
0x2197   :  { %5132 = vmatmul.mubr.msk.f32.vlgmr.msra.gmra.mrb[32].mxu0 %vm168_vm1, %v3288_v12  ;;  %5446 = vmatprep.subr.bf16.mxu1 %v5781_v9 }
0x2198   :  { %5451 = vmatpush3.bf16.msra.mxu0 %v5908_v36  ;;  %5153 = vmatprep.mubr.msk.f32.mxu0 %vm5783_vm2, %v5784_v51  ;;  %v3440_v1 = vpop.permute.xlu0 %3439 }
0x2199   :  { %5452 = vmatprep.subr.bf16.mxu0 %v5781_v9 }
0x219a   :  { %5448 = vmatpush3.bf16.msra.mxu1 %v6013_v30 }
0x219b   :  { %5455 = vmatprep.subr.bf16.mxu1 %v5781_v9 }
0x219c   :  { %5454 = vmatpush3.bf16.msra.mxu0 %v5913_v46 }
0x219d   :  { %5461 = vmatprep.subr.bf16.mxu0 %v5781_v9 }
0x219f   :  { %5154 = vmatmul.mubr.msk.f32.vlgmr.msra.gmra.mrb[34].mxu0 %vm168_vm1, %v3440_v1 }
0x21a0   :  { %5463 = vmatpush3.bf16.msra.mxu0 %v6063_v6  ;;  %5175 = vmatprep.mubr.msk.f32.mxu0 %vm5783_vm2, %v5784_v51 }
0x21a1   :  { %5464 = vmatprep.subr.bf16.mxu0 %v5781_v9 }
0x21a4   :  { %5466 = vmatpush3.bf16.msra.mxu0 %v6066_v3 }
0x21a5   :  { %5473 = vmatprep.subr.bf16.mxu0 %v5781_v9 }
0x2268   :  { %v3241_v34 = vpop.f32.mrb[34].mxu1 }
0x2269   :  { %v3242_v54 = vadd.f32 %v3241_v34, %v2962_v26  ;;  %v5122_v43 = vpop.f32.mrb[35].mxu1 }
0x226a   :  { %v6499_v42 = vpop.f32.mrb[32].mxu0 }
0x226b   :  { %v3245_v62 = vadd.f32 %v3242_v54, %v6110_v33  ;;  %v5133_v0 = vpop.f32.mrb[33].mxu0 }
0x226d   :  { %3253 = vrot.lane.b32.xlu1 %v3245_v62, %s5785_s29  ;;  %v4530_v4 = vmul.f32 -1.442695, %v3245_v62 }
0x226f   :  { %5653 = vpow2.f32 %v4530_v4 }
0x2272   :  { %v3509_v15 = vpop.f32.mrb[34].mxu0 }
0x2273   :  { %v3513_v32 = vadd.f32 %v3509_v15, %v412_v10  ;;  %v5155_v35 = vpop.f32.mrb[35].mxu0 }
0x2275   :  { %3521 = vrot.lane.b32.xlu0 %v3513_v32, %s5785_s29  ;;  %v4534_v38 = vmul.f32 -1.442695, %v3513_v32 }
0x2277   :  { %5655 = vpow2.f32 %v4534_v38  ;;  %v3748_v38 = vld [vmem:[#allocation3 + $0x38] sm:$0xff] }
0x2279   :  { %v5654_v56 = vpop.eup %5653 }
0x227a   :  { %v3249_v26 = vadd.f32 1.0, %v5654_v56 }
0x227c   :  { %5657 = vrcp.f32 %v3249_v26 }
0x2281   :  { %v5656_v13 = vpop.eup %5655 }
0x2282   :  { %v3517_v60 = vadd.f32 1.0, %v5656_v13 }
0x2284   :  { %5659 = vrcp.f32 %v3517_v60 }
0x2286   :  { %v5658_v8 = vpop.eup %5657 }
0x2287   :  { %v3263_v16 = vsub.f32 1.0, %v5658_v8  ;;  %v3269_v45 = vmul.f32 %v5658_v8, %v6438_v20 }
0x228e   :  { %v5660_v41 = vpop.eup %5659 }
0x228f   :  { %v3531_v44 = vsub.f32 1.0, %v5660_v41  ;;  %v3537_v12 = vmul.f32 %v5660_v41, %v6472_v59 }
0x22df   :  { %v3254_v23 = vpop.permute.xlu1 %3253 }
0x22e0   :  { %v3256_v31 = vmul.f32 %v5658_v8, %v3254_v23 }
0x22e2   :  { %3258 = vrot.lane.b32.xlu1 %v3256_v31, %s5786_s9 }
0x22e7   :  { %v3522_v37 = vpop.permute.xlu0 %3521 }
0x22e8   :  { %v3524_v14 = vmul.f32 %v5660_v41, %v3522_v37 }
0x22ea   :  { %3526 = vrot.lane.b32.xlu0 %v3524_v14, %s5786_s9 }
0x2354   :  { %v3259_v25 = vpop.permute.xlu1 %3258 }
0x2355   :  { %v3261_v28 = vadd.f32 %v3259_v25, %v3245_v62 }
0x2357   :  { %5661 = vtanh.f32 %v3261_v28 }
0x235c   :  { %v3527_v49 = vpop.permute.xlu0 %3526 }
0x235d   :  { %v3529_v57 = vadd.f32 %v3527_v49, %v3513_v32 }
0x235f   :  { %5663 = vtanh.f32 %v3529_v57 }
0x2361   :  { %v5662_v63 = vpop.eup %5661 }
0x2362   :  { %3265 = vrot.lane.b32.xlu1 %v5662_v63, %s5787_s10  ;;  %v417_v63 = vadd.f32 %v6049_v40, %v5935_v55 }
0x2369   :  { %v5664_v18 = vpop.eup %5663 }
0x236a   :  { %3533 = vrot.lane.b32.xlu0 %v5664_v18, %s5787_s10 }
0x23d4   :  { %v3266_v21 = vpop.permute.xlu1 %3265 }
0x23d5   :  { %v3268_v47 = vmul.f32 %v3266_v21, %v3263_v16 }
0x23d7   :  { %v6511_v52 = vadd.f32 %v3269_v45, %v3268_v47 }
0x23d9   :  { %v6515_v39 = vmul.f32 %v6465_v5, %v6511_v52 }
0x23db   :  { %3362 = vrot.lane.b32.xlu1 %v6515_v39, %s5787_s10 }
0x23dc   :  { %v3534_v61 = vpop.permute.xlu0 %3533 }
0x23dd   :  { %v3536_v1 = vmul.f32 %v3534_v61, %v3531_v44 }
0x23df   :  { %v3538_v34 = vadd.f32 %v3537_v12, %v3536_v1 }
0x23e1   :  { %3540 = vrot.lane.b32.xlu0 %v3538_v34, %s5787_s10 }
0x244d   :  { %v3363_v54 = vpop.permute.xlu1 %3362 }
0x244e   :  { %5143 = vmatmul.mubr.msk.f32.vlgmr.msra.gmra.mrb[36].mxu1 %vm168_vm1, %v3363_v54 }
0x244f   :  { %5457 = vmatpush3.bf16.msra.mxu1 %v6025_v17  ;;  %5164 = vmatprep.mubr.msk.f32.mxu1 %vm5783_vm2, %v5784_v51 }
0x2450   :  { %5458 = vmatprep.subr.bf16.mxu1 %v5781_v9 }
0x2453   :  { %5460 = vmatpush3.bf16.msra.mxu1 %v6031_v19  ;;  %v3541_v20 = vpop.permute.xlu0 %3540 }
0x2454   :  { %5467 = vmatprep.subr.bf16.mxu1 %v5781_v9 }
0x2456   :  { %5165 = vmatmul.mubr.msk.f32.vlgmr.msra.gmra.mrb[38].mxu1 %vm168_vm1, %v3541_v20 }
0x2457   :  { %5469 = vmatpush3.bf16.msra.mxu1 %v5992_v7  ;;  %5186 = vmatprep.mubr.msk.f32.mxu1 %vm5783_vm2, %v5784_v51 }
0x2458   :  { %5470 = vmatprep.subr.bf16.mxu1 %v5781_v9 }
0x245b   :  { %5472 = vmatpush3.bf16.msra.mxu1 %v5997_v22 }
0x245c   :  { %5479 = vmatprep.subr.bf16.mxu1 %v5781_v9 }
0x2521   :  { %v3432_v5 = vpop.f32.mrb[36].mxu1 }
0x2522   :  { %v5144_v59 = vpop.f32.mrb[37].mxu1 }
0x2529   :  { %v3610_v43 = vpop.f32.mrb[38].mxu1 }
0x252a   :  { %v3611_v62 = vadd.f32 %v3610_v43, %v6499_v42  ;;  %v5166_v0 = vpop.f32.mrb[39].mxu1 }
0x252c   :  { %v3614_v10 = vadd.f32 %v3611_v62, %v6057_v48 }
0x252e   :  { %3622 = vrot.lane.b32.xlu1 %v3614_v10, %s5785_s29  ;;  %v4536_v7 = vmul.f32 -1.442695, %v3614_v10 }
0x2530   :  { %5665 = vpow2.f32 %v4536_v7 }
0x253a   :  { %v5666_v15 = vpop.eup %5665 }
0x253b   :  { %v3618_v32 = vadd.f32 1.0, %v5666_v15 }
0x253d   :  { %5667 = vrcp.f32 %v3618_v32 }
0x2547   :  { %v5668_v35 = vpop.eup %5667 }
0x2548   :  { %v3632_v13 = vsub.f32 1.0, %v5668_v35  ;;  %v3638_v8 = vmul.f32 %v5668_v35, %v6469_v58 }
0x25a0   :  { %v3623_v4 = vpop.permute.xlu1 %3622 }
0x25a1   :  { %v3625_v22 = vmul.f32 %v5668_v35, %v3623_v4 }
0x25a3   :  { %3627 = vrot.lane.b32.xlu0 %v3625_v22, %s5786_s9 }
0x25a7   :  { %3750 = vrot.lane.b32.xlu0 %v3748_v38, %s5785_s29 }
0x2615   :  { %v3628_v56 = vpop.permute.xlu0 %3627 }
0x2616   :  { %v3630_v42 = vadd.f32 %v3628_v56, %v3614_v10 }
0x2618   :  { %5669 = vtanh.f32 %v3630_v42 }
0x2619   :  { %v6542_v41 = vpop.permute.xlu0 %3750 }
0x261a   :  { %v6549_v14 = vmul.f32 %v6542_v41, %v3538_v34 }
0x2622   :  { %v5670_v26 = vpop.eup %5669 }
0x2623   :  { %3634 = vrot.lane.b32.xlu1 %v5670_v26, %s5787_s10 }
0x2695   :  { %v3635_v60 = vpop.permute.xlu1 %3634 }
0x2696   :  { %v3637_v23 = vmul.f32 %v3635_v60, %v3632_v13 }
0x2698   :  { %v3639_v31 = vadd.f32 %v3638_v8, %v3637_v23 }
0x269a   :  { %v6545_v37 = vmul.f32 %v6542_v41, %v3639_v31  ;;  %3641 = vrot.lane.b32.xlu1 %v3639_v31, %s5787_s10 }
0x269c   :  { %3757 = vrot.lane.b32.xlu0 %v6545_v37, %s5787_s10 }
0x269e   :  { %3909 = vrot.lane.b32.xlu1 %v6549_v14, %s5787_s10 }
0x270c   :  { %v3642_v25 = vpop.permute.xlu1 %3641 }
0x270d   :  { %5176 = vmatmul.mubr.msk.f32.vlgmr.msra.gmra.mrb[36].mxu0 %vm168_vm1, %v3642_v25 }
0x270e   :  { %v3758_v58 = vpop.permute.xlu0 %3757  ;;  %5475 = vmatpush3.bf16.msra.mxu0 %v6008_v27  ;;  %5197 = vmatprep.mubr.msk.f32.mxu0 %vm5783_vm2, %v5784_v51 }
0x270f   :  { %5187 = vmatmul.mubr.msk.f32.vlgmr.msra.gmra.mrb[40].mxu1 %vm168_vm1, %v3758_v58  ;;  %5476 = vmatprep.subr.bf16.mxu0 %v5781_v9 }
0x2710   :  { %5481 = vmatpush3.bf16.msra.mxu1 %v5908_v36  ;;  %5208 = vmatprep.mubr.msk.f32.mxu1 %vm5783_vm2, %v5784_v51  ;;  %v3910_v27 = vpop.permute.xlu1 %3909 }
0x2711   :  { %5482 = vmatprep.subr.bf16.mxu1 %v5781_v9 }
0x2712   :  { %5478 = vmatpush3.bf16.msra.mxu0 %v6013_v30 }
0x2713   :  { %5485 = vmatprep.subr.bf16.mxu0 %v5781_v9 }
0x2714   :  { %5484 = vmatpush3.bf16.msra.mxu1 %v5913_v46 }
0x2715   :  { %5491 = vmatprep.subr.bf16.mxu1 %v5781_v9 }
0x2717   :  { %5209 = vmatmul.mubr.msk.f32.vlgmr.msra.gmra.mrb[42].mxu1 %vm168_vm1, %v3910_v27 }
0x2718   :  { %5493 = vmatpush3.bf16.msra.mxu1 %v6063_v6  ;;  %5230 = vmatprep.mubr.msk.f32.mxu1 %vm5783_vm2, %v5784_v51 }
0x2719   :  { %5494 = vmatprep.subr.bf16.mxu1 %v5781_v9 }
0x271c   :  { %5496 = vmatpush3.bf16.msra.mxu1 %v6066_v3 }
0x27e0   :  { %v3711_v36 = vpop.f32.mrb[36].mxu0 }
0x27e1   :  { %v3712_v30 = vadd.f32 %v3711_v36, %v3432_v5  ;;  %v5177_v28 = vpop.f32.mrb[37].mxu0 }
0x27e2   :  { %v3827_v49 = vpop.f32.mrb[40].mxu1 }
0x27e3   :  { %v3715_v46 = vadd.f32 %v3712_v30, %v6110_v33  ;;  %v5188_v57 = vpop.f32.mrb[41].mxu1 }
0x27e5   :  { %3723 = vrot.lane.b32.xlu0 %v3715_v46, %s5785_s29  ;;  %v4538_v21 = vmul.f32 -1.442695, %v3715_v46 }
0x27e7   :  { %5671 = vpow2.f32 %v4538_v21 }
0x27ea   :  { %v3979_v6 = vpop.f32.mrb[42].mxu1 }
0x27eb   :  { %v3983_v18 = vadd.f32 %v3979_v6, %v417_v63  ;;  %v5210_v16 = vpop.f32.mrb[43].mxu1 }
0x27ed   :  { %3991 = vrot.lane.b32.xlu1 %v3983_v18, %s5785_s29  ;;  %v4542_v3 = vmul.f32 -1.442695, %v3983_v18 }
0x27ef   :  { %5673 = vpow2.f32 %v4542_v3 }
0x27f1   :  { %v5672_v45 = vpop.eup %5671 }
0x27f2   :  { %v3719_v47 = vadd.f32 1.0, %v5672_v45 }
0x27f4   :  { %5675 = vrcp.f32 %v3719_v47 }
0x27f9   :  { %v5674_v44 = vpop.eup %5673 }
0x27fa   :  { %v3987_v61 = vadd.f32 1.0, %v5674_v44 }
0x27fc   :  { %5677 = vrcp.f32 %v3987_v61 }
0x27fe   :  { %v5676_v12 = vpop.eup %5675 }
0x27ff   :  { %v3733_v10 = vsub.f32 1.0, %v5676_v12  ;;  %v3739_v15 = vmul.f32 %v5676_v12, %v6515_v39 }
0x2806   :  { %v5678_v55 = vpop.eup %5677 }
0x2807   :  { %v4001_v22 = vsub.f32 1.0, %v5678_v55  ;;  %v4007_v56 = vmul.f32 %v5678_v55, %v6549_v14 }
0x2857   :  { %v3724_v1 = vpop.permute.xlu0 %3723 }
0x2858   :  { %v3726_v34 = vmul.f32 %v5676_v12, %v3724_v1  ;;  %v4217_v1 = vld [vmem:[#allocation7 + $0xb0] sm:$0xff] }
0x285a   :  { %3728 = vrot.lane.b32.xlu0 %v3726_v34, %s5786_s9  ;;  %v4218_v34 = vld [vmem:[#allocation7 + $0xb8] sm:$0xff] }
0x285f   :  { %v3992_v40 = vpop.permute.xlu1 %3991 }
0x2860   :  { %v3994_v54 = vmul.f32 %v5678_v55, %v3992_v40  ;;  %v5497_v55 = vpack.c.bf16 %v4218_v34, %v4217_v1 }
0x2862   :  { %3996 = vrot.lane.b32.xlu1 %v3994_v54, %s5786_s9  ;;  %v4220_v54 = vld [vmem:[#allocation7 + $0xc8] sm:$0xff] }
0x28cc   :  { %v3729_v20 = vpop.permute.xlu0 %3728 }
0x28cd   :  { %v3731_v5 = vadd.f32 %v3729_v20, %v3715_v46 }
0x28cf   :  { %5679 = vtanh.f32 %v3731_v5 }
0x28d4   :  { %v3997_v59 = vpop.permute.xlu1 %3996 }
0x28d5   :  { %v3999_v43 = vadd.f32 %v3997_v59, %v3983_v18 }
0x28d7   :  { %5681 = vtanh.f32 %v3999_v43 }
0x28d9   :  { %v5680_v62 = vpop.eup %5679 }
0x28da   :  { %3735 = vrot.lane.b32.xlu0 %v5680_v62, %s5787_s10 }
0x28e1   :  { %v5682_v0 = vpop.eup %5681 }
0x28e2   :  { %4003 = vrot.lane.b32.xlu1 %v5682_v0, %s5787_s10 }
0x294c   :  { %v3736_v7 = vpop.permute.xlu0 %3735 }
0x294d   :  { %v3738_v32 = vmul.f32 %v3736_v7, %v3733_v10 }
0x294f   :  { %v3740_v35 = vadd.f32 %v3739_v15, %v3738_v32 }
0x2951   :  { %v6586_v4 = vmul.f32 %v6542_v41, %v3740_v35 }
0x2953   :  { %3832 = vrot.lane.b32.xlu0 %v6586_v4, %s5787_s10 }
0x2954   :  { %v4004_v38 = vpop.permute.xlu1 %4003 }
0x2955   :  { %v4006_v42 = vmul.f32 %v4004_v38, %v4001_v22 }
0x2957   :  { %v4008_v26 = vadd.f32 %v4007_v56, %v4006_v42 }
0x2959   :  { %4010 = vrot.lane.b32.xlu1 %v4008_v26, %s5787_s10 }
0x29c5   :  { %v3833_v13 = vpop.permute.xlu0 %3832 }
0x29c6   :  { %5198 = vmatmul.mubr.msk.f32.vlgmr.msra.gmra.mrb[38].mxu0 %vm168_vm1, %v3833_v13  ;;  %v4360_v13 = vsub.s32 3, %v5860_v11 }
0x29c7   :  { %5487 = vmatpush3.bf16.msra.mxu0 %v6025_v17  ;;  %5219 = vmatprep.mubr.msk.f32.mxu0 %vm5783_vm2, %v5784_v51 }
0x29c8   :  { %5488 = vmatprep.subr.bf16.mxu0 %v5781_v9 }
0x29cb   :  { %5490 = vmatpush3.bf16.msra.mxu0 %v6031_v19  ;;  %v4011_v39 = vpop.permute.xlu1 %4010 }
0x29cc   :  { %5498 = vmatprep.subr.bf16.mxu0 %v5497_v55 }
0x29ce   :  { %5220 = vmatmul.mubr.msk.f32.vlgmr.msra.gmra.mrb[40].mxu0 %vm168_vm1, %v4011_v39  ;;  %v5727_v39 = vld [vmem:[%s6697_s4] sm:$0xff] }
0x29cf   :  { %5500 = vmatpush3.bf16.msra.mxu0 %v5497_v55 }
0x2a99   :  { %v3902_v60 = vpop.f32.mrb[38].mxu0 }
0x2a9a   :  { %v5199_v8 = vpop.f32.mrb[39].mxu0 }
0x2aa1   :  { %v4080_v23 = vpop.f32.mrb[40].mxu0 }
0x2aa2   :  { %v4081_v31 = vadd.f32 %v4080_v23, %v3827_v49  ;;  %v5221_v41 = vpop.f32.mrb[41].mxu0 }
0x2aa4   :  { %v4084_v14 = vadd.f32 %v4081_v31, %v6057_v48 }
0x2aa6   :  { %4092 = vrot.lane.b32.xlu0 %v4084_v14, %s5785_s29  ;;  %v4544_v17 = vmul.f32 -1.442695, %v4084_v14 }
0x2aa8   :  { %5683 = vpow2.f32 %v4544_v17 }
0x2ab2   :  { %v5684_v25 = vpop.eup %5683 }
0x2ab3   :  { %v4088_v51 = vadd.f32 1.0, %v5684_v25 }
0x2ab5   :  { %5685 = vrcp.f32 %v4088_v51 }
0x2abf   :  { %v5686_v9 = vpop.eup %5685 }
0x2ac0   :  { %v4102_v28 = vsub.f32 1.0, %v5686_v9  ;;  %v4108_v49 = vmul.f32 %v5686_v9, %v6545_v37 }
0x2b18   :  { %v4093_v58 = vpop.permute.xlu0 %4092 }
0x2b19   :  { %v4095_v19 = vmul.f32 %v5686_v9, %v4093_v58 }
0x2b1b   :  { %4097 = vrot.lane.b32.xlu1 %v4095_v19, %s5786_s9 }
0x2b8d   :  { %v4098_v27 = vpop.permute.xlu1 %4097 }
0x2b8e   :  { %v4100_v36 = vadd.f32 %v4098_v27, %v4084_v14 }
0x2b90   :  { %5687 = vtanh.f32 %v4100_v36 }
0x2b9a   :  { %v5688_v30 = vpop.eup %5687 }
0x2b9b   :  { %4104 = vrot.lane.b32.xlu0 %v5688_v30, %s5787_s10 }
0x2c0d   :  { %v4105_v48 = vpop.permute.xlu0 %4104 }
0x2c0e   :  { %v4107_v46 = vmul.f32 %v4105_v48, %v4102_v28 }
0x2c10   :  { %v4109_v57 = vadd.f32 %v4108_v49, %v4107_v46 }
0x2c12   :  { %4111 = vrot.lane.b32.xlu1 %v4109_v57, %s5787_s10 }
0x2c84   :  { %v4112_v63 = vpop.permute.xlu1 %4111 }
0x2c85   :  { %5231 = vmatmul.mubr.msk.f32.vlgmr.msra.gmra.mrb[44].mxu1 %vm168_vm1, %v4112_v63 }
0x2d58   :  { %v4181_v6 = vpop.f32.mrb[44].mxu1 }
0x2d59   :  { %v4182_v18 = vadd.f32 %v4181_v6, %v3902_v60  ;;  %v5232_v16 = vpop.f32.mrb[45].mxu1  ;;  %v4361_v60 = vrot.slane %v5727_v39, %v4360_v13 }
0x2d5b   :  { %v4185_v21 = vadd.f32 %v4182_v18, %v6110_v33 }
0x2d5d   :  { %4193 = vrot.lane.b32.xlu0 %v4185_v21, %s5785_s29  ;;  %v4546_v3 = vmul.f32 -1.442695, %v4185_v21 }
0x2d5f   :  { %5689 = vpow2.f32 %v4546_v3 }
0x2d69   :  { %v5690_v45 = vpop.eup %5689 }
0x2d6a   :  { %v4189_v47 = vadd.f32 1.0, %v5690_v45 }
0x2d6c   :  { %5691 = vrcp.f32 %v4189_v47 }
0x2d76   :  { %v5692_v37 = vpop.eup %5691 }
0x2d77   :  { %v4203_v62 = vsub.f32 1.0, %v5692_v37  ;;  %v4209_v10 = vmul.f32 %v5692_v37, %v6586_v4 }
0x2dcf   :  { %v4194_v44 = vpop.permute.xlu0 %4193 }
0x2dd0   :  { %v4196_v61 = vmul.f32 %v5692_v37, %v4194_v44 }
0x2dd2   :  { %4198 = vrot.lane.b32.xlu1 %v4196_v61, %s5786_s9 }
0x2dd6   :  { %923 = vrot.lane.b32.xlu1 %v6126_v24, %s5787_s10  ;;  %v4219_v24 = vld [vmem:[#allocation7 + $0xc0] sm:$0xff] }
0x2dd7   :  { %v5501_v20 = vpack.c.bf16 %v4220_v54, %v4219_v24 }
0x2dd9   :  { %5502 = vmatprep.subr.bf16.mxu0 %v5501_v20 }
0x2dda   :  { %1862 = vrot.lane.b32.xlu1 %v6280_v50, %s5787_s10  ;;  %5504 = vmatpush3.bf16.msra.mxu0 %v5501_v20 }
0x2dde   :  { %2802 = vrot.lane.b32.xlu1 %v6434_v2, %s5787_s10 }
0x2de2   :  { %3742 = vrot.lane.b32.xlu1 %v3740_v35, %s5787_s10 }
0x2e44   :  { %v4199_v33 = vpop.permute.xlu1 %4198 }
0x2e45   :  { %v4201_v12 = vadd.f32 %v4199_v33, %v4185_v21 }
0x2e47   :  { %5693 = vtanh.f32 %v4201_v12 }
0x2e48   :  { %v924_v40 = vpop.permute.xlu1 %923 }
0x2e49   :  { %926 = vst.msk [vmem:[#allocation4] sm:$0xff] %vm168_vm1, %v924_v40 }
0x2e4c   :  { %v1863_v50 = vpop.permute.xlu1 %1862 }
0x2e4d   :  { %1866 = vst.msk [vmem:[#allocation4 + $0x10] sm:$0xff] %vm168_vm1, %v1863_v50 }
0x2e50   :  { %v2803_v2 = vpop.permute.xlu1 %2802  ;;  %v4221_v5 = vld [vmem:[#allocation4] sm:$0xff] }
0x2e51   :  { %v5694_v59 = vpop.eup %5693  ;;  %2806 = vst.msk [vmem:[#allocation4 + $0x20] sm:$0xff] %vm168_vm1, %v2803_v2  ;;  %5241 = vmatprep.mubr.msk.f32.mxu0 %vm168_vm1, %v4221_v5 }
0x2e52   :  { %4205 = vrot.lane.b32.xlu0 %v5694_v59, %s5787_s10 }
0x2e54   :  { %v3743_v43 = vpop.permute.xlu1 %3742 }
0x2e55   :  { %3746 = vst.msk [vmem:[#allocation4 + $0x30] sm:$0xff] %vm168_vm1, %v3743_v43 }
0x2e56   :  { %1392 = vrot.lane.b32.xlu0 %v6203_v53, %s5787_s10 }
0x2e58   :  { %v4225_v4 = vld [vmem:[#allocation4 + $0x20] sm:$0xff] }
0x2e5a   :  { %2332 = vrot.lane.b32.xlu0 %v6357_v29, %s5787_s10  ;;  %v4223_v29 = vld [vmem:[#allocation4 + $0x10] sm:$0xff] }
0x2e5c   :  { %v4227_v56 = vld [vmem:[#allocation4 + $0x30] sm:$0xff] }
0x2e5e   :  { %3272 = vrot.lane.b32.xlu0 %v6511_v52, %s5787_s10 }
0x2ec4   :  { %v4206_v0 = vpop.permute.xlu0 %4205 }
0x2ec5   :  { %v4208_v7 = vmul.f32 %v4206_v0, %v4203_v62 }
0x2ec7   :  { %v4210_v15 = vadd.f32 %v4209_v10, %v4208_v7 }
0x2ec8   :  { %v1393_v32 = vpop.permute.xlu0 %1392 }
0x2ec9   :  { %1396 = vst.msk [vmem:[#allocation4 + $0x8] sm:$0xff] %vm168_vm1, %v1393_v32  ;;  %4212 = vrot.lane.b32.xlu0 %v4210_v15, %s5787_s10 }
0x2ecc   :  { %v2333_v35 = vpop.permute.xlu0 %2332 }
0x2ecd   :  { %2336 = vst.msk [vmem:[#allocation4 + $0x18] sm:$0xff] %vm168_vm1, %v2333_v35 }
0x2ed0   :  { %v3273_v53 = vpop.permute.xlu0 %3272  ;;  %v4222_v22 = vld [vmem:[#allocation4 + $0x8] sm:$0xff] }
0x2ed1   :  { %3276 = vst.msk [vmem:[#allocation4 + $0x28] sm:$0xff] %vm168_vm1, %v3273_v53  ;;  %5242 = vmatmul.mubr.msk.f32.vlgmr.msra.gmra.mrb[42].mxu0 %vm168_vm1, %v4222_v22 }
0x2ed2   :  { %5244 = vmatprep.mubr.msk.f32.mxu0 %vm168_vm1, %v4223_v29 }
0x2ed4   :  { %v4224_v52 = vld [vmem:[#allocation4 + $0x18] sm:$0xff] }
0x2ed5   :  { %5245 = vmatmul.mubr.msk.f32.gmra.mrb[44].mxu0 %vm168_vm1, %v4224_v52 }
0x2ed6   :  { %5247 = vmatprep.mubr.msk.f32.mxu0 %vm168_vm1, %v4225_v4 }
0x2ed8   :  { %v4226_v38 = vld [vmem:[#allocation4 + $0x28] sm:$0xff] }
0x2ed9   :  { %5248 = vmatmul.mubr.msk.f32.gmra.mrb[46].mxu0 %vm168_vm1, %v4226_v38 }
0x2eda   :  { %5250 = vmatprep.mubr.msk.f32.mxu0 %vm168_vm1, %v4227_v56 }
0x2f3b   :  { %v4213_v42 = vpop.permute.xlu0 %4212 }
0x2f3c   :  { %4216 = vst.msk [vmem:[#allocation4 + $0x38] sm:$0xff] %vm168_vm1, %v4213_v42 }
0x2f43   :  { %v4228_v26 = vld [vmem:[#allocation4 + $0x38] sm:$0xff] }
0x2f44   :  { %5251 = vmatmul.mubr.msk.f32.gmra.mrb[48].mxu0 %vm168_vm1, %v4228_v26 }
0x2fa4   :  { %v5243_v8 = vpop.f32.mrb[42].mxu0 }
0x2fa5   :  { %v4363_v23 = vadd.f32 %v5243_v8, %v4361_v60  ;;  %v4319_v31 = vpop.f32.mrb[43].mxu0 }
0x2fa6   :  { %v4362_v41 = vadd.f32 %v4361_v60, %v4319_v31 }
0x2fa7   :  { %v4374_v14 = vsel %vm4370_vm3, %v4363_v23, -inf }
0x2fa8   :  { %4375 = vmax.xlane.f32.xlu0 %v4374_v14  ;;  %v5246_v17 = vpop.f32.mrb[44].mxu0  ;;  %v4371_v25 = vsel %vm4370_vm3, %v4362_v41, -inf }
0x2fa9   :  { %v4365_v51 = vadd.f32 %v5246_v17, %v4361_v60  ;;  %4372 = vmax.xlane.f32.xlu1 %v4371_v25  ;;  %v4329_v9 = vpop.f32.mrb[45].mxu0 }
0x2faa   :  { %v4364_v11 = vadd.f32 %v4361_v60, %v4329_v9 }
0x2fab   :  { %v4380_v58 = vsel %vm4370_vm3, %v4365_v51, -inf }
0x2fac   :  { %v5249_v19 = vpop.f32.mrb[46].mxu0  ;;  %v4377_v27 = vsel %vm4370_vm3, %v4364_v11, -inf }
0x2fad   :  { %v4367_v36 = vadd.f32 %v5249_v19, %v4361_v60  ;;  %4381 = vmax.xlane.f32.xlu1 %v4380_v58  ;;  %4378 = vmax.xlane.f32.xlu0 %v4377_v27  ;;  %v4339_v30 = vpop.f32.mrb[47].mxu0 }
0x2fae   :  { %v4366_v28 = vadd.f32 %v4361_v60, %v4339_v30 }
0x2faf   :  { %v4386_v48 = vsel %vm4370_vm3, %v4367_v36, -inf }
0x2fb0   :  { %v4383_v49 = vsel %vm4370_vm3, %v4366_v28, -inf }
0x2fb1   :  { %4387 = vmax.xlane.f32.xlu1 %v4386_v48  ;;  %4384 = vmax.xlane.f32.xlu0 %v4383_v49 }
0x3017   :  { %v5252_v46 = vpop.f32.mrb[48].mxu0 }
0x3018   :  { %v4369_v57 = vadd.f32 %v5252_v46, %v4361_v60  ;;  %v4349_v63 = vpop.f32.mrb[49].mxu0 }
0x3019   :  { %v4368_v6 = vadd.f32 %v4361_v60, %v4349_v63 }
0x301a   :  { %v4392_v18 = vsel %vm4370_vm3, %v4369_v57, -inf }
0x301b   :  { %4393 = vmax.xlane.f32.xlu1 %v4392_v18  ;;  %v4389_v16 = vsel %vm4370_vm3, %v4368_v6, -inf }
0x301c   :  { %4390 = vmax.xlane.f32.xlu0 %v4389_v16 }
0x3035   :  { %v4376_v21 = vpop.xlane.xlu0 %4375 }
0x3036   :  { %v4396_v3 = vsub.f32 %v4363_v23, %v4376_v21  ;;  %v4373_v45 = vpop.xlane.xlu1 %4372 }
0x3037   :  { %v4395_v47 = vsub.f32 %v4362_v41, %v4373_v45 }
0x3038   :  { %v4405_v37 = vmul.f32 1.442695, %v4396_v3 }
0x3039   :  { %v4403_v44 = vmul.f32 1.442695, %v4395_v47 }
0x303a   :  { %5695 = vpow2.f32 %v4405_v37  ;;  %v4379_v61 = vpop.xlane.xlu0 %4378  ;;  %v4382_v33 = vpop.xlane.xlu1 %4381 }
0x303b   :  { %5697 = vpow2.f32 %v4403_v44  ;;  %v4397_v12 = vsub.f32 %v4364_v11, %v4379_v61  ;;  %v4398_v1 = vsub.f32 %v4365_v51, %v4382_v33 }
0x303d   :  { %v4407_v34 = vmul.f32 1.442695, %v4397_v12  ;;  %v4409_v55 = vmul.f32 1.442695, %v4398_v1 }
0x303e   :  { %v4385_v40 = vpop.xlane.xlu0 %4384  ;;  %v4388_v24 = vpop.xlane.xlu1 %4387 }
0x303f   :  { %5699 = vpow2.f32 %v4407_v34  ;;  %v4399_v54 = vsub.f32 %v4366_v28, %v4385_v40  ;;  %v4400_v20 = vsub.f32 %v4367_v36, %v4388_v24 }
0x3040   :  { %5701 = vpow2.f32 %v4409_v55 }
0x3041   :  { %v4411_v50 = vmul.f32 1.442695, %v4399_v54  ;;  %v4413_v2 = vmul.f32 1.442695, %v4400_v20 }
0x3043   :  { %5703 = vpow2.f32 %v4411_v50 }
0x3044   :  { %v5696_v5 = vpop.eup %5695  ;;  %5705 = vpow2.f32 %v4413_v2 }
0x3045   :  { %v5698_v59 = vpop.eup %5697  ;;  %v4422_v43 = vsel %vm4370_vm3, %v5696_v5, 0.0 }
0x3046   :  { %4423 = vadd.xlane.f32.xlu1 %v4422_v43  ;;  %v4419_v62 = vsel %vm4370_vm3, %v5698_v59, 0.0 }
0x3047   :  { %4420 = vadd.xlane.f32.xlu0 %v4419_v62 }
0x3049   :  { %v5700_v0 = vpop.eup %5699 }
0x304a   :  { %v5702_v10 = vpop.eup %5701  ;;  %v4425_v7 = vsel %vm4370_vm3, %v5700_v0, 0.0 }
0x304b   :  { %4426 = vadd.xlane.f32.xlu0 %v4425_v7  ;;  %v4428_v15 = vsel %vm4370_vm3, %v5702_v10, 0.0 }
0x304c   :  { %4429 = vadd.xlane.f32.xlu1 %v4428_v15 }
0x304d   :  { %v5704_v32 = vpop.eup %5703 }
0x304e   :  { %v5706_v35 = vpop.eup %5705  ;;  %v4431_v53 = vsel %vm4370_vm3, %v5704_v32, 0.0 }
0x304f   :  { %4432 = vadd.xlane.f32.xlu0 %v4431_v53  ;;  %v4434_v22 = vsel %vm4370_vm3, %v5706_v35, 0.0 }
0x3050   :  { %4435 = vadd.xlane.f32.xlu1 %v4434_v22 }
0x30a8   :  { %v4394_v29 = vpop.xlane.xlu1 %4393 }
0x30a9   :  { %v4402_v52 = vsub.f32 %v4369_v57, %v4394_v29  ;;  %v4391_v4 = vpop.xlane.xlu0 %4390 }
0x30aa   :  { %v4401_v38 = vsub.f32 %v4368_v6, %v4391_v4 }
0x30ab   :  { %v4417_v56 = vmul.f32 1.442695, %v4402_v52 }
0x30ac   :  { %v4415_v42 = vmul.f32 1.442695, %v4401_v38 }
0x30ad   :  { %5707 = vpow2.f32 %v4417_v56 }
0x30ae   :  { %5709 = vpow2.f32 %v4415_v42 }
0x30b7   :  { %v5708_v26 = vpop.eup %5707 }
0x30b8   :  { %v5710_v13 = vpop.eup %5709  ;;  %v4440_v39 = vsel %vm4370_vm3, %v5708_v26, 0.0 }
0x30b9   :  { %4441 = vadd.xlane.f32.xlu1 %v4440_v39  ;;  %v4437_v60 = vsel %vm4370_vm3, %v5710_v13, 0.0 }
0x30ba   :  { %4438 = vadd.xlane.f32.xlu0 %v4437_v60 }
0x30d3   :  { %v4424_v8 = vpop.xlane.xlu1 %4423 }
0x30d4   :  { %5711 = vrcp.f32 %v4424_v8  ;;  %v4421_v23 = vpop.xlane.xlu0 %4420 }
0x30d5   :  { %5713 = vrcp.f32 %v4421_v23 }
0x30d8   :  { %v4427_v31 = vpop.xlane.xlu0 %4426 }
0x30d9   :  { %5715 = vrcp.f32 %v4427_v31  ;;  %v4430_v41 = vpop.xlane.xlu1 %4429 }
0x30da   :  { %5717 = vrcp.f32 %v4430_v41 }
0x30dc   :  { %v4433_v14 = vpop.xlane.xlu0 %4432 }
0x30dd   :  { %5719 = vrcp.f32 %v4433_v14  ;;  %v4436_v17 = vpop.xlane.xlu1 %4435 }
0x30de   :  { %v5712_v25 = vpop.eup %5711  ;;  %5721 = vrcp.f32 %v4436_v17 }
0x30df   :  { %v5714_v51 = vpop.eup %5713  ;;  %v4452_v9 = vmul.f32 %v5712_v25, %v5696_v5 }
0x30e0   :  { %v4451_v11 = vmul.f32 %v5714_v51, %v5698_v59 }
0x30e1   :  { %4460 = vst.msk [vmem:[%s6698_s5 + $0x8] sm:$0xff] %vm4370_vm3, %v4452_v9 }
0x30e2   :  { %4459 = vst.msk [vmem:[%s6698_s5] sm:$0xff] %vm4370_vm3, %v4451_v11 }
0x30e3   :  { %v5716_v58 = vpop.eup %5715 }
0x30e4   :  { %v5718_v19 = vpop.eup %5717  ;;  %v4453_v27 = vmul.f32 %v5716_v58, %v5700_v0 }
0x30e5   :  { %v4454_v36 = vmul.f32 %v5718_v19, %v5702_v10 }
0x30e6   :  { %4461 = vst.msk [vmem:[%s6698_s5 + $0x10] sm:$0xff] %vm4370_vm3, %v4453_v27 }
0x30e7   :  { %v5720_v30 = vpop.eup %5719  ;;  %4462 = vst.msk [vmem:[%s6698_s5 + $0x18] sm:$0xff] %vm4370_vm3, %v4454_v36 }
0x30e8   :  { %v5722_v28 = vpop.eup %5721  ;;  %v4455_v48 = vmul.f32 %v5720_v30, %v5704_v32 }
0x30e9   :  { %v4456_v49 = vmul.f32 %v5722_v28, %v5706_v35 }
0x30ea   :  { %4463 = vst.msk [vmem:[%s6698_s5 + $0x20] sm:$0xff] %vm4370_vm3, %v4455_v48 }
0x30eb   :  { %4464 = vst.msk [vmem:[%s6698_s5 + $0x28] sm:$0xff] %vm4370_vm3, %v4456_v49 }
0x3146   :  { %v4442_v46 = vpop.xlane.xlu1 %4441 }
0x3147   :  { %5723 = vrcp.f32 %v4442_v46  ;;  %v4439_v57 = vpop.xlane.xlu0 %4438 }
0x3148   :  { %5725 = vrcp.f32 %v4439_v57 }
0x3151   :  { %v5724_v63 = vpop.eup %5723 }
0x3152   :  { %v5726_v6 = vpop.eup %5725  ;;  %v4458_v18 = vmul.f32 %v5724_v63, %v5708_v26 }
0x3153   :  { %v4457_v16 = vmul.f32 %v5726_v6, %v5710_v13 }
0x3154   :  { %4466 = vst.msk [vmem:[%s6698_s5 + $0x38] sm:$0xff] %vm4370_vm3, %v4458_v18 }
0x3155   :  { %4465 = vst.msk [vmem:[%s6698_s5 + $0x30] sm:$0xff] %vm4370_vm3, %v4457_v16 }
0x3156   :  { %4471 = vsyncpa [#allocation6], 1 }
0x3157   :  { %4472 = vsyncpa [#allocation8], 1 }

</bundles_post_ra>
